<compile_context>
chip_gen: v7x
topology: tpu7x:2x2x1
jax: 0.10.0
libtpu: 0.0.40
codegen_flags: <defaults>
</compile_context>

<pallas_src>
import math

import numpy as np
import jax
import jax.numpy as jnp
from jax.experimental import pallas as pl
from jax.experimental.pallas import tpu as pltpu

NUM_HEADS = 8
LN_EPS = 1e-5  # PyTorch nn.LayerNorm default


def _cdiv(a, b):
    return -(-a // b)


def _reducer_kernel(x_ref, w_qkv_ref, b_qkv_ref, w_o_ref, b_o_ref,
                    ln1_g_ref, ln1_b_ref, w1_ref, b1_ref, w2_ref, b2_ref,
                    ln2_g_ref, ln2_b_ref, ahead_ref, aln_ref, o_ref):
    G, T, L = x_ref.shape            # G lane-groups, T time steps, L = P*C lanes
    M = G * T

    x_bf = x_ref[...].reshape(M, L)                      # bf16 (M, L)
    xf = x_bf.astype(jnp.float32)                        # f32 residual base

    # --- packed QKV projection: one (M, L) @ (L, 3L) bf16 matmul, K = L -----
    # (softmax scale 1/sqrt(Dh) pre-folded into the Q columns host-side)
    qkv = jnp.dot(x_bf, w_qkv_ref[...],
                  preferred_element_type=jnp.float32) + b_qkv_ref[...]
    q = qkv[:, 0 * L:1 * L].reshape(G, T, L)
    k = qkv[:, 1 * L:2 * L].reshape(G, T, L)
    v = qkv[:, 2 * L:3 * L].reshape(G, T, L)

    q_bf = q.astype(jnp.bfloat16)
    k_bf = k.astype(jnp.bfloat16)
    ahead = ahead_ref[...]                               # (L, L) bf16, 1 iff same (seq, head)

    # --- attention, unrolled over the T query steps; everything lane-dense ---
    # scores are kept broadcast over each head's Dh lanes, so the V weighting
    # is a plain lane-wise multiply + sublane reduce (no packing / unpacking).
    outs = []
    for tq in range(T):
        e = q_bf[:, tq, :][:, None, :] * k_bf            # (G, T, L) bf16, in-vreg
        sb = jnp.dot(e.reshape(M, L), ahead,             # head-segment sum, K=N=L
                     preferred_element_type=jnp.float32).reshape(G, T, L)
        sb = sb - jnp.max(sb, axis=1, keepdims=True)     # softmax over keys (sublane reduce)
        p = jnp.exp(sb)
        denom = jnp.sum(p, axis=1, keepdims=True)
        p = p * pl.reciprocal(denom, approx=False)       # exact reciprocal
        outs.append(jnp.sum(p * v, axis=1))              # (G, L) attention output row tq
    attn = jnp.concatenate([o[:, None, :] for o in outs], axis=1).reshape(M, L)

    # --- packed out-projection ------------------------------------------------
    attn = jnp.dot(attn.astype(jnp.bfloat16), w_o_ref[...],
                   preferred_element_type=jnp.float32) + b_o_ref[...]

    # --- per-token (C-lane segment) LayerNorm via block-diag averaging matmul -
    aln = aln_ref[...]                                   # (L, L) f32, 1/C within a token

    def seg_layernorm(h, gamma, beta):
        mean = jnp.dot(h, aln, preferred_element_type=jnp.float32)
        d = h - mean
        var = jnp.dot(d * d, aln, preferred_element_type=jnp.float32)
        return d * jax.lax.rsqrt(var + LN_EPS) * gamma + beta

    x1 = seg_layernorm(xf + attn, ln1_g_ref[...], ln1_b_ref[...])

    # --- packed MLP: Linear(C,2C) -> ReLU -> Linear(2C,C) ---------------------
    h1 = jnp.dot(x1.astype(jnp.bfloat16), w1_ref[...],
                 preferred_element_type=jnp.float32) + b1_ref[...]
    h1 = jnp.maximum(h1, 0.0)
    mlp = jnp.dot(h1.astype(jnp.bfloat16), w2_ref[...],
                  preferred_element_type=jnp.float32) + b2_ref[...]

    # --- residual + LayerNorm 2, mean over T, lane-dense (G, 128) store -------
    x2 = seg_layernorm(x1 + mlp, ln2_g_ref[...], ln2_b_ref[...])
    red = jnp.mean(x2.reshape(G, T, L), axis=1)          # (G, L)
    o_ref[...] = red.astype(o_ref.dtype)


def _choose_block_g(ng, target=128):
    """Lane-groups per grid step: multiple of 8, grid kept even and >= 2."""
    if ng <= 8:
        return max(ng, 1)
    steps = max(2, _cdiv(ng, target))
    if steps % 2:
        steps += 1                      # even block count -> both v7x TCs stay busy
    g = _cdiv(_cdiv(ng, steps), 8) * 8
    return max(8, min(g, target))


def _derive_vmem_limit(g_blk, T, L, weight_bytes):
    """Derived VMEM budget: 2x I/O blocks + weights + estimated temporaries."""
    in_blk = g_blk * T * L * 2          # bf16 input block
    out_blk = g_blk * L * 4             # f32 output block
    temps = 48 * g_blk * T * L * 4      # qkv/q/k/v, per-tq score tiles, MLP, LN
    need = 2 * (in_blk + out_blk) + 2 * weight_bytes + temps
    mb = 1 << 20
    return int(min(max(_cdiv(need, mb) * mb, 16 * mb), 32 * mb))   # cap for v7x


def _prepare_packed_params(params, C, P):
    """Block-diagonally replicate weights over the P packed sequences (bf16)."""
    H = NUM_HEADS
    Dh = C // H
    scale = 1.0 / math.sqrt(Dh)
    eye_p = jnp.eye(P, dtype=jnp.float32)

    def pack_w(w):      # (Cin, Cout) -> block-diag (P*Cin, P*Cout)
        return jnp.kron(eye_p, w.astype(jnp.float32))

    def pack_b(b):      # (Cout,) -> (1, P*Cout)
        return jnp.tile(b.astype(jnp.float32), P)[None, :]

    w_qkv = params['w_qkv']
    b_qkv = params['b_qkv'][0]
    wq, wk, wv = w_qkv[:, :C] * scale, w_qkv[:, C:2 * C], w_qkv[:, 2 * C:]
    bq, bk, bv = b_qkv[:C] * scale, b_qkv[C:2 * C], b_qkv[2 * C:]

    return {
        'w_qkv': jnp.concatenate([pack_w(wq), pack_w(wk), pack_w(wv)],
                                 axis=1).astype(jnp.bfloat16),
        'b_qkv': jnp.concatenate([pack_b(bq), pack_b(bk), pack_b(bv)], axis=1),
        'w_o': pack_w(params['w_o']).astype(jnp.bfloat16),
        'b_o': pack_b(params['b_o'][0]),
        'ln1_g': pack_b(params['ln1_g'][0]),
        'ln1_b': pack_b(params['ln1_b'][0]),
        'w1': pack_w(params['w1']).astype(jnp.bfloat16),
        'b1': pack_b(params['b1'][0]),
        'w2': pack_w(params['w2']).astype(jnp.bfloat16),
        'b2': pack_b(params['b2'][0]),
        'ln2_g': pack_b(params['ln2_g'][0]),
        'ln2_b': pack_b(params['ln2_b'][0]),
        # 1 iff two lanes belong to the same (sequence, head) Dh-segment
        'ahead': jnp.kron(jnp.eye(P * H, dtype=jnp.float32),
                          jnp.ones((Dh, Dh), jnp.float32)).astype(jnp.bfloat16),
        # per-token (C-lane segment) averaging matrix, kept in f32 for LN
        'aln': jnp.kron(eye_p, jnp.full((C, C), 1.0 / C, jnp.float32)),
    }


def smplx_temporal_reducer(x, params, *, target_block_tokens=512):
    B, T, C, S = x.shape
    assert C % NUM_HEADS == 0
    N = B * S
    P = 128 // C if (C <= 128 and 128 % C == 0) else 1   # sequences per 128-lane row
    L = P * C

    # 'b t c s -> (b s) t c', fused with zero-padding, lane-group packing and
    # the bf16 cast into one host-side copy (single pass over x).
    xt = jnp.transpose(x, (0, 3, 1, 2)).reshape(N, T, C)
    ng = _cdiv(N, P)
    g_blk = _choose_block_g(ng, max(1, target_block_tokens // P))
    ng_pad = _cdiv(ng, g_blk) * g_blk
    n_pad = ng_pad * P
    if n_pad != N:
        xt = jnp.pad(xt, ((0, n_pad - N), (0, 0), (0, 0)))
    xp = xt.reshape(ng_pad, P, T, C).transpose(0, 2, 1, 3).reshape(ng_pad, T, L)
    xp = xp.astype(jnp.bfloat16)

    prep = _prepare_packed_params(params, C, P)
    weight_bytes = sum(int(a.size) * np.dtype(a.dtype).itemsize
                       for a in prep.values())

    def _const_spec(shape):
        zeros = (0,) * len(shape)
        return pl.BlockSpec(shape, lambda i: zeros)

    out = pl.pallas_call(
        _reducer_kernel,
        out_shape=jax.ShapeDtypeStruct((ng_pad, L), jnp.float32),
        grid_spec=pltpu.PrefetchScalarGridSpec(
            num_scalar_prefetch=0,
            grid=(ng_pad // g_blk,),
            in_specs=[
                pl.BlockSpec((g_blk, T, L), lambda i: (i, 0, 0)),
                _const_spec((L, 3 * L)), _const_spec((1, 3 * L)),   # packed qkv proj
                _const_spec((L, L)),     _const_spec((1, L)),       # packed out proj
                _const_spec((1, L)),     _const_spec((1, L)),       # layernorm 1
                _const_spec((L, 2 * L)), _const_spec((1, 2 * L)),   # packed mlp linear 1
                _const_spec((2 * L, L)), _const_spec((1, L)),       # packed mlp linear 2
                _const_spec((1, L)),     _const_spec((1, L)),       # layernorm 2
                _const_spec((L, L)),                                 # head-segment summer
                _const_spec((L, L)),                                 # per-token mean matrix
            ],
            out_specs=pl.BlockSpec((g_blk, L), lambda i: (i, 0)),
        ),
        compiler_params=pltpu.CompilerParams(
            dimension_semantics=("parallel",),
            vmem_limit_bytes=_derive_vmem_limit(g_blk, T, L, weight_bytes)),
    )(xp, prep['w_qkv'], prep['b_qkv'], prep['w_o'], prep['b_o'],
      prep['ln1_g'], prep['ln1_b'], prep['w1'], prep['b1'],
      prep['w2'], prep['b2'], prep['ln2_g'], prep['ln2_b'],
      prep['ahead'], prep['aln'])

    # (ng_pad, P*C) -> (N, C) -> (B, 1, C, S)
    out = out.reshape(n_pad, C)[:N].reshape(B, S, C)
    return jnp.transpose(out, (0, 2, 1))[:, None, :, :].astype(x.dtype)


def init_params(key, C):
    """Deterministic synthetic parameters matching the nn.Module shapes."""
    ks = jax.random.split(key, 8)
    sd = 0.05
    w_in = jax.random.normal(ks[0], (3 * C, C), jnp.float32) * sd   # in_proj_weight
    b_in = jax.random.normal(ks[1], (3 * C,), jnp.float32) * sd     # in_proj_bias
    w_out = jax.random.normal(ks[2], (C, C), jnp.float32) * sd      # out_proj.weight
    b_out = jax.random.normal(ks[3], (C,), jnp.float32) * sd        # out_proj.bias
    w1 = jax.random.normal(ks[4], (2 * C, C), jnp.float32) * sd     # mlp[0].weight
    b1 = jax.random.normal(ks[5], (2 * C,), jnp.float32) * sd       # mlp[0].bias
    w2 = jax.random.normal(ks[6], (C, 2 * C), jnp.float32) * sd     # mlp[2].weight
    b2 = jax.random.normal(ks[7], (C,), jnp.float32) * sd           # mlp[2].bias
    return {
        'w_qkv': w_in.T, 'b_qkv': b_in[None, :],
        'w_o': w_out.T, 'b_o': b_out[None, :],
        'ln1_g': jnp.ones((1, C), jnp.float32),
        'ln1_b': jnp.zeros((1, C), jnp.float32),
        'w1': w1.T, 'b1': b1[None, :],
        'w2': w2.T, 'b2': b2[None, :],
        'ln2_g': jnp.ones((1, C), jnp.float32),
        'ln2_b': jnp.zeros((1, C), jnp.float32),
    }


def reference(x, params):
    """Pure-JAX f32 mirror of the PyTorch forward (eval mode), for validation."""
    B, T, C, S = x.shape
    xt = jnp.transpose(x, (0, 3, 1, 2)).reshape(B * S, T, C)
    qkv = xt @ params['w_qkv'] + params['b_qkv'][0]
    q, k, v = jnp.split(qkv, 3, axis=-1)
    H, Dh = NUM_HEADS, C // NUM_HEADS

    def heads(z):
        return z.reshape(z.shape[0], T, H, Dh).transpose(0, 2, 1, 3)

    s = jnp.einsum('bhqd,bhkd->bhqk', heads(q), heads(k)) / math.sqrt(Dh)
    p = jax.nn.softmax(s, axis=-1)
    o = jnp.einsum('bhqk,bhkd->bhqd', p, heads(v)).transpose(0, 2, 1, 3)
    attn = o.reshape(-1, T, C) @ params['w_o'] + params['b_o'][0]

    def ln(z, g, b):
        m = z.mean(-1, keepdims=True)
        var = jnp.square(z - m).mean(-1, keepdims=True)
        return (z - m) / jnp.sqrt(var + LN_EPS) * g + b

    x1 = ln(xt + attn, params['ln1_g'][0], params['ln1_b'][0])
    mlp = jnp.maximum(x1 @ params['w1'] + params['b1'][0], 0.0) @ params['w2'] + params['b2'][0]
    x2 = ln(x1 + mlp, params['ln2_g'][0], params['ln2_b'][0])
    out = x2.mean(axis=1)
    return out.reshape(B, S, C).transpose(0, 2, 1)[:, None, :, :]


if __name__ == "__main__":
    # TODO(synk): nn.MultiheadAttention dropout (p=0.1) is not modeled (eval mode).
    B, T, C, S = 2, 8, 32, 16   # C divisible by num_heads=8 -> head_dim=4
    key = jax.random.PRNGKey(0)
    kx, kp = jax.random.split(key)
    x = jax.random.normal(kx, (B, T, C, S), jnp.float32)
    params = init_params(kp, C)

    run = jax.jit(smplx_temporal_reducer)
    out = jax.block_until_ready(run(x, params))
    assert out.shape == (B, 1, C, S), out.shape

    ref = reference(x, params)
    # bf16 MXU operands / bf16 input cast -> loose tolerance vs the f32 reference
    np.testing.assert_allclose(np.asarray(out), np.asarray(ref),
                               rtol=2e-2, atol=2e-2)
    print("KERNEL_OK")
</pallas_src>

<mosaic_0001>
module attributes {stable_mosaic.version = 11 : i64} {
  func.func @_reducer_kernel(%arg0: i32, %arg1: memref<8x8x128xbf16, #tpu.memory_space<vmem>>, %arg2: memref<128x384xbf16, #tpu.memory_space<vmem>>, %arg3: memref<1x384xf32, #tpu.memory_space<vmem>>, %arg4: memref<128x128xbf16, #tpu.memory_space<vmem>>, %arg5: memref<1x128xf32, #tpu.memory_space<vmem>>, %arg6: memref<1x128xf32, #tpu.memory_space<vmem>>, %arg7: memref<1x128xf32, #tpu.memory_space<vmem>>, %arg8: memref<128x256xbf16, #tpu.memory_space<vmem>>, %arg9: memref<1x256xf32, #tpu.memory_space<vmem>>, %arg10: memref<256x128xbf16, #tpu.memory_space<vmem>>, %arg11: memref<1x128xf32, #tpu.memory_space<vmem>>, %arg12: memref<1x128xf32, #tpu.memory_space<vmem>>, %arg13: memref<1x128xf32, #tpu.memory_space<vmem>>, %arg14: memref<128x128xbf16, #tpu.memory_space<vmem>>, %arg15: memref<128x128xf32, #tpu.memory_space<vmem>>, %arg16: memref<8x128xf32, #tpu.memory_space<vmem>>) attributes {dimension_semantics = [#tpu.dimension_semantics<parallel>], iteration_bounds = array<i64: 1>, scalar_prefetch = 0 : i64, scratch_operands = 0 : i64, tpu.core_type = #tpu.core_type<tc>, window_params = [{transform_indices = @transform_0, window_bounds = array<i64: 8, 8, 128>}, {pipeline_mode = #tpu.pipeline_mode<synchronous>, transform_indices = @transform_1, window_bounds = array<i64: 128, 384>}, {pipeline_mode = #tpu.pipeline_mode<synchronous>, transform_indices = @transform_2, window_bounds = array<i64: 1, 384>}, {pipeline_mode = #tpu.pipeline_mode<synchronous>, transform_indices = @transform_3, window_bounds = array<i64: 128, 128>}, {pipeline_mode = #tpu.pipeline_mode<synchronous>, transform_indices = @transform_4, window_bounds = array<i64: 1, 128>}, {pipeline_mode = #tpu.pipeline_mode<synchronous>, transform_indices = @transform_5, window_bounds = array<i64: 1, 128>}, {pipeline_mode = #tpu.pipeline_mode<synchronous>, transform_indices = @transform_6, window_bounds = array<i64: 1, 128>}, {pipeline_mode = #tpu.pipeline_mode<synchronous>, transform_indices = @transform_7, window_bounds = array<i64: 128, 256>}, {pipeline_mode = #tpu.pipeline_mode<synchronous>, transform_indices = @transform_8, window_bounds = array<i64: 1, 256>}, {pipeline_mode = #tpu.pipeline_mode<synchronous>, transform_indices = @transform_9, window_bounds = array<i64: 256, 128>}, {pipeline_mode = #tpu.pipeline_mode<synchronous>, transform_indices = @transform_10, window_bounds = array<i64: 1, 128>}, {pipeline_mode = #tpu.pipeline_mode<synchronous>, transform_indices = @transform_11, window_bounds = array<i64: 1, 128>}, {pipeline_mode = #tpu.pipeline_mode<synchronous>, transform_indices = @transform_12, window_bounds = array<i64: 1, 128>}, {pipeline_mode = #tpu.pipeline_mode<synchronous>, transform_indices = @transform_13, window_bounds = array<i64: 128, 128>}, {pipeline_mode = #tpu.pipeline_mode<synchronous>, transform_indices = @transform_14, window_bounds = array<i64: 128, 128>}, {transform_indices = @transform_15, window_bounds = array<i64: 8, 128>}]} {
    %c0 = arith.constant 0 : index
    %c0_0 = arith.constant 0 : index
    %c0_1 = arith.constant 0 : index
    %0 = vector.load %arg1[%c0, %c0_0, %c0_1] : memref<8x8x128xbf16, #tpu.memory_space<vmem>>, vector<8x8x128xbf16>
    %1 = vector.shape_cast %0 : vector<8x8x128xbf16> to vector<64x128xbf16>
    %2 = arith.extf %1 : vector<64x128xbf16> to vector<64x128xf32>
    %c0_2 = arith.constant 0 : index
    %c0_3 = arith.constant 0 : index
    %3 = vector.load %arg2[%c0_2, %c0_3] : memref<128x384xbf16, #tpu.memory_space<vmem>>, vector<128x384xbf16>
    %cst = arith.constant dense<0.000000e+00> : vector<64x384xf32>
    %4 = tpu.matmul %1, %3, %cst {dimension_numbers = #tpu.dot_dimension_numbers<[1], [0], [0], [1], [0, 0, 1, 1], [], []>} : vector<64x128xbf16>, vector<128x384xbf16>, vector<64x384xf32> -> vector<64x384xf32>
    %c0_4 = arith.constant 0 : index
    %c0_5 = arith.constant 0 : index
    %5 = vector.load %arg3[%c0_4, %c0_5] : memref<1x384xf32, #tpu.memory_space<vmem>>, vector<1x384xf32>
    %6 = vector.broadcast %5 : vector<1x384xf32> to vector<64x384xf32>
    %7 = arith.addf %4, %6 : vector<64x384xf32>
    %8 = vector.extract_strided_slice %7 {offsets = [0, 0], sizes = [64, 128], strides = [1, 1]} : vector<64x384xf32> to vector<64x128xf32>
    %9 = vector.shape_cast %8 : vector<64x128xf32> to vector<8x8x128xf32>
    %10 = vector.extract_strided_slice %7 {offsets = [0, 128], sizes = [64, 128], strides = [1, 1]} : vector<64x384xf32> to vector<64x128xf32>
    %11 = vector.shape_cast %10 : vector<64x128xf32> to vector<8x8x128xf32>
    %12 = vector.extract_strided_slice %7 {offsets = [0, 256], sizes = [64, 128], strides = [1, 1]} : vector<64x384xf32> to vector<64x128xf32>
    %13 = vector.shape_cast %12 : vector<64x128xf32> to vector<8x8x128xf32>
    %14 = arith.truncf %9 : vector<8x8x128xf32> to vector<8x8x128xbf16>
    %15 = arith.truncf %11 : vector<8x8x128xf32> to vector<8x8x128xbf16>
    %c0_6 = arith.constant 0 : index
    %c0_7 = arith.constant 0 : index
    %16 = vector.load %arg14[%c0_6, %c0_7] : memref<128x128xbf16, #tpu.memory_space<vmem>>, vector<128x128xbf16>
    %17 = vector.extract_strided_slice %14 {offsets = [0, 0, 0], sizes = [8, 1, 128], strides = [1, 1, 1]} : vector<8x8x128xbf16> to vector<8x1x128xbf16>
    %18 = vector.shape_cast %17 : vector<8x1x128xbf16> to vector<8x128xbf16>
    %19 = vector.shape_cast %18 : vector<8x128xbf16> to vector<8x1x128xbf16>
    %20 = vector.broadcast %19 : vector<8x1x128xbf16> to vector<8x8x128xbf16>
    %21 = arith.mulf %20, %15 : vector<8x8x128xbf16>
    %22 = vector.shape_cast %21 : vector<8x8x128xbf16> to vector<64x128xbf16>
    %cst_8 = arith.constant dense<0.000000e+00> : vector<64x128xf32>
    %23 = tpu.matmul %22, %16, %cst_8 {dimension_numbers = #tpu.dot_dimension_numbers<[1], [0], [0], [1], [0, 0, 1, 1], [], []>} : vector<64x128xbf16>, vector<128x128xbf16>, vector<64x128xf32> -> vector<64x128xf32>
    %24 = vector.shape_cast %23 : vector<64x128xf32> to vector<8x8x128xf32>
    %cst_9 = arith.constant dense<0xFF800000> : vector<8x128xf32>
    %25 = vector.multi_reduction <maximumf>, %24, %cst_9 [1] : vector<8x8x128xf32> to vector<8x128xf32>
    %26 = vector.shape_cast %25 : vector<8x128xf32> to vector<8x1x128xf32>
    %27 = vector.broadcast %26 : vector<8x1x128xf32> to vector<8x8x128xf32>
    %28 = arith.subf %24, %27 : vector<8x8x128xf32>
    %29 = math.exp %28 : vector<8x8x128xf32>
    %cst_10 = arith.constant dense<0.000000e+00> : vector<8x128xf32>
    %30 = vector.multi_reduction <add>, %29, %cst_10 [1] : vector<8x8x128xf32> to vector<8x128xf32>
    %31 = vector.shape_cast %30 : vector<8x128xf32> to vector<8x1x128xf32>
    %32 = tpu.reciprocal %31 : vector<8x1x128xf32> -> vector<8x1x128xf32>
    %33 = vector.broadcast %32 : vector<8x1x128xf32> to vector<8x8x128xf32>
    %34 = arith.mulf %29, %33 : vector<8x8x128xf32>
    %35 = arith.mulf %34, %13 : vector<8x8x128xf32>
    %cst_11 = arith.constant dense<0.000000e+00> : vector<8x128xf32>
    %36 = vector.multi_reduction <add>, %35, %cst_11 [1] : vector<8x8x128xf32> to vector<8x128xf32>
    %37 = vector.extract_strided_slice %14 {offsets = [0, 1, 0], sizes = [8, 1, 128], strides = [1, 1, 1]} : vector<8x8x128xbf16> to vector<8x1x128xbf16>
    %38 = vector.shape_cast %37 : vector<8x1x128xbf16> to vector<8x128xbf16>
    %39 = vector.shape_cast %38 : vector<8x128xbf16> to vector<8x1x128xbf16>
    %40 = vector.broadcast %39 : vector<8x1x128xbf16> to vector<8x8x128xbf16>
    %41 = arith.mulf %40, %15 : vector<8x8x128xbf16>
    %42 = vector.shape_cast %41 : vector<8x8x128xbf16> to vector<64x128xbf16>
    %cst_12 = arith.constant dense<0.000000e+00> : vector<64x128xf32>
    %43 = tpu.matmul %42, %16, %cst_12 {dimension_numbers = #tpu.dot_dimension_numbers<[1], [0], [0], [1], [0, 0, 1, 1], [], []>} : vector<64x128xbf16>, vector<128x128xbf16>, vector<64x128xf32> -> vector<64x128xf32>
    %44 = vector.shape_cast %43 : vector<64x128xf32> to vector<8x8x128xf32>
    %cst_13 = arith.constant dense<0xFF800000> : vector<8x128xf32>
    %45 = vector.multi_reduction <maximumf>, %44, %cst_13 [1] : vector<8x8x128xf32> to vector<8x128xf32>
    %46 = vector.shape_cast %45 : vector<8x128xf32> to vector<8x1x128xf32>
    %47 = vector.broadcast %46 : vector<8x1x128xf32> to vector<8x8x128xf32>
    %48 = arith.subf %44, %47 : vector<8x8x128xf32>
    %49 = math.exp %48 : vector<8x8x128xf32>
    %cst_14 = arith.constant dense<0.000000e+00> : vector<8x128xf32>
    %50 = vector.multi_reduction <add>, %49, %cst_14 [1] : vector<8x8x128xf32> to vector<8x128xf32>
    %51 = vector.shape_cast %50 : vector<8x128xf32> to vector<8x1x128xf32>
    %52 = tpu.reciprocal %51 : vector<8x1x128xf32> -> vector<8x1x128xf32>
    %53 = vector.broadcast %52 : vector<8x1x128xf32> to vector<8x8x128xf32>
    %54 = arith.mulf %49, %53 : vector<8x8x128xf32>
    %55 = arith.mulf %54, %13 : vector<8x8x128xf32>
    %cst_15 = arith.constant dense<0.000000e+00> : vector<8x128xf32>
    %56 = vector.multi_reduction <add>, %55, %cst_15 [1] : vector<8x8x128xf32> to vector<8x128xf32>
    %57 = vector.extract_strided_slice %14 {offsets = [0, 2, 0], sizes = [8, 1, 128], strides = [1, 1, 1]} : vector<8x8x128xbf16> to vector<8x1x128xbf16>
    %58 = vector.shape_cast %57 : vector<8x1x128xbf16> to vector<8x128xbf16>
    %59 = vector.shape_cast %58 : vector<8x128xbf16> to vector<8x1x128xbf16>
    %60 = vector.broadcast %59 : vector<8x1x128xbf16> to vector<8x8x128xbf16>
    %61 = arith.mulf %60, %15 : vector<8x8x128xbf16>
    %62 = vector.shape_cast %61 : vector<8x8x128xbf16> to vector<64x128xbf16>
    %cst_16 = arith.constant dense<0.000000e+00> : vector<64x128xf32>
    %63 = tpu.matmul %62, %16, %cst_16 {dimension_numbers = #tpu.dot_dimension_numbers<[1], [0], [0], [1], [0, 0, 1, 1], [], []>} : vector<64x128xbf16>, vector<128x128xbf16>, vector<64x128xf32> -> vector<64x128xf32>
    %64 = vector.shape_cast %63 : vector<64x128xf32> to vector<8x8x128xf32>
    %cst_17 = arith.constant dense<0xFF800000> : vector<8x128xf32>
    %65 = vector.multi_reduction <maximumf>, %64, %cst_17 [1] : vector<8x8x128xf32> to vector<8x128xf32>
    %66 = vector.shape_cast %65 : vector<8x128xf32> to vector<8x1x128xf32>
    %67 = vector.broadcast %66 : vector<8x1x128xf32> to vector<8x8x128xf32>
    %68 = arith.subf %64, %67 : vector<8x8x128xf32>
    %69 = math.exp %68 : vector<8x8x128xf32>
    %cst_18 = arith.constant dense<0.000000e+00> : vector<8x128xf32>
    %70 = vector.multi_reduction <add>, %69, %cst_18 [1] : vector<8x8x128xf32> to vector<8x128xf32>
    %71 = vector.shape_cast %70 : vector<8x128xf32> to vector<8x1x128xf32>
    %72 = tpu.reciprocal %71 : vector<8x1x128xf32> -> vector<8x1x128xf32>
    %73 = vector.broadcast %72 : vector<8x1x128xf32> to vector<8x8x128xf32>
    %74 = arith.mulf %69, %73 : vector<8x8x128xf32>
    %75 = arith.mulf %74, %13 : vector<8x8x128xf32>
    %cst_19 = arith.constant dense<0.000000e+00> : vector<8x128xf32>
    %76 = vector.multi_reduction <add>, %75, %cst_19 [1] : vector<8x8x128xf32> to vector<8x128xf32>
    %77 = vector.extract_strided_slice %14 {offsets = [0, 3, 0], sizes = [8, 1, 128], strides = [1, 1, 1]} : vector<8x8x128xbf16> to vector<8x1x128xbf16>
    %78 = vector.shape_cast %77 : vector<8x1x128xbf16> to vector<8x128xbf16>
    %79 = vector.shape_cast %78 : vector<8x128xbf16> to vector<8x1x128xbf16>
    %80 = vector.broadcast %79 : vector<8x1x128xbf16> to vector<8x8x128xbf16>
    %81 = arith.mulf %80, %15 : vector<8x8x128xbf16>
    %82 = vector.shape_cast %81 : vector<8x8x128xbf16> to vector<64x128xbf16>
    %cst_20 = arith.constant dense<0.000000e+00> : vector<64x128xf32>
    %83 = tpu.matmul %82, %16, %cst_20 {dimension_numbers = #tpu.dot_dimension_numbers<[1], [0], [0], [1], [0, 0, 1, 1], [], []>} : vector<64x128xbf16>, vector<128x128xbf16>, vector<64x128xf32> -> vector<64x128xf32>
    %84 = vector.shape_cast %83 : vector<64x128xf32> to vector<8x8x128xf32>
    %cst_21 = arith.constant dense<0xFF800000> : vector<8x128xf32>
    %85 = vector.multi_reduction <maximumf>, %84, %cst_21 [1] : vector<8x8x128xf32> to vector<8x128xf32>
    %86 = vector.shape_cast %85 : vector<8x128xf32> to vector<8x1x128xf32>
    %87 = vector.broadcast %86 : vector<8x1x128xf32> to vector<8x8x128xf32>
    %88 = arith.subf %84, %87 : vector<8x8x128xf32>
    %89 = math.exp %88 : vector<8x8x128xf32>
    %cst_22 = arith.constant dense<0.000000e+00> : vector<8x128xf32>
    %90 = vector.multi_reduction <add>, %89, %cst_22 [1] : vector<8x8x128xf32> to vector<8x128xf32>
    %91 = vector.shape_cast %90 : vector<8x128xf32> to vector<8x1x128xf32>
    %92 = tpu.reciprocal %91 : vector<8x1x128xf32> -> vector<8x1x128xf32>
    %93 = vector.broadcast %92 : vector<8x1x128xf32> to vector<8x8x128xf32>
    %94 = arith.mulf %89, %93 : vector<8x8x128xf32>
    %95 = arith.mulf %94, %13 : vector<8x8x128xf32>
    %cst_23 = arith.constant dense<0.000000e+00> : vector<8x128xf32>
    %96 = vector.multi_reduction <add>, %95, %cst_23 [1] : vector<8x8x128xf32> to vector<8x128xf32>
    %97 = vector.extract_strided_slice %14 {offsets = [0, 4, 0], sizes = [8, 1, 128], strides = [1, 1, 1]} : vector<8x8x128xbf16> to vector<8x1x128xbf16>
    %98 = vector.shape_cast %97 : vector<8x1x128xbf16> to vector<8x128xbf16>
    %99 = vector.shape_cast %98 : vector<8x128xbf16> to vector<8x1x128xbf16>
    %100 = vector.broadcast %99 : vector<8x1x128xbf16> to vector<8x8x128xbf16>
    %101 = arith.mulf %100, %15 : vector<8x8x128xbf16>
    %102 = vector.shape_cast %101 : vector<8x8x128xbf16> to vector<64x128xbf16>
    %cst_24 = arith.constant dense<0.000000e+00> : vector<64x128xf32>
    %103 = tpu.matmul %102, %16, %cst_24 {dimension_numbers = #tpu.dot_dimension_numbers<[1], [0], [0], [1], [0, 0, 1, 1], [], []>} : vector<64x128xbf16>, vector<128x128xbf16>, vector<64x128xf32> -> vector<64x128xf32>
    %104 = vector.shape_cast %103 : vector<64x128xf32> to vector<8x8x128xf32>
    %cst_25 = arith.constant dense<0xFF800000> : vector<8x128xf32>
    %105 = vector.multi_reduction <maximumf>, %104, %cst_25 [1] : vector<8x8x128xf32> to vector<8x128xf32>
    %106 = vector.shape_cast %105 : vector<8x128xf32> to vector<8x1x128xf32>
    %107 = vector.broadcast %106 : vector<8x1x128xf32> to vector<8x8x128xf32>
    %108 = arith.subf %104, %107 : vector<8x8x128xf32>
    %109 = math.exp %108 : vector<8x8x128xf32>
    %cst_26 = arith.constant dense<0.000000e+00> : vector<8x128xf32>
    %110 = vector.multi_reduction <add>, %109, %cst_26 [1] : vector<8x8x128xf32> to vector<8x128xf32>
    %111 = vector.shape_cast %110 : vector<8x128xf32> to vector<8x1x128xf32>
    %112 = tpu.reciprocal %111 : vector<8x1x128xf32> -> vector<8x1x128xf32>
    %113 = vector.broadcast %112 : vector<8x1x128xf32> to vector<8x8x128xf32>
    %114 = arith.mulf %109, %113 : vector<8x8x128xf32>
    %115 = arith.mulf %114, %13 : vector<8x8x128xf32>
    %cst_27 = arith.constant dense<0.000000e+00> : vector<8x128xf32>
    %116 = vector.multi_reduction <add>, %115, %cst_27 [1] : vector<8x8x128xf32> to vector<8x128xf32>
    %117 = vector.extract_strided_slice %14 {offsets = [0, 5, 0], sizes = [8, 1, 128], strides = [1, 1, 1]} : vector<8x8x128xbf16> to vector<8x1x128xbf16>
    %118 = vector.shape_cast %117 : vector<8x1x128xbf16> to vector<8x128xbf16>
    %119 = vector.shape_cast %118 : vector<8x128xbf16> to vector<8x1x128xbf16>
    %120 = vector.broadcast %119 : vector<8x1x128xbf16> to vector<8x8x128xbf16>
    %121 = arith.mulf %120, %15 : vector<8x8x128xbf16>
    %122 = vector.shape_cast %121 : vector<8x8x128xbf16> to vector<64x128xbf16>
    %cst_28 = arith.constant dense<0.000000e+00> : vector<64x128xf32>
    %123 = tpu.matmul %122, %16, %cst_28 {dimension_numbers = #tpu.dot_dimension_numbers<[1], [0], [0], [1], [0, 0, 1, 1], [], []>} : vector<64x128xbf16>, vector<128x128xbf16>, vector<64x128xf32> -> vector<64x128xf32>
    %124 = vector.shape_cast %123 : vector<64x128xf32> to vector<8x8x128xf32>
    %cst_29 = arith.constant dense<0xFF800000> : vector<8x128xf32>
    %125 = vector.multi_reduction <maximumf>, %124, %cst_29 [1] : vector<8x8x128xf32> to vector<8x128xf32>
    %126 = vector.shape_cast %125 : vector<8x128xf32> to vector<8x1x128xf32>
    %127 = vector.broadcast %126 : vector<8x1x128xf32> to vector<8x8x128xf32>
    %128 = arith.subf %124, %127 : vector<8x8x128xf32>
    %129 = math.exp %128 : vector<8x8x128xf32>
    %cst_30 = arith.constant dense<0.000000e+00> : vector<8x128xf32>
    %130 = vector.multi_reduction <add>, %129, %cst_30 [1] : vector<8x8x128xf32> to vector<8x128xf32>
    %131 = vector.shape_cast %130 : vector<8x128xf32> to vector<8x1x128xf32>
    %132 = tpu.reciprocal %131 : vector<8x1x128xf32> -> vector<8x1x128xf32>
    %133 = vector.broadcast %132 : vector<8x1x128xf32> to vector<8x8x128xf32>
    %134 = arith.mulf %129, %133 : vector<8x8x128xf32>
    %135 = arith.mulf %134, %13 : vector<8x8x128xf32>
    %cst_31 = arith.constant dense<0.000000e+00> : vector<8x128xf32>
    %136 = vector.multi_reduction <add>, %135, %cst_31 [1] : vector<8x8x128xf32> to vector<8x128xf32>
    %137 = vector.extract_strided_slice %14 {offsets = [0, 6, 0], sizes = [8, 1, 128], strides = [1, 1, 1]} : vector<8x8x128xbf16> to vector<8x1x128xbf16>
    %138 = vector.shape_cast %137 : vector<8x1x128xbf16> to vector<8x128xbf16>
    %139 = vector.shape_cast %138 : vector<8x128xbf16> to vector<8x1x128xbf16>
    %140 = vector.broadcast %139 : vector<8x1x128xbf16> to vector<8x8x128xbf16>
    %141 = arith.mulf %140, %15 : vector<8x8x128xbf16>
    %142 = vector.shape_cast %141 : vector<8x8x128xbf16> to vector<64x128xbf16>
    %cst_32 = arith.constant dense<0.000000e+00> : vector<64x128xf32>
    %143 = tpu.matmul %142, %16, %cst_32 {dimension_numbers = #tpu.dot_dimension_numbers<[1], [0], [0], [1], [0, 0, 1, 1], [], []>} : vector<64x128xbf16>, vector<128x128xbf16>, vector<64x128xf32> -> vector<64x128xf32>
    %144 = vector.shape_cast %143 : vector<64x128xf32> to vector<8x8x128xf32>
    %cst_33 = arith.constant dense<0xFF800000> : vector<8x128xf32>
    %145 = vector.multi_reduction <maximumf>, %144, %cst_33 [1] : vector<8x8x128xf32> to vector<8x128xf32>
    %146 = vector.shape_cast %145 : vector<8x128xf32> to vector<8x1x128xf32>
    %147 = vector.broadcast %146 : vector<8x1x128xf32> to vector<8x8x128xf32>
    %148 = arith.subf %144, %147 : vector<8x8x128xf32>
    %149 = math.exp %148 : vector<8x8x128xf32>
    %cst_34 = arith.constant dense<0.000000e+00> : vector<8x128xf32>
    %150 = vector.multi_reduction <add>, %149, %cst_34 [1] : vector<8x8x128xf32> to vector<8x128xf32>
    %151 = vector.shape_cast %150 : vector<8x128xf32> to vector<8x1x128xf32>
    %152 = tpu.reciprocal %151 : vector<8x1x128xf32> -> vector<8x1x128xf32>
    %153 = vector.broadcast %152 : vector<8x1x128xf32> to vector<8x8x128xf32>
    %154 = arith.mulf %149, %153 : vector<8x8x128xf32>
    %155 = arith.mulf %154, %13 : vector<8x8x128xf32>
    %cst_35 = arith.constant dense<0.000000e+00> : vector<8x128xf32>
    %156 = vector.multi_reduction <add>, %155, %cst_35 [1] : vector<8x8x128xf32> to vector<8x128xf32>
    %157 = vector.extract_strided_slice %14 {offsets = [0, 7, 0], sizes = [8, 1, 128], strides = [1, 1, 1]} : vector<8x8x128xbf16> to vector<8x1x128xbf16>
    %158 = vector.shape_cast %157 : vector<8x1x128xbf16> to vector<8x128xbf16>
    %159 = vector.shape_cast %158 : vector<8x128xbf16> to vector<8x1x128xbf16>
    %160 = vector.broadcast %159 : vector<8x1x128xbf16> to vector<8x8x128xbf16>
    %161 = arith.mulf %160, %15 : vector<8x8x128xbf16>
    %162 = vector.shape_cast %161 : vector<8x8x128xbf16> to vector<64x128xbf16>
    %cst_36 = arith.constant dense<0.000000e+00> : vector<64x128xf32>
    %163 = tpu.matmul %162, %16, %cst_36 {dimension_numbers = #tpu.dot_dimension_numbers<[1], [0], [0], [1], [0, 0, 1, 1], [], []>} : vector<64x128xbf16>, vector<128x128xbf16>, vector<64x128xf32> -> vector<64x128xf32>
    %164 = vector.shape_cast %163 : vector<64x128xf32> to vector<8x8x128xf32>
    %cst_37 = arith.constant dense<0xFF800000> : vector<8x128xf32>
    %165 = vector.multi_reduction <maximumf>, %164, %cst_37 [1] : vector<8x8x128xf32> to vector<8x128xf32>
    %166 = vector.shape_cast %165 : vector<8x128xf32> to vector<8x1x128xf32>
    %167 = vector.broadcast %166 : vector<8x1x128xf32> to vector<8x8x128xf32>
    %168 = arith.subf %164, %167 : vector<8x8x128xf32>
    %169 = math.exp %168 : vector<8x8x128xf32>
    %cst_38 = arith.constant dense<0.000000e+00> : vector<8x128xf32>
    %170 = vector.multi_reduction <add>, %169, %cst_38 [1] : vector<8x8x128xf32> to vector<8x128xf32>
    %171 = vector.shape_cast %170 : vector<8x128xf32> to vector<8x1x128xf32>
    %172 = tpu.reciprocal %171 : vector<8x1x128xf32> -> vector<8x1x128xf32>
    %173 = vector.broadcast %172 : vector<8x1x128xf32> to vector<8x8x128xf32>
    %174 = arith.mulf %169, %173 : vector<8x8x128xf32>
    %175 = arith.mulf %174, %13 : vector<8x8x128xf32>
    %cst_39 = arith.constant dense<0.000000e+00> : vector<8x128xf32>
    %176 = vector.multi_reduction <add>, %175, %cst_39 [1] : vector<8x8x128xf32> to vector<8x128xf32>
    %177 = vector.shape_cast %36 : vector<8x128xf32> to vector<8x1x128xf32>
    %178 = vector.shape_cast %56 : vector<8x128xf32> to vector<8x1x128xf32>
    %179 = vector.shape_cast %76 : vector<8x128xf32> to vector<8x1x128xf32>
    %180 = vector.shape_cast %96 : vector<8x128xf32> to vector<8x1x128xf32>
    %181 = vector.shape_cast %116 : vector<8x128xf32> to vector<8x1x128xf32>
    %182 = vector.shape_cast %136 : vector<8x128xf32> to vector<8x1x128xf32>
    %183 = vector.shape_cast %156 : vector<8x128xf32> to vector<8x1x128xf32>
    %184 = vector.shape_cast %176 : vector<8x128xf32> to vector<8x1x128xf32>
    %185 = tpu.concatenate %177, %178, %179, %180, %181, %182, %183, %184 in 1 : vector<8x1x128xf32>, vector<8x1x128xf32>, vector<8x1x128xf32>, vector<8x1x128xf32>, vector<8x1x128xf32>, vector<8x1x128xf32>, vector<8x1x128xf32>, vector<8x1x128xf32> -> vector<8x8x128xf32>
    %186 = vector.shape_cast %185 : vector<8x8x128xf32> to vector<64x128xf32>
    %187 = arith.truncf %186 : vector<64x128xf32> to vector<64x128xbf16>
    %c0_40 = arith.constant 0 : index
    %c0_41 = arith.constant 0 : index
    %188 = vector.load %arg4[%c0_40, %c0_41] : memref<128x128xbf16, #tpu.memory_space<vmem>>, vector<128x128xbf16>
    %cst_42 = arith.constant dense<0.000000e+00> : vector<64x128xf32>
    %189 = tpu.matmul %187, %188, %cst_42 {dimension_numbers = #tpu.dot_dimension_numbers<[1], [0], [0], [1], [0, 0, 1, 1], [], []>} : vector<64x128xbf16>, vector<128x128xbf16>, vector<64x128xf32> -> vector<64x128xf32>
    %c0_43 = arith.constant 0 : index
    %c0_44 = arith.constant 0 : index
    %190 = vector.load %arg5[%c0_43, %c0_44] : memref<1x128xf32, #tpu.memory_space<vmem>>, vector<1x128xf32>
    %191 = vector.broadcast %190 : vector<1x128xf32> to vector<64x128xf32>
    %192 = arith.addf %189, %191 : vector<64x128xf32>
    %c0_45 = arith.constant 0 : index
    %c0_46 = arith.constant 0 : index
    %193 = vector.load %arg15[%c0_45, %c0_46] : memref<128x128xf32, #tpu.memory_space<vmem>>, vector<128x128xf32>
    %194 = arith.addf %2, %192 : vector<64x128xf32>
    %c0_47 = arith.constant 0 : index
    %c0_48 = arith.constant 0 : index
    %195 = vector.load %arg6[%c0_47, %c0_48] : memref<1x128xf32, #tpu.memory_space<vmem>>, vector<1x128xf32>
    %c0_49 = arith.constant 0 : index
    %c0_50 = arith.constant 0 : index
    %196 = vector.load %arg7[%c0_49, %c0_50] : memref<1x128xf32, #tpu.memory_space<vmem>>, vector<1x128xf32>
    %cst_51 = arith.constant dense<0.000000e+00> : vector<64x128xf32>
    %197 = tpu.matmul %194, %193, %cst_51 {dimension_numbers = #tpu.dot_dimension_numbers<[1], [0], [0], [1], [0, 0, 1, 1], [], []>} : vector<64x128xf32>, vector<128x128xf32>, vector<64x128xf32> -> vector<64x128xf32>
    %198 = arith.subf %194, %197 : vector<64x128xf32>
    %199 = arith.mulf %198, %198 : vector<64x128xf32>
    %cst_52 = arith.constant dense<0.000000e+00> : vector<64x128xf32>
    %200 = tpu.matmul %199, %193, %cst_52 {dimension_numbers = #tpu.dot_dimension_numbers<[1], [0], [0], [1], [0, 0, 1, 1], [], []>} : vector<64x128xf32>, vector<128x128xf32>, vector<64x128xf32> -> vector<64x128xf32>
    %cst_53 = arith.constant 9.99999974E-6 : f32
    %201 = vector.broadcast %cst_53 : f32 to vector<64x128xf32>
    %202 = arith.addf %200, %201 : vector<64x128xf32>
    %203 = math.rsqrt %202 : vector<64x128xf32>
    %204 = arith.mulf %198, %203 : vector<64x128xf32>
    %205 = vector.broadcast %195 : vector<1x128xf32> to vector<64x128xf32>
    %206 = arith.mulf %204, %205 : vector<64x128xf32>
    %207 = vector.broadcast %196 : vector<1x128xf32> to vector<64x128xf32>
    %208 = arith.addf %206, %207 : vector<64x128xf32>
    %209 = arith.truncf %208 : vector<64x128xf32> to vector<64x128xbf16>
    %c0_54 = arith.constant 0 : index
    %c0_55 = arith.constant 0 : index
    %210 = vector.load %arg8[%c0_54, %c0_55] : memref<128x256xbf16, #tpu.memory_space<vmem>>, vector<128x256xbf16>
    %cst_56 = arith.constant dense<0.000000e+00> : vector<64x256xf32>
    %211 = tpu.matmul %209, %210, %cst_56 {dimension_numbers = #tpu.dot_dimension_numbers<[1], [0], [0], [1], [0, 0, 1, 1], [], []>} : vector<64x128xbf16>, vector<128x256xbf16>, vector<64x256xf32> -> vector<64x256xf32>
    %c0_57 = arith.constant 0 : index
    %c0_58 = arith.constant 0 : index
    %212 = vector.load %arg9[%c0_57, %c0_58] : memref<1x256xf32, #tpu.memory_space<vmem>>, vector<1x256xf32>
    %213 = vector.broadcast %212 : vector<1x256xf32> to vector<64x256xf32>
    %214 = arith.addf %211, %213 : vector<64x256xf32>
    %cst_59 = arith.constant 0.000000e+00 : f32
    %215 = vector.broadcast %cst_59 : f32 to vector<64x256xf32>
    %216 = arith.maximumf %214, %215 : vector<64x256xf32>
    %217 = arith.truncf %216 : vector<64x256xf32> to vector<64x256xbf16>
    %c0_60 = arith.constant 0 : index
    %c0_61 = arith.constant 0 : index
    %218 = vector.load %arg10[%c0_60, %c0_61] : memref<256x128xbf16, #tpu.memory_space<vmem>>, vector<256x128xbf16>
    %cst_62 = arith.constant dense<0.000000e+00> : vector<64x128xf32>
    %219 = tpu.matmul %217, %218, %cst_62 {dimension_numbers = #tpu.dot_dimension_numbers<[1], [0], [0], [1], [0, 0, 1, 1], [], []>} : vector<64x256xbf16>, vector<256x128xbf16>, vector<64x128xf32> -> vector<64x128xf32>
    %c0_63 = arith.constant 0 : index
    %c0_64 = arith.constant 0 : index
    %220 = vector.load %arg11[%c0_63, %c0_64] : memref<1x128xf32, #tpu.memory_space<vmem>>, vector<1x128xf32>
    %221 = vector.broadcast %220 : vector<1x128xf32> to vector<64x128xf32>
    %222 = arith.addf %219, %221 : vector<64x128xf32>
    %223 = arith.addf %208, %222 : vector<64x128xf32>
    %c0_65 = arith.constant 0 : index
    %c0_66 = arith.constant 0 : index
    %224 = vector.load %arg12[%c0_65, %c0_66] : memref<1x128xf32, #tpu.memory_space<vmem>>, vector<1x128xf32>
    %c0_67 = arith.constant 0 : index
    %c0_68 = arith.constant 0 : index
    %225 = vector.load %arg13[%c0_67, %c0_68] : memref<1x128xf32, #tpu.memory_space<vmem>>, vector<1x128xf32>
    %cst_69 = arith.constant dense<0.000000e+00> : vector<64x128xf32>
    %226 = tpu.matmul %223, %193, %cst_69 {dimension_numbers = #tpu.dot_dimension_numbers<[1], [0], [0], [1], [0, 0, 1, 1], [], []>} : vector<64x128xf32>, vector<128x128xf32>, vector<64x128xf32> -> vector<64x128xf32>
    %227 = arith.subf %223, %226 : vector<64x128xf32>
    %228 = arith.mulf %227, %227 : vector<64x128xf32>
    %cst_70 = arith.constant dense<0.000000e+00> : vector<64x128xf32>
    %229 = tpu.matmul %228, %193, %cst_70 {dimension_numbers = #tpu.dot_dimension_numbers<[1], [0], [0], [1], [0, 0, 1, 1], [], []>} : vector<64x128xf32>, vector<128x128xf32>, vector<64x128xf32> -> vector<64x128xf32>
    %cst_71 = arith.constant 9.99999974E-6 : f32
    %230 = vector.broadcast %cst_71 : f32 to vector<64x128xf32>
    %231 = arith.addf %229, %230 : vector<64x128xf32>
    %232 = math.rsqrt %231 : vector<64x128xf32>
    %233 = arith.mulf %227, %232 : vector<64x128xf32>
    %234 = vector.broadcast %224 : vector<1x128xf32> to vector<64x128xf32>
    %235 = arith.mulf %233, %234 : vector<64x128xf32>
    %236 = vector.broadcast %225 : vector<1x128xf32> to vector<64x128xf32>
    %237 = arith.addf %235, %236 : vector<64x128xf32>
    %238 = vector.shape_cast %237 : vector<64x128xf32> to vector<8x8x128xf32>
    %cst_72 = arith.constant dense<0.000000e+00> : vector<8x128xf32>
    %239 = vector.multi_reduction <add>, %238, %cst_72 [1] : vector<8x8x128xf32> to vector<8x128xf32>
    %cst_73 = arith.constant 8.000000e+00 : f32
    %240 = vector.broadcast %cst_73 : f32 to vector<8x128xf32>
    %241 = arith.divf %239, %240 : vector<8x128xf32>
    %c0_74 = arith.constant 0 : index
    %c0_75 = arith.constant 0 : index
    %242 = vector.load %arg16[%c0_74, %c0_75] : memref<8x128xf32, #tpu.memory_space<vmem>>, vector<8x128xf32>
    tpu.vector_store %arg16[%c0_74, %c0_75], %241 {strides = array<i32>} : memref<8x128xf32, #tpu.memory_space<vmem>>, vector<8x128xf32>,
    return
  }
  func.func @transform_0(%arg0: i32) -> (i32, i32, i32) {
    %c0_i32 = arith.constant 0 : i32
    %c0_i32_0 = arith.constant 0 : i32
    %c0_i32_1 = arith.constant 0 : i32
    return %arg0, %c0_i32, %c0_i32_0 : i32, i32, i32
  }
  func.func @transform_1(%arg0: i32) -> (i32, i32) {
    %c0_i32 = arith.constant 0 : i32
    %c0_i32_0 = arith.constant 0 : i32
    %c0_i32_1 = arith.constant 0 : i32
    return %c0_i32, %c0_i32_0 : i32, i32
  }
  func.func @transform_2(%arg0: i32) -> (i32, i32) {
    %c0_i32 = arith.constant 0 : i32
    %c0_i32_0 = arith.constant 0 : i32
    %c0_i32_1 = arith.constant 0 : i32
    return %c0_i32, %c0_i32_0 : i32, i32
  }
  func.func @transform_3(%arg0: i32) -> (i32, i32) {
    %c0_i32 = arith.constant 0 : i32
    %c0_i32_0 = arith.constant 0 : i32
    %c0_i32_1 = arith.constant 0 : i32
    return %c0_i32, %c0_i32_0 : i32, i32
  }
  func.func @transform_4(%arg0: i32) -> (i32, i32) {
    %c0_i32 = arith.constant 0 : i32
    %c0_i32_0 = arith.constant 0 : i32
    %c0_i32_1 = arith.constant 0 : i32
    return %c0_i32, %c0_i32_0 : i32, i32
  }
  func.func @transform_5(%arg0: i32) -> (i32, i32) {
    %c0_i32 = arith.constant 0 : i32
    %c0_i32_0 = arith.constant 0 : i32
    %c0_i32_1 = arith.constant 0 : i32
    return %c0_i32, %c0_i32_0 : i32, i32
  }
  func.func @transform_6(%arg0: i32) -> (i32, i32) {
    %c0_i32 = arith.constant 0 : i32
    %c0_i32_0 = arith.constant 0 : i32
    %c0_i32_1 = arith.constant 0 : i32
    return %c0_i32, %c0_i32_0 : i32, i32
  }
  func.func @transform_7(%arg0: i32) -> (i32, i32) {
    %c0_i32 = arith.constant 0 : i32
    %c0_i32_0 = arith.constant 0 : i32
    %c0_i32_1 = arith.constant 0 : i32
    return %c0_i32, %c0_i32_0 : i32, i32
  }
  func.func @transform_8(%arg0: i32) -> (i32, i32) {
    %c0_i32 = arith.constant 0 : i32
    %c0_i32_0 = arith.constant 0 : i32
    %c0_i32_1 = arith.constant 0 : i32
    return %c0_i32, %c0_i32_0 : i32, i32
  }
  func.func @transform_9(%arg0: i32) -> (i32, i32) {
    %c0_i32 = arith.constant 0 : i32
    %c0_i32_0 = arith.constant 0 : i32
    %c0_i32_1 = arith.constant 0 : i32
    return %c0_i32, %c0_i32_0 : i32, i32
  }
  func.func @transform_10(%arg0: i32) -> (i32, i32) {
    %c0_i32 = arith.constant 0 : i32
    %c0_i32_0 = arith.constant 0 : i32
    %c0_i32_1 = arith.constant 0 : i32
    return %c0_i32, %c0_i32_0 : i32, i32
  }
  func.func @transform_11(%arg0: i32) -> (i32, i32) {
    %c0_i32 = arith.constant 0 : i32
    %c0_i32_0 = arith.constant 0 : i32
    %c0_i32_1 = arith.constant 0 : i32
    return %c0_i32, %c0_i32_0 : i32, i32
  }
  func.func @transform_12(%arg0: i32) -> (i32, i32) {
    %c0_i32 = arith.constant 0 : i32
    %c0_i32_0 = arith.constant 0 : i32
    %c0_i32_1 = arith.constant 0 : i32
    return %c0_i32, %c0_i32_0 : i32, i32
  }
  func.func @transform_13(%arg0: i32) -> (i32, i32) {
    %c0_i32 = arith.constant 0 : i32
    %c0_i32_0 = arith.constant 0 : i32
    %c0_i32_1 = arith.constant 0 : i32
    return %c0_i32, %c0_i32_0 : i32, i32
  }
  func.func @transform_14(%arg0: i32) -> (i32, i32) {
    %c0_i32 = arith.constant 0 : i32
    %c0_i32_0 = arith.constant 0 : i32
    %c0_i32_1 = arith.constant 0 : i32
    return %c0_i32, %c0_i32_0 : i32, i32
  }
  func.func @transform_15(%arg0: i32) -> (i32, i32) {
    %c0_i32 = arith.constant 0 : i32
    %c0_i32_0 = arith.constant 0 : i32
    return %arg0, %c0_i32 : i32, i32
  }
}

</mosaic_0001>

<bundles_post_ra>
// kernel: tile.51
= control target key start
LH: loop header
LB: loop body
LE: loop exit
PB: predicated region body
PF: predicated region fallthrough
CT: control target
= control target key end

     0   :  { %s22_s0 = inlined_call_operand.vmem [shape: f32[32], index: 0, kind: input, shape index: {}]   ;;  %s23_s1 = inlined_call_operand.vmem [shape: f32[4,32], index: 1, kind: output, shape index: {}]  }
   0x1   :  { %v4_v0 = vld [vmem:[%s22_s0] ss:$0 sm:$0xff] }
   0x2   :  { %5 = vst [vmem:[%s23_s1] sm:$0xf] %v4_v0 }

// kernel: tile.52
= control target key start
LH: loop header
LB: loop body
LE: loop exit
PB: predicated region body
PF: predicated region fallthrough
CT: control target
= control target key end

     0   :  { %vm7_vm0 = vcmask 261120   ;;  %s37_s8 = smov 32   ;;  %s38_s9 = smov 64   ;;  %vm13_vm1 = vcmask 1048320   ;;  %vm19_vm2 = vcmask 785920   ;;  %vm25_vm3 = vcmask 523520   ;;  %s55_s0 = inlined_call_operand.vmem [shape: f32[4,32], index: 0, kind: input, shape index: {}]   ;;  %s56_s1 = inlined_call_operand.vmem [shape: f32[1,128], index: 1, kind: output, shape index: {}]  }
   0x1   :  { %v4_v0 = vld [vmem:[%s55_s0] sm:$0xf]  ;;  %s36_s0 = smov 96  }
   0x2   :  { %5 = vst [vmem:[#allocation1] sm:$0xf] %v4_v0 }
   0x9   :  { %v10_v1 = vld [vmem:[#allocation1 + $0x3] sm:$0x1]   ;;  %v22_v2 = vld [vmem:[#allocation1 + $0x1] sm:$0x1]   ;;  %v6_v3 = vld [vmem:[#allocation1] sm:$0x1]  }
   0xa   :  { %11 = vrot.lane.b32.xlu0 %v10_v1, %s36_s0  ;;  %23 = vrot.lane.b32.xlu1 %v22_v2, %s37_s8  ;;  %v16_v4 = vld [vmem:[#allocation1 + $0x2] sm:$0x1]   ;;  %8 = vst.msk [vmem:[#allocation0] sm:$0x1] %vm7_vm0, %v6_v3  }
   0xe   :  { %17 = vrot.lane.b32.xlu0 %v16_v4, %s38_s9 }
  0x7c   :  { %v12_v5 = vpop.permute.xlu0 %11   ;;  %v24_v6 = vpop.permute.xlu1 %23  }
  0x7d   :  { %14 = vst.msk [vmem:[#allocation0] sm:$0x1] %vm13_vm1, %v12_v5  }
  0x80   :  { %v18_v7 = vpop.permute.xlu0 %17  }
  0x81   :  { %20 = vst.msk [vmem:[#allocation0] sm:$0x1] %vm19_vm2, %v18_v7  }
  0x82   :  { %26 = vst.msk [vmem:[#allocation0] sm:$0x1] %vm25_vm3, %v24_v6  }
  0x89   :  { %v30_v8 = vld [vmem:[#allocation0] sm:$0x1] }
  0x8a   :  { %32 = vst [vmem:[%s56_s1] sm:$0x1] %v30_v8 }

// kernel: tile.72
= control target key start
LH: loop header
LB: loop body
LE: loop exit
PB: predicated region body
PF: predicated region fallthrough
CT: control target
= control target key end

     0   :  { %s22_s0 = inlined_call_operand.vmem [shape: f32[64], index: 0, kind: input, shape index: {}]   ;;  %s23_s1 = inlined_call_operand.vmem [shape: f32[4,64], index: 1, kind: output, shape index: {}]  }
   0x1   :  { %v4_v0 = vld [vmem:[%s22_s0] ss:$0 sm:$0xff] }
   0x2   :  { %5 = vst [vmem:[%s23_s1] sm:$0xf] %v4_v0 }

// kernel: tile.73
= control target key start
LH: loop header
LB: loop body
LE: loop exit
PB: predicated region body
PF: predicated region fallthrough
CT: control target
= control target key end

     0   :  { %s6_s8 = smov 3  ;;  %vm8_vm0 = vcmask 523264   ;;  %s30_s9 = smov 64   ;;  %vm15_vm1 = vcmask 1048064   ;;  %s50_s0 = inlined_call_operand.vmem [shape: f32[4,64], index: 0, kind: input, shape index: {}]   ;;  %s51_s1 = inlined_call_operand.vmem [shape: f32[1,256], index: 1, kind: output, shape index: {}]  }
   0x1   :  { %v4_v0 = vld [vmem:[%s50_s0] sm:$0xf]  ;;  %s11_s0 = smov 3 }
   0x2   :  { %5 = vst [vmem:[#allocation1] sm:$0xf] %v4_v0 }
   0x9   :  { %v12_v1 = vld [vmem:[#allocation1 + $0x1] ss:$2 sm:%s11_s0]   ;;  %v7_v2 = vld [vmem:[#allocation1] ss:$2 sm:%s6_s8]  }
   0xa   :  { %13 = vrot.lane.b32.xlu0 %v12_v1, %s30_s9  ;;  %9 = vst.msk [vmem:[#allocation0] ss:$8 sm:$0x3] %vm8_vm0, %v7_v2  }
  0x7c   :  { %v14_v3 = vpop.permute.xlu0 %13  }
  0x7d   :  { %16 = vst.msk [vmem:[#allocation0] ss:$8 sm:$0x3] %vm15_vm1, %v14_v3  }
  0x84   :  { %v20_v4 = vld [vmem:[#allocation0] sm:$0x1]  ;;  %v24_v5 = vld [vmem:[#allocation0 + $0x8] sm:$0x1] }
  0x85   :  { %22 = vst [vmem:[%s51_s1] sm:$0x1] %v20_v4  ;;  %28 = vst [vmem:[%s51_s1 + $0x1] sm:$0x1] %v24_v5 }

// kernel: smplx_temporal_reducer.1
= control target key start
LH: loop header
LB: loop body
LE: loop exit
PB: predicated region body
PF: predicated region fallthrough
CT: control target
= control target key end

     0   :  { %v8155_v1 = vmov 0   ;;  %v101_v37 = vlaneseq  ;;  %vm3102_vm0 = vcmask 1040384   ;;  %vm3111_vm1 = vcmask 1041408   ;;  %s8139_s1 = inlined_call_operand.vmem [shape: bf16[128,384], index: 1, kind: input, shape index: {}]   ;;  %s8140_s0 = inlined_call_operand.vmem [shape: bf16[8,8,128], index: 0, kind: input, shape index: {}]   ;;  %s8141_s13 = inlined_call_operand.vmem [shape: bf16[128,128], index: 13, kind: input, shape index: {}]   ;;  %s8142_s2 = inlined_call_operand.vmem [shape: f32[1,384], index: 2, kind: input, shape index: {}]   ;;  %s8143_s3 = inlined_call_operand.vmem [shape: bf16[128,128], index: 3, kind: input, shape index: {}]   ;;  %s8144_s14 = inlined_call_operand.vmem [shape: f32[128,128], index: 14, kind: input, shape index: {}]   ;;  %s8145_s4 = inlined_call_operand.vmem [shape: f32[1,128], index: 4, kind: input, shape index: {}]   ;;  %s8146_s7 = inlined_call_operand.vmem [shape: bf16[128,256], index: 7, kind: input, shape index: {}]   ;;  %s8147_s9 = inlined_call_operand.vmem [shape: bf16[256,128], index: 9, kind: input, shape index: {}]   ;;  %s8148_s5 = inlined_call_operand.vmem [shape: f32[1,128], index: 5, kind: input, shape index: {}]   ;;  %s8149_s6 = inlined_call_operand.vmem [shape: f32[1,128], index: 6, kind: input, shape index: {}]   ;;  %s8150_s8 = inlined_call_operand.vmem [shape: f32[1,256], index: 8, kind: input, shape index: {}]   ;;  %s8151_s10 = inlined_call_operand.vmem [shape: f32[1,128], index: 10, kind: input, shape index: {}]   ;;  %s8152_s11 = inlined_call_operand.vmem [shape: f32[1,128], index: 11, kind: input, shape index: {}]   ;;  %s8153_s12 = inlined_call_operand.vmem [shape: f32[1,128], index: 12, kind: input, shape index: {}]   ;;  %s8154_s15 = inlined_call_operand.vmem [shape: f32[8,128], index: 15, kind: output, shape index: {}]  }
   0x1   :  { %v5306_v0 = vld [vmem:[%s8139_s1 + $0x4] ss:$12 sps:$4 sm:$0xff]   ;;  %300 = vmatprep.mubr.bf16.mxu0 %v8155_v1  ;;  %v5308_v2 = vld [vmem:[%s8139_s1] ss:$12 sps:$4 sm:$0xff]   ;;  %v5309_v3 = vld [vmem:[%s8139_s1 + $0x1c] ss:$12 sps:$4 sm:$0xff]  }
   0x2   :  { %268 = vmatprep.subr.bf16.mxu0 %v5306_v0  ;;  %v5311_v4 = vld [vmem:[%s8139_s1 + $0x18] ss:$12 sps:$4 sm:$0xff]   ;;  %v5312_v5 = vld [vmem:[%s8139_s1 + $0x34] ss:$12 sps:$4 sm:$0xff]   ;;  %v5314_v6 = vld [vmem:[%s8139_s1 + $0x30] ss:$12 sps:$4 sm:$0xff]  }
   0x3   :  { %269 = vmatpush1.bf16.msra.mxu0 %v5308_v2  ;;  %v5315_v7 = vld [vmem:[%s8139_s1 + $0x4c] ss:$12 sps:$4 sm:$0xff]   ;;  %v51_v8 = vld [vmem:[%s8140_s0] sm:$0xff]   ;;  %v5317_v9 = vld [vmem:[%s8139_s1 + $0x48] ss:$12 sps:$4 sm:$0xff]   ;;  %v102_v38 = vshrl.u32 %v101_v37, 7 }
   0x4   :  { %270 = vmatprep.subr.bf16.mxu0 %v5309_v3  ;;  %v5318_v10 = vld [vmem:[%s8139_s1 + $0x64] ss:$12 sps:$4 sm:$0xff]   ;;  %v5334_v11 = vld [vmem:[%s8139_s1 + $0x8] ss:$12 sps:$4 sm:$0xff]   ;;  %v5335_v12 = vld [vmem:[%s8139_s1 + $0x20] ss:$12 sps:$4 sm:$0xff]   ;;  %4761 = vmatprep.mubr.bf16.mxu1 %v51_v8 }
   0x5   :  { %v5320_v13 = vld [vmem:[%s8139_s1 + $0x60] ss:$12 sps:$4 sm:$0xff]   ;;  %4745 = vmatprep.subr.bf16.mxu1 %v5334_v11  ;;  %v5321_v14 = vld [vmem:[%s8139_s1 + $0x7c] ss:$12 sps:$4 sm:$0xff]   ;;  %v5336_v15 = vld [vmem:[%s8139_s1 + $0x38] ss:$12 sps:$4 sm:$0xff]  }
   0x6   :  { %4746 = vmatpush3.bf16.msra.mxu1 %v5334_v11  ;;  %v5323_v16 = vld [vmem:[%s8139_s1 + $0x78] ss:$12 sps:$4 sm:$0xff]   ;;  %v5324_v17 = vld [vmem:[%s8139_s1 + $0x94] ss:$12 sps:$4 sm:$0xff]   ;;  %v5337_v18 = vld [vmem:[%s8139_s1 + $0x50] ss:$12 sps:$4 sm:$0xff]  }
   0x7   :  { %271 = vmatpush1.bf16.msra.mxu0 %v5311_v4  ;;  %4747 = vmatprep.subr.bf16.mxu1 %v5335_v12  ;;  %v5326_v19 = vld [vmem:[%s8139_s1 + $0x90] ss:$12 sps:$4 sm:$0xff]   ;;  %v5327_v20 = vld [vmem:[%s8139_s1 + $0xac] ss:$12 sps:$4 sm:$0xff]   ;;  %v5338_v21 = vld [vmem:[%s8139_s1 + $0x68] ss:$12 sps:$4 sm:$0xff]  }
   0x8   :  { %272 = vmatprep.subr.bf16.mxu0 %v5312_v5  ;;  %v5329_v22 = vld [vmem:[%s8139_s1 + $0xa8] ss:$12 sps:$4 sm:$0xff]   ;;  %v5339_v23 = vld [vmem:[%s8139_s1 + $0x80] ss:$12 sps:$4 sm:$0xff]   ;;  %v5340_v25 = vld [vmem:[%s8139_s1 + $0x98] ss:$12 sps:$4 sm:$0xff]  }
   0x9   :  { %v5848_v24 = vld [vmem:[%s8141_s13] sm:$0xff]   ;;  %v5857_v26 = vld [vmem:[%s8141_s13 + $0x8] sm:$0xff]   ;;  %v5341_v28 = vld [vmem:[%s8139_s1 + $0xb0] ss:$12 sps:$4 sm:$0xff]   ;;  %v5937_v39 = vsub.s32 0, %v102_v38  ;;  %v5942_v41 = vsub.s32 1, %v102_v38 }
   0xa   :  { %4748 = vmatpush3.bf16.msra.mxu1 %v5335_v12  ;;  %v53_v27 = vld [vmem:[%s8140_s0 + $0x8] sm:$0xff]   ;;  %v5871_v29 = vld [vmem:[%s8141_s13 + $0x10] sm:$0xff]   ;;  %v57_v31 = vld [vmem:[%s8140_s0 + $0x18] sm:$0xff]   ;;  %v5954_v53 = vsub.s32 2, %v102_v38  ;;  %v5956_v54 = vsub.s32 3, %v102_v38  ;;  %vm3120_vm2 = vcmask 1042432  }
   0xb   :  { %273 = vmatpush1.bf16.msra.mxu0 %v5314_v6  ;;  %4749 = vmatprep.subr.bf16.mxu1 %v5336_v15  ;;  %v55_v30 = vld [vmem:[%s8140_s0 + $0x10] sm:$0xff]   ;;  %v5893_v32 = vld [vmem:[%s8141_s13 + $0x18] sm:$0xff]   ;;  %v5902_v33 = vld [vmem:[%s8141_s13 + $0x20] sm:$0xff]   ;;  %8230 = vst [vmem:[#allocation6_spill] sm:$0xff] %v5937_v39  ;;  %vm3129_vm3 = vcmask 1043456   ;;  %vm3138_vm4 = vcmask 1044480  }
   0xc   :  { %274 = vmatprep.subr.bf16.mxu0 %v5315_v7  ;;  %8226 = vst [vmem:[#allocation2_spill] sm:$0xff] %v5893_v32  ;;  %8227 = vst [vmem:[#allocation3_spill] sm:$0xff] %v5902_v33  ;;  %v5911_v34 = vld [vmem:[%s8141_s13 + $0x28] sm:$0xff]   ;;  %v5920_v35 = vld [vmem:[%s8141_s13 + $0x30] sm:$0xff]   ;;  %vm3147_vm5 = vcmask 1045504   ;;  %vm3156_vm6 = vcmask 1046528  }
   0xd   :  { %8228 = vst [vmem:[#allocation4_spill] sm:$0xff] %v5911_v34  ;;  %8229 = vst [vmem:[#allocation5_spill] sm:$0xff] %v5920_v35  ;;  %v5929_v36 = vld [vmem:[%s8141_s13 + $0x38] sm:$0xff]   ;;  %v99_v40 = vld [vmem:[%s8142_s2] sm:$0x7]  ;;  %vm4355_vm7 = vcmask 1041409  }
   0xe   :  { %4750 = vmatpush3.bf16.msra.mxu1 %v5336_v15  ;;  %8231 = vst [vmem:[#allocation7_spill] sm:$0xff] %v5942_v41  ;;  %v5945_v42 = vrot.slane %v99_v40, %v5937_v39  ;;  %v5948_v43 = vrot.slane %v99_v40, %v5942_v41  ;;  %v5963_v59 = vrot.slane %v99_v40, %v5954_v53  ;;  %vm4357_vm8 = vcmask 1042434  }
   0xf   :  { %275 = vmatpush1.bf16.msra.mxu0 %v5317_v9  ;;  %4751 = vmatprep.subr.bf16.mxu1 %v5337_v18  ;;  %vm4359_vm9 = vcmask 1043459   ;;  %vm4361_vm10 = vcmask 1044484   ;;  %vm4363_vm11 = vcmask 1045509   ;;  %vm4365_vm12 = vcmask 1046534  }
  0x10   :  { %276 = vmatprep.subr.bf16.mxu0 %v5318_v10  ;;  %vm4367_vm13 = vcmask 1047559  }
  0x12   :  { %4752 = vmatpush3.bf16.msra.mxu1 %v5337_v18 }
  0x13   :  { %277 = vmatpush1.bf16.msra.mxu0 %v5320_v13  ;;  %4753 = vmatprep.subr.bf16.mxu1 %v5338_v21 }
  0x14   :  { %278 = vmatprep.subr.bf16.mxu0 %v5321_v14 }
  0x16   :  { %4754 = vmatpush3.bf16.msra.mxu1 %v5338_v21 }
  0x17   :  { %279 = vmatpush1.bf16.msra.mxu0 %v5323_v16  ;;  %4755 = vmatprep.subr.bf16.mxu1 %v5339_v23 }
  0x18   :  { %280 = vmatprep.subr.bf16.mxu0 %v5324_v17 }
  0x1a   :  { %4756 = vmatpush3.bf16.msra.mxu1 %v5339_v23 }
  0x1b   :  { %281 = vmatpush1.bf16.msra.mxu0 %v5326_v19  ;;  %4757 = vmatprep.subr.bf16.mxu1 %v5340_v25 }
  0x1c   :  { %282 = vmatprep.subr.bf16.mxu0 %v5327_v20 }
  0x1e   :  { %4758 = vmatpush3.bf16.msra.mxu1 %v5340_v25 }
  0x1f   :  { %283 = vmatpush1.bf16.msra.mxu0 %v5329_v22  ;;  %4759 = vmatprep.subr.bf16.mxu1 %v5341_v28 }
  0x20   :  { %4769 = vmatprep.subr.bf16.mxu0 %v5848_v24 }
  0x22   :  { %301 = vmatmul.mubr.bf16.vlgmr.msra.gmra.mrb[0].mxu0 %v51_v8  ;;  %4760 = vmatpush3.bf16.msra.mxu1 %v5341_v28 }
  0x23   :  { %310 = vmatprep.mubr.bf16.mxu0 %v8155_v1  ;;  %4770 = vmatpush3.bf16.msra.mxu0 %v5848_v24 }
  0x24   :  { %4771 = vmatprep.subr.bf16.mxu0 %v5857_v26  ;;  %4793 = vmatprep.subr.bf16.mxu1 %v5848_v24 }
  0x25   :  { %4762 = vmatmul.mubr.bf16.vlgmr.msra.gmra.mrb[0].mxu1 %v53_v27 }
  0x26   :  { %4794 = vmatpush3.bf16.msra.mxu1 %v5848_v24  ;;  %4765 = vmatprep.mubr.bf16.mxu1 %v55_v30 }
  0x27   :  { %4772 = vmatpush3.bf16.msra.mxu0 %v5857_v26  ;;  %4795 = vmatprep.subr.bf16.mxu1 %v5857_v26 }
  0x28   :  { %4773 = vmatprep.subr.bf16.mxu0 %v5871_v29 }
  0x2a   :  { %311 = vmatmul.mubr.bf16.gmra.mrb[4].mxu0 %v53_v27  ;;  %4796 = vmatpush3.bf16.msra.mxu1 %v5857_v26 }
  0x2b   :  { %320 = vmatprep.mubr.bf16.mxu0 %v8155_v1  ;;  %4774 = vmatpush3.bf16.msra.mxu0 %v5871_v29 }
  0x2c   :  { %4797 = vmatprep.subr.bf16.mxu1 %v5871_v29  ;;  %4775 = vmatprep.subr.bf16.mxu0 %v5893_v32 }
  0x2d   :  { %4766 = vmatmul.mubr.bf16.gmra.mrb[4].mxu1 %v57_v31 }
  0x2e   :  { %4798 = vmatpush3.bf16.msra.mxu1 %v5871_v29 }
  0x2f   :  { %4799 = vmatprep.subr.bf16.mxu1 %v5893_v32  ;;  %4776 = vmatpush3.bf16.msra.mxu0 %v5893_v32 }
  0x30   :  { %4777 = vmatprep.subr.bf16.mxu0 %v5902_v33 }
  0x32   :  { %321 = vmatmul.mubr.bf16.gmra.mrb[8].mxu0 %v55_v30  ;;  %4800 = vmatpush3.bf16.msra.mxu1 %v5893_v32 }
  0x33   :  { %330 = vmatprep.mubr.bf16.mxu0 %v8155_v1  ;;  %4801 = vmatprep.subr.bf16.mxu1 %v5902_v33 }
  0x34   :  { %4778 = vmatpush3.bf16.msra.mxu0 %v5902_v33 }
  0x35   :  { %4779 = vmatprep.subr.bf16.mxu0 %v5911_v34 }
  0x36   :  { %4802 = vmatpush3.bf16.msra.mxu1 %v5902_v33 }
  0x37   :  { %4803 = vmatprep.subr.bf16.mxu1 %v5911_v34 }
  0x38   :  { %4780 = vmatpush3.bf16.msra.mxu0 %v5911_v34 }
  0x39   :  { %4781 = vmatprep.subr.bf16.mxu0 %v5920_v35 }
  0x3a   :  { %331 = vmatmul.mubr.bf16.gmra.mrb[12].mxu0 %v57_v31  ;;  %4804 = vmatpush3.bf16.msra.mxu1 %v5911_v34 }
  0x3b   :  { %4805 = vmatprep.subr.bf16.mxu1 %v5920_v35 }
  0x3c   :  { %4782 = vmatpush3.bf16.msra.mxu0 %v5920_v35 }
  0x3d   :  { %4783 = vmatprep.subr.bf16.mxu0 %v5929_v36 }
  0x3e   :  { %4806 = vmatpush3.bf16.msra.mxu1 %v5920_v35 }
  0x3f   :  { %4807 = vmatprep.subr.bf16.mxu1 %v5929_v36 }
  0x40   :  { %4784 = vmatpush3.bf16.msra.mxu0 %v5929_v36 }
  0x41   :  { %4817 = vmatprep.subr.bf16.mxu0 %v5848_v24 }
  0x42   :  { %4808 = vmatpush3.bf16.msra.mxu1 %v5929_v36 }
  0x43   :  { %4841 = vmatprep.subr.bf16.mxu1 %v5848_v24 }
  0xf5   :  { %v302_v44 = vpop.f32.mrb[0].mxu0 }
  0xf6   :  { %v303_v45 = vadd.f32 %v302_v44, %v5945_v42  ;;  %v304_v46 = vpop.f32.mrb[1].mxu0 }
  0xf7   :  { %v305_v47 = vadd.f32 %v304_v46, %v5948_v43  ;;  %v306_v48 = vpop.f32.mrb[2].mxu0 }
  0xf8   :  { %v406_v49 = vpack.c.bf16 %v303_v45, %v303_v45  ;;  %v307_v50 = vadd.f32 %v306_v48, %v5945_v42  ;;  %v308_v51 = vpop.f32.mrb[3].mxu0  ;;  %v6004_v27 = vpop.f32.mrb[0].mxu1 }
  0xf9   :  { %v309_v52 = vadd.f32 %v308_v51, %v5948_v43  ;;  %v5960_v58 = vpack.c.bf16 %v305_v47, %v305_v47  ;;  %v6008_v38 = vpop.f32.mrb[1].mxu1 }
  0xfa   :  { %v5958_v55 = vpack.i.b16 %v406_v49, %v406_v49  ;;  %v831_v56 = vshrl.u32 %v406_v49, 16  ;;  %v407_v57 = vpack.c.bf16 %v307_v50, %v307_v50  ;;  %v6017_v47 = vpop.f32.mrb[2].mxu1 }
  0xfb   :  { %v5971_v0 = vpack.c.bf16 %v309_v52, %v309_v52  ;;  %v6027_v52 = vpop.f32.mrb[3].mxu1 }
  0xfc   :  { %v5965_v60 = vpack.i.b16 %v831_v56, %v831_v56  ;;  %v5967_v61 = vpack.i.b16 %v407_v57, %v407_v57  ;;  %v838_v62 = vshrl.u32 %v407_v57, 16  ;;  %v444_v63 = vrot.slane %v5958_v55, %v5937_v39 }
  0xfd   :  { %v312_v2 = vpop.f32.mrb[4].mxu0  ;;  %v1179_v3 = vrot.slane %v5958_v55, %v5942_v41 }
  0xfe   :  { %v5979_v6 = vpack.i.b16 %v838_v62, %v838_v62  ;;  %v313_v7 = vadd.f32 %v312_v2, %v5945_v42  ;;  %v314_v8 = vpop.f32.mrb[5].mxu0  ;;  %v451_v9 = vrot.slane %v5967_v61, %v5937_v39  ;;  %v494_v10 = vmul.bf16 %v444_v63, %v5960_v58 }
  0xff   :  { %v315_v11 = vadd.f32 %v314_v8, %v5948_v43  ;;  %v316_v12 = vpop.f32.mrb[6].mxu0  ;;  %v837_v13 = vrot.slane %v5965_v60, %v5937_v39  ;;  %v1183_v14 = vrot.slane %v5967_v61, %v5942_v41  ;;  %v5991_v15 = vmul.bf16 %v1179_v3, %v5960_v58 }
 0x100   :  { %v408_v16 = vpack.c.bf16 %v313_v7, %v313_v7  ;;  %v317_v17 = vadd.f32 %v316_v12, %v5945_v42  ;;  %v318_v18 = vpop.f32.mrb[7].mxu0  ;;  %v495_v19 = vmul.bf16 %v451_v9, %v5971_v0  ;;  %v844_v20 = vrot.slane %v5979_v6, %v5937_v39 }
 0x101   :  { %v5997_v21 = vpack.c.bf16 %v315_v11, %v315_v11  ;;  %v319_v22 = vadd.f32 %v318_v18, %v5948_v43  ;;  %v887_v23 = vmul.bf16 %v837_v13, %v5960_v58  ;;  %v6002_v25 = vmul.bf16 %v1183_v14, %v5971_v0 }
 0x102   :  { %v6006_v28 = vpack.i.b16 %v408_v16, %v408_v16  ;;  %v845_v30 = vshrl.u32 %v408_v16, 16  ;;  %v409_v31 = vpack.c.bf16 %v317_v17, %v317_v17  ;;  %v4403_v37 = vcombine.low %v494_v10, %v495_v19 }
 0x103   :  { %v6010_v40 = vpack.c.bf16 %v319_v22, %v319_v22  ;;  %v888_v44 = vmul.bf16 %v844_v20, %v5971_v0  ;;  %v1500_v46 = vrot.slane %v5965_v60, %v5942_v41 }
 0x104   :  { %v458_v48 = vrot.slane %v6006_v28, %v5937_v39  ;;  %v6021_v49 = vpack.i.b16 %v845_v30, %v845_v30  ;;  %v1187_v50 = vrot.slane %v6006_v28, %v5942_v41  ;;  %4785 = vmatprep.mubr.bf16.mxu0 %v4403_v37  ;;  %v6031_v57 = vpack.i.b16 %v409_v31, %v409_v31 }
 0x105   :  { %v852_v62 = vshrl.u32 %v409_v31, 16  ;;  %v322_v63 = vpop.f32.mrb[8].mxu0  ;;  %v4415_v2 = vcombine.low %v887_v23, %v888_v44  ;;  %v6062_v44 = vpop.f32.mrb[4].mxu1 }
 0x106   :  { %v851_v3 = vrot.slane %v6021_v49, %v5937_v39  ;;  %v1508_v7 = vrot.slane %v6021_v49, %v5942_v41  ;;  %v324_v10 = vpop.f32.mrb[9].mxu0  ;;  %v465_v11 = vrot.slane %v6031_v57, %v5937_v39  ;;  %v1191_v13 = vrot.slane %v6031_v57, %v5942_v41 }
 0x107   :  { %v6043_v12 = vpack.i.b16 %v852_v62, %v852_v62  ;;  %4809 = vmatprep.mubr.bf16.mxu1 %v4415_v2  ;;  %v326_v16 = vpop.f32.mrb[10].mxu0  ;;  %v323_v18 = vadd.f32 %v322_v63, %v5945_v42  ;;  %v325_v19 = vadd.f32 %v324_v10, %v5948_v43  ;;  %v496_v1 = vmul.bf16 %v458_v48, %v5997_v21 }
 0x108   :  { %v327_v20 = vadd.f32 %v326_v16, %v5945_v42  ;;  %v328_v22 = vpop.f32.mrb[11].mxu0  ;;  %v6067_v16 = vpop.f32.mrb[5].mxu1  ;;  %v497_v9 = vmul.bf16 %v465_v11, %v6010_v40  ;;  %v889_v17 = vmul.bf16 %v851_v3, %v5997_v21  ;;  %v1504_v3 = vrot.slane %v5979_v6, %v5942_v41 }
 0x109   :  { %v858_v23 = vrot.slane %v6043_v12, %v5937_v39  ;;  %v410_v62 = vpack.c.bf16 %v323_v18, %v323_v18  ;;  %v6064_v63 = vpack.c.bf16 %v325_v19, %v325_v19  ;;  %v329_v10 = vadd.f32 %v328_v22, %v5948_v43  ;;  %v6073_v5 = vpop.f32.mrb[6].mxu1 }
 0x10a   :  { %v411_v2 = vpack.c.bf16 %v327_v20, %v327_v20  ;;  %v6079_v31 = vpop.f32.mrb[7].mxu1  ;;  %v4404_v8 = vcombine.low %v496_v1, %v497_v9  ;;  %v6099_v9 = vmul.bf16 %v1500_v46, %v5960_v58  ;;  %v6120_v45 = vmul.bf16 %v1504_v3, %v5971_v0 }
 0x10b   :  { %v890_v56 = vmul.bf16 %v858_v23, %v6010_v40  ;;  %v6075_v37 = vpack.i.b16 %v410_v62, %v410_v62  ;;  %v859_v18 = vshrl.u32 %v410_v62, 16  ;;  %8232 = vst [vmem:[#allocation8_spill] sm:$0xff] %v6079_v31  ;;  %v6081_v22 = vpack.c.bf16 %v329_v10, %v329_v10 }
 0x10c   :  { %v6077_v19 = vpack.i.b16 %v411_v2, %v411_v2  ;;  %v866_v20 = vshrl.u32 %v411_v2, 16  ;;  %4786 = vmatmul.mubr.bf16.vlgmr.msra.gmra.mrb[16].mxu0 %v4404_v8 }
 0x10d   :  { %v332_v48 = vpop.f32.mrb[12].mxu0  ;;  %v4416_v14 = vcombine.low %v889_v17, %v890_v56  ;;  %v6085_v11 = vpack.i.b16 %v859_v18, %v859_v18  ;;  %v472_v2 = vrot.slane %v6075_v37, %v5937_v39  ;;  %4818 = vmatpush3.bf16.msra.mxu0 %v5848_v24 }
 0x10e   :  { %v6087_v23 = vpack.i.b16 %v866_v20, %v866_v20  ;;  %v333_v51 = vadd.f32 %v332_v48, %v5945_v42  ;;  %v334_v62 = vpop.f32.mrb[13].mxu0  ;;  %v479_v56 = vrot.slane %v6077_v19, %v5937_v39  ;;  %4819 = vmatprep.subr.bf16.mxu0 %v5857_v26 }
 0x10f   :  { %v335_v10 = vadd.f32 %v334_v62, %v5948_v43  ;;  %4810 = vmatmul.mubr.bf16.vlgmr.msra.gmra.mrb[8].mxu1 %v4416_v14  ;;  %v336_v1 = vpop.f32.mrb[14].mxu0  ;;  %v498_v14 = vmul.bf16 %v472_v2, %v6064_v63 }
 0x110   :  { %v412_v17 = vpack.c.bf16 %v333_v51, %v333_v51  ;;  %4842 = vmatpush3.bf16.msra.mxu1 %v5848_v24  ;;  %v337_v8 = vadd.f32 %v336_v1, %v5945_v42  ;;  %v338_v18 = vpop.f32.mrb[15].mxu0  ;;  %v499_v46 = vmul.bf16 %v479_v56, %v6081_v22  ;;  %v865_v42 = vrot.slane %v6085_v11, %v5937_v39 }
 0x111   :  { %v6105_v20 = vpack.c.bf16 %v335_v10, %v335_v10  ;;  %4843 = vmatprep.subr.bf16.mxu1 %v5857_v26  ;;  %v339_v48 = vadd.f32 %v338_v18, %v5948_v43  ;;  %v872_v10 = vrot.slane %v6087_v23, %v5937_v39  ;;  %4820 = vmatpush3.bf16.msra.mxu0 %v5857_v26 }
 0x112   :  { %v6111_v62 = vpack.i.b16 %v412_v17, %v412_v17  ;;  %v873_v51 = vshrl.u32 %v412_v17, 16  ;;  %v413_v4 = vpack.c.bf16 %v337_v8, %v337_v8  ;;  %v4405_v2 = vcombine.low %v498_v14, %v499_v46  ;;  %4821 = vmatprep.subr.bf16.mxu0 %v5871_v29 }
 0x113   :  { %v6115_v1 = vpack.c.bf16 %v339_v48, %v339_v48  ;;  %v891_v17 = vmul.bf16 %v865_v42, %v6064_v63  ;;  %v892_v8 = vmul.bf16 %v872_v10, %v6081_v22  ;;  %v4423_v18 = vcombine.low %v6099_v9, %v6120_v45 }
 0x114   :  { %v6122_v30 = vpack.i.b16 %v873_v51, %v873_v51  ;;  %v6124_v43 = vpack.i.b16 %v413_v4, %v413_v4  ;;  %v880_v56 = vshrl.u32 %v413_v4, 16  ;;  %4844 = vmatpush3.bf16.msra.mxu1 %v5857_v26  ;;  %v486_v3 = vrot.slane %v6111_v62, %v5937_v39  ;;  %4789 = vmatprep.mubr.bf16.mxu0 %v4405_v2 }
 0x115   :  { %4845 = vmatprep.subr.bf16.mxu1 %v5871_v29  ;;  %v6146_v46 = vmul.bf16 %v1187_v50, %v5997_v21  ;;  %v4417_v51 = vcombine.low %v891_v17, %v892_v8  ;;  %v6153_v45 = vmul.bf16 %v1191_v13, %v6010_v40  ;;  %v1195_v9 = vrot.slane %v6075_v37, %v5942_v41 }
 0x116   :  { %v6136_v14 = vpack.i.b16 %v880_v56, %v880_v56  ;;  %v493_v4 = vrot.slane %v6124_v43, %v5937_v39  ;;  %v879_v48 = vrot.slane %v6122_v30, %v5937_v39  ;;  %v500_v42 = vmul.bf16 %v486_v3, %v6105_v20  ;;  %4822 = vmatpush3.bf16.msra.mxu0 %v5871_v29 }
 0x117   :  { %4813 = vmatprep.mubr.bf16.mxu1 %v4417_v51  ;;  %4823 = vmatprep.subr.bf16.mxu0 %v5893_v32  ;;  %v1199_v56 = vrot.slane %v6077_v19, %v5942_v41  ;;  %v6169_v17 = vmul.bf16 %v1195_v9, %v6064_v63  ;;  %v1825_v13 = vrot.slane %v5967_v61, %v5954_v53 }
 0x118   :  { %4846 = vmatpush3.bf16.msra.mxu1 %v5871_v29  ;;  %v501_v2 = vmul.bf16 %v493_v4, %v6115_v1  ;;  %v886_v50 = vrot.slane %v6136_v14, %v5937_v39  ;;  %v893_v10 = vmul.bf16 %v879_v48, %v6105_v20  ;;  %v6177_v4 = vmul.bf16 %v1508_v7, %v5997_v21 }
 0x119   :  { %4847 = vmatprep.subr.bf16.mxu1 %v5893_v32  ;;  %v8233_v48 = vrot.slane %v6043_v12, %v5942_v41  ;;  %v6186_v9 = vmul.bf16 %v1199_v56, %v6081_v22  ;;  %v1207_v56 = vrot.slane %v6124_v43, %v5942_v41 }
 0x11a   :  { %v4406_v8 = vcombine.low %v500_v42, %v501_v2  ;;  %v894_v3 = vmul.bf16 %v886_v50, %v6115_v1  ;;  %v1516_v42 = vrot.slane %v6085_v11, %v5942_v41  ;;  %v1520_v2 = vrot.slane %v6087_v23, %v5942_v41  ;;  %4824 = vmatpush3.bf16.msra.mxu0 %v5893_v32 }
 0x11b   :  { %v6183_v51 = vmul.bf16 %v8233_v48, %v6010_v40  ;;  %v1203_v50 = vrot.slane %v6111_v62, %v5942_v41  ;;  %4825 = vmatprep.subr.bf16.mxu0 %v5902_v33  ;;  %v2146_v48 = vrot.slane %v5979_v6, %v5954_v53 }
 0x11c   :  { %4848 = vmatpush3.bf16.msra.mxu1 %v5893_v32  ;;  %v4418_v7 = vcombine.low %v893_v10, %v894_v3  ;;  %4790 = vmatmul.mubr.bf16.gmra.mrb[20].mxu0 %v4406_v8  ;;  %v6204_v39 = vmul.bf16 %v1516_v42, %v6064_v63  ;;  %v6207_v31 = vmul.bf16 %v1520_v2, %v6081_v22 }
 0x11d   :  { %v8234_v10 = vcombine.low %v5991_v15, %v6002_v25  ;;  %4849 = vmatprep.subr.bf16.mxu1 %v5902_v33  ;;  %v6214_v3 = vmul.bf16 %v1203_v50, %v6105_v20  ;;  %v6217_v8 = vmul.bf16 %v1207_v56, %v6115_v1  ;;  %v8235_v15 = vrot.slane %v5958_v55, %v5954_v53 }
 0x11e   :  { %4814 = vmatmul.mubr.bf16.gmra.mrb[12].mxu1 %v4418_v7  ;;  %v1524_v2 = vrot.slane %v6122_v30, %v5942_v41  ;;  %v1528_v50 = vrot.slane %v6136_v14, %v5942_v41  ;;  %4826 = vmatpush3.bf16.msra.mxu0 %v5902_v33  ;;  %v6238_v56 = vmul.bf16 %v1825_v13, %v5971_v0 }
 0x11f   :  { %4833 = vmatprep.mubr.bf16.mxu0 %v8234_v10  ;;  %v6227_v25 = vmul.bf16 %v8235_v15, %v5960_v58  ;;  %v2142_v10 = vrot.slane %v5965_v60, %v5954_v53  ;;  %4827 = vmatprep.subr.bf16.mxu0 %v5911_v34  ;;  %v6272_v13 = vmul.bf16 %v2146_v48, %v5971_v0 }
 0x120   :  { %4850 = vmatpush3.bf16.msra.mxu1 %v5902_v33  ;;  %8237 = vst [vmem:[#allocation10_spill] sm:$0xff] %v6238_v56  ;;  %4857 = vmatprep.mubr.bf16.mxu1 %v4423_v18  ;;  %v6244_v15 = vmul.bf16 %v1524_v2, %v6105_v20  ;;  %v6247_v42 = vmul.bf16 %v1528_v50, %v6115_v1 }
 0x121   :  { %8236 = vst [vmem:[#allocation9_spill] sm:$0xff] %v6227_v25  ;;  %4851 = vmatprep.subr.bf16.mxu1 %v5911_v34  ;;  %v6255_v7 = vmul.bf16 %v2142_v10, %v5960_v58  ;;  %v8238_v18 = vrot.slane %v6006_v28, %v5954_v53  ;;  %v8240_v50 = vrot.slane %v6031_v57, %v5954_v53 }
 0x122   :  { %v1837_v10 = vrot.slane %v6075_v37, %v5954_v53  ;;  %v1841_v32 = vrot.slane %v6077_v19, %v5954_v53  ;;  %4828 = vmatpush3.bf16.msra.mxu0 %v5911_v34  ;;  %v8244_v48 = vrot.slane %v6043_v12, %v5954_v53  ;;  %v1845_v25 = vrot.slane %v6111_v62, %v5954_v53 }
 0x123   :  { %v6261_v2 = vmul.bf16 %v8238_v18, %v5997_v21  ;;  %v6267_v41 = vmul.bf16 %v8240_v50, %v6010_v40  ;;  %v8242_v50 = vrot.slane %v6021_v49, %v5954_v53  ;;  %4829 = vmatprep.subr.bf16.mxu0 %v5920_v35 }
 0x124   :  { %4852 = vmatpush3.bf16.msra.mxu1 %v5911_v34  ;;  %v6292_v56 = vmul.bf16 %v8244_v48, %v6010_v40  ;;  %v6299_v18 = vmul.bf16 %v1837_v10, %v6064_v63  ;;  %v2158_v48 = vrot.slane %v6085_v11, %v5954_v53  ;;  %v1849_v10 = vrot.slane %v6124_v43, %v5954_v53 }
 0x125   :  { %8239 = vst [vmem:[#allocation11_spill] sm:$0xff] %v6261_v2  ;;  %8241 = vst [vmem:[#allocation12_spill] sm:$0xff] %v6267_v41  ;;  %v6286_v33 = vmul.bf16 %v8242_v50, %v5997_v21  ;;  %4853 = vmatprep.subr.bf16.mxu1 %v5920_v35  ;;  %v6302_v41 = vmul.bf16 %v1841_v32, %v6081_v22  ;;  %v2162_v2 = vrot.slane %v6087_v23, %v5954_v53 }
 0x126   :  { %8245 = vst [vmem:[#allocation14_spill] sm:$0xff] %v6292_v56  ;;  %8246 = vst [vmem:[#allocation15_spill] sm:$0xff] %v6299_v18  ;;  %v2467_v32 = vrot.slane %v5967_v61, %v5956_v54  ;;  %v8248_v50 = vrot.slane %v5958_v55, %v5956_v54  ;;  %4830 = vmatpush3.bf16.msra.mxu0 %v5920_v35  ;;  %v6338_v55 = vmul.bf16 %v1849_v10, %v6115_v1 }
 0x127   :  { %8243 = vst [vmem:[#allocation13_spill] sm:$0xff] %v6286_v33  ;;  %8247 = vst [vmem:[#allocation16_spill] sm:$0xff] %v6302_v41  ;;  %v6327_v33 = vmul.bf16 %v2158_v48, %v6064_v63  ;;  %v6330_v34 = vmul.bf16 %v2162_v2, %v6081_v22  ;;  %v6333_v41 = vmul.bf16 %v1845_v25, %v6105_v20  ;;  %4831 = vmatprep.subr.bf16.mxu0 %v5929_v36 }
 0x128   :  { %v6322_v56 = vmul.bf16 %v8248_v50, %v5960_v58  ;;  %4854 = vmatpush3.bf16.msra.mxu1 %v5920_v35  ;;  %v6341_v61 = vmul.bf16 %v2467_v32, %v5971_v0  ;;  %v2166_v50 = vrot.slane %v6122_v30, %v5954_v53  ;;  %v2170_v25 = vrot.slane %v6136_v14, %v5954_v53 }
 0x129   :  { %4855 = vmatprep.subr.bf16.mxu1 %v5929_v36  ;;  %v2784_v48 = vrot.slane %v5965_v60, %v5956_v54  ;;  %v2788_v18 = vrot.slane %v5979_v6, %v5956_v54  ;;  %v4430_v10 = vcombine.low %v6333_v41, %v6338_v55  ;;  %v8249_v2 = vrot.slane %v6006_v28, %v5956_v54 }
 0x12a   :  { %v6358_v35 = vmul.bf16 %v2166_v50, %v6105_v20  ;;  %4832 = vmatpush3.bf16.msra.mxu0 %v5929_v36  ;;  %v6369_v60 = vmul.bf16 %v2170_v25, %v6115_v1  ;;  %v8250_v28 = vrot.slane %v6031_v57, %v5956_v54  ;;  %v8251_v25 = vrot.slane %v6021_v49, %v5956_v54 }
 0x12b   :  { %v6364_v53 = vmul.bf16 %v8249_v2, %v5997_v21  ;;  %v6372_v6 = vmul.bf16 %v2784_v48, %v5960_v58  ;;  %v6375_v32 = vmul.bf16 %v2788_v18, %v5971_v0  ;;  %4865 = vmatprep.subr.bf16.mxu0 %v5848_v24  ;;  %v2479_v2 = vrot.slane %v6075_v37, %v5956_v54 }
 0x12c   :  { %4856 = vmatpush3.bf16.msra.mxu1 %v5929_v36  ;;  %v6383_v50 = vmul.bf16 %v8250_v28, %v6010_v40  ;;  %v2483_v58 = vrot.slane %v6077_v19, %v5956_v54  ;;  %v4434_v0 = vcombine.low %v6358_v35, %v6369_v60  ;;  %v6397_v48 = vmul.bf16 %v8251_v25, %v5997_v21 }
 0x12d   :  { %4889 = vmatprep.subr.bf16.mxu1 %v5848_v24  ;;  %v8252_v57 = vrot.slane %v6043_v12, %v5956_v54  ;;  %v8253_v19 = vcombine.low %v6146_v46, %v6153_v45  ;;  %v8254_v28 = vcombine.low %v6177_v4, %v6183_v51  ;;  %v6414_v21 = vmul.bf16 %v2479_v2, %v6064_v63 }
 0x12e   :  { %v4436_v18 = vcombine.low %v6364_v53, %v6383_v50  ;;  %v6417_v49 = vmul.bf16 %v2483_v58, %v6081_v22  ;;  %v2800_v46 = vrot.slane %v6085_v11, %v5956_v54  ;;  %v2804_v45 = vrot.slane %v6087_v23, %v5956_v54 }
 0x12f   :  { %v6403_v37 = vmul.bf16 %v8252_v57, %v6010_v40  ;;  %4834 = vmatmul.mubr.bf16.vlgmr.msra.gmra.mrb[24].mxu0 %v8253_v19  ;;  %4858 = vmatmul.mubr.bf16.vlgmr.msra.gmra.mrb[16].mxu1 %v8254_v28  ;;  %v8255_v40 = vcombine.low %v6169_v17, %v6186_v9  ;;  %v8256_v4 = vcombine.low %v6204_v39, %v6207_v31  ;;  %v8268_v57 = vld [vmem:[#allocation9_spill] sm:$0xff] }
 0x130   :  { %4866 = vmatpush3.bf16.msra.mxu0 %v5848_v24  ;;  %4890 = vmatpush3.bf16.msra.mxu1 %v5848_v24  ;;  %v4437_v17 = vcombine.low %v6414_v21, %v6417_v49  ;;  %v2487_v51 = vrot.slane %v6111_v62, %v5956_v54  ;;  %v2491_v9 = vrot.slane %v6124_v43, %v5956_v54 }
 0x131   :  { %4837 = vmatprep.mubr.bf16.mxu0 %v8255_v40  ;;  %v4440_v12 = vcombine.low %v6397_v48, %v6403_v37  ;;  %4861 = vmatprep.mubr.bf16.mxu1 %v8256_v4  ;;  %v6442_v11 = vmul.bf16 %v2800_v46, %v6064_v63  ;;  %v6445_v39 = vmul.bf16 %v2804_v45, %v6081_v22  ;;  %v8279_v40 = vld [vmem:[#allocation15_spill] sm:$0xff]  ;;  %v8280_v46 = vld [vmem:[#allocation16_spill] sm:$0xff]  ;;  %v8282_v4 = vld [vmem:[#allocation13_spill] sm:$0xff] }
 0x132   :  { %4867 = vmatprep.subr.bf16.mxu0 %v5857_v26  ;;  %4891 = vmatprep.subr.bf16.mxu1 %v5857_v26  ;;  %v2808_v31 = vrot.slane %v6122_v30, %v5956_v54  ;;  %v6450_v23 = vmul.bf16 %v2487_v51, %v6105_v20  ;;  %v6453_v62 = vmul.bf16 %v2491_v9, %v6115_v1  ;;  %v8283_v51 = vld [vmem:[#allocation14_spill] sm:$0xff] }
 0x133   :  { %v2812_v43 = vrot.slane %v6136_v14, %v5956_v54  ;;  %v6459_v2 = vadd.f32 %v6004_v27, %v5963_v59  ;;  %v4441_v63 = vcombine.low %v6442_v11, %v6445_v39  ;;  %v6469_v22 = vadd.f32 %v6008_v38, %v5963_v59 }
 0x134   :  { %4868 = vmatpush3.bf16.msra.mxu0 %v5857_v26  ;;  %v6465_v30 = vmul.bf16 %v2808_v31, %v6105_v20  ;;  %v6473_v58 = vadd.f32 %v6017_v47, %v5963_v59  ;;  %4892 = vmatpush3.bf16.msra.mxu1 %v5857_v26  ;;  %v4438_v54 = vcombine.low %v6450_v23, %v6453_v62 }
 0x135   :  { %8257 = vst [vmem:[#allocation17_spill] sm:$0xff] %v6459_v2  ;;  %8258 = vst [vmem:[#allocation18_spill] sm:$0xff] %v6469_v22  ;;  %4869 = vmatprep.subr.bf16.mxu0 %v5871_v29  ;;  %v6480_v27 = vmul.bf16 %v2812_v43, %v6115_v1  ;;  %v6484_v20 = vadd.f32 %v6027_v52, %v5963_v59  ;;  %4893 = vmatprep.subr.bf16.mxu1 %v5871_v29  ;;  %v8264_v1 = vld [vmem:[#allocation8_spill] sm:$0xff] }
 0x136   :  { %8259 = vst [vmem:[#allocation19_spill] sm:$0xff] %v6473_v58  ;;  %v6489_v38 = vadd.f32 %v6062_v44, %v5963_v59  ;;  %v6493_v47 = vadd.f32 %v6067_v16, %v5963_v59  ;;  %v6497_v14 = vadd.f32 %v6073_v5, %v5963_v59  ;;  %v6501_v25 = vadd.f32 %v8264_v1, %v5963_v59  ;;  %v8269_v5 = vld [vmem:[#allocation10_spill] sm:$0xff] }
 0x137   :  { %8260 = vst [vmem:[#allocation20_spill] sm:$0xff] %v6484_v20  ;;  %v8266_v52 = vcombine.low %v6214_v3, %v6217_v8  ;;  %v8267_v44 = vcombine.low %v6244_v15, %v6247_v42  ;;  %v4442_v16 = vcombine.low %v6465_v30, %v6480_v27  ;;  %v8270_v19 = vcombine.low %v8268_v57, %v8269_v5  ;;  %v8272_v3 = vld [vmem:[#allocation2_spill] sm:$0xff]  ;;  %v8273_v8 = vld [vmem:[#allocation3_spill] sm:$0xff]  ;;  %v8274_v42 = vld [vmem:[#allocation4_spill] sm:$0xff] }
 0x138   :  { %8261 = vst [vmem:[#allocation21_spill] sm:$0xff] %v6489_v38  ;;  %8262 = vst [vmem:[#allocation22_spill] sm:$0xff] %v6493_v47  ;;  %4870 = vmatpush3.bf16.msra.mxu0 %v5871_v29  ;;  %4894 = vmatpush3.bf16.msra.mxu1 %v5871_v29  ;;  %v8271_v59 = vcombine.low %v6255_v7, %v6272_v13  ;;  %v8275_v7 = vld [vmem:[#allocation5_spill] sm:$0xff]  ;;  %v8276_v15 = vld [vmem:[#allocation11_spill] sm:$0xff]  ;;  %v8281_v45 = vcombine.low %v8279_v40, %v8280_v46 }
 0x139   :  { %8263 = vst [vmem:[#allocation23_spill] sm:$0xff] %v6497_v14  ;;  %8265 = vst [vmem:[#allocation8_spill] sm:$0xff] %v6501_v25  ;;  %4838 = vmatmul.mubr.bf16.gmra.mrb[28].mxu0 %v8266_v52  ;;  %4862 = vmatmul.mubr.bf16.gmra.mrb[20].mxu1 %v8267_v44  ;;  %v8277_v13 = vld [vmem:[#allocation12_spill] sm:$0xff]  ;;  %v8284_v9 = vcombine.low %v8282_v4, %v8283_v51  ;;  %v8285_v31 = vcombine.low %v6327_v33, %v6330_v34 }
 0x13a   :  { %4881 = vmatprep.mubr.bf16.mxu0 %v8270_v19  ;;  %4905 = vmatprep.mubr.bf16.mxu1 %v8271_v59  ;;  %v8278_v28 = vcombine.low %v8276_v15, %v8277_v13  ;;  %v8286_v33 = vcombine.low %v6322_v56, %v6341_v61 }
 0x13b   :  { %4871 = vmatprep.subr.bf16.mxu0 %v8272_v3  ;;  %4895 = vmatprep.subr.bf16.mxu1 %v8272_v3 }
 0x13c   :  { %4872 = vmatpush3.bf16.msra.mxu0 %v8272_v3  ;;  %4896 = vmatpush3.bf16.msra.mxu1 %v8272_v3 }
 0x13d   :  { %4873 = vmatprep.subr.bf16.mxu0 %v8273_v8  ;;  %4897 = vmatprep.subr.bf16.mxu1 %v8273_v8 }
 0x140   :  { %4874 = vmatpush3.bf16.msra.mxu0 %v8273_v8  ;;  %4898 = vmatpush3.bf16.msra.mxu1 %v8273_v8 }
 0x141   :  { %4875 = vmatprep.subr.bf16.mxu0 %v8274_v42  ;;  %4899 = vmatprep.subr.bf16.mxu1 %v8274_v42 }
 0x144   :  { %4876 = vmatpush3.bf16.msra.mxu0 %v8274_v42  ;;  %4900 = vmatpush3.bf16.msra.mxu1 %v8274_v42 }
 0x145   :  { %4877 = vmatprep.subr.bf16.mxu0 %v8275_v7  ;;  %4901 = vmatprep.subr.bf16.mxu1 %v8275_v7 }
 0x148   :  { %4878 = vmatpush3.bf16.msra.mxu0 %v8275_v7  ;;  %4902 = vmatpush3.bf16.msra.mxu1 %v8275_v7 }
 0x149   :  { %4879 = vmatprep.subr.bf16.mxu0 %v5929_v36  ;;  %4903 = vmatprep.subr.bf16.mxu1 %v5929_v36 }
 0x14c   :  { %4880 = vmatpush3.bf16.msra.mxu0 %v5929_v36  ;;  %4904 = vmatpush3.bf16.msra.mxu1 %v5929_v36 }
 0x14d   :  { %4913 = vmatprep.subr.bf16.mxu0 %v5848_v24  ;;  %4937 = vmatprep.subr.bf16.mxu1 %v5848_v24 }
 0x14f   :  { %4882 = vmatmul.mubr.bf16.vlgmr.msra.gmra.mrb[32].mxu0 %v8278_v28  ;;  %4906 = vmatmul.mubr.bf16.vlgmr.msra.gmra.mrb[24].mxu1 %v8284_v9 }
 0x150   :  { %4885 = vmatprep.mubr.bf16.mxu0 %v8281_v45  ;;  %4914 = vmatpush3.bf16.msra.mxu0 %v5848_v24 }
 0x151   :  { %4915 = vmatprep.subr.bf16.mxu0 %v5857_v26  ;;  %4909 = vmatprep.mubr.bf16.mxu1 %v8285_v31 }
 0x152   :  { %4938 = vmatpush3.bf16.msra.mxu1 %v5848_v24  ;;  %v8287_v24 = vcombine.low %v6372_v6, %v6375_v32 }
 0x153   :  { %4939 = vmatprep.subr.bf16.mxu1 %v5857_v26 }
 0x154   :  { %4916 = vmatpush3.bf16.msra.mxu0 %v5857_v26 }
 0x155   :  { %4917 = vmatprep.subr.bf16.mxu0 %v5871_v29 }
 0x156   :  { %4940 = vmatpush3.bf16.msra.mxu1 %v5857_v26 }
 0x157   :  { %4886 = vmatmul.mubr.bf16.gmra.mrb[36].mxu0 %v4430_v10  ;;  %4941 = vmatprep.subr.bf16.mxu1 %v5871_v29 }
 0x158   :  { %4918 = vmatpush3.bf16.msra.mxu0 %v5871_v29  ;;  %4929 = vmatprep.mubr.bf16.mxu0 %v8286_v33 }
 0x159   :  { %4910 = vmatmul.mubr.bf16.gmra.mrb[28].mxu1 %v4434_v0  ;;  %4919 = vmatprep.subr.bf16.mxu0 %v8272_v3 }
 0x15a   :  { %4942 = vmatpush3.bf16.msra.mxu1 %v5871_v29  ;;  %4953 = vmatprep.mubr.bf16.mxu1 %v8287_v24 }
 0x15b   :  { %4943 = vmatprep.subr.bf16.mxu1 %v8272_v3 }
 0x15c   :  { %4920 = vmatpush3.bf16.msra.mxu0 %v8272_v3 }
 0x15d   :  { %4921 = vmatprep.subr.bf16.mxu0 %v8273_v8 }
 0x15e   :  { %4944 = vmatpush3.bf16.msra.mxu1 %v8272_v3 }
 0x15f   :  { %4945 = vmatprep.subr.bf16.mxu1 %v8273_v8 }
 0x160   :  { %4922 = vmatpush3.bf16.msra.mxu0 %v8273_v8 }
 0x161   :  { %4923 = vmatprep.subr.bf16.mxu0 %v8274_v42 }
 0x162   :  { %4946 = vmatpush3.bf16.msra.mxu1 %v8273_v8 }
 0x163   :  { %4947 = vmatprep.subr.bf16.mxu1 %v8274_v42 }
 0x164   :  { %4924 = vmatpush3.bf16.msra.mxu0 %v8274_v42 }
 0x165   :  { %4925 = vmatprep.subr.bf16.mxu0 %v8275_v7 }
 0x166   :  { %4948 = vmatpush3.bf16.msra.mxu1 %v8274_v42 }
 0x167   :  { %4949 = vmatprep.subr.bf16.mxu1 %v8275_v7 }
 0x168   :  { %4926 = vmatpush3.bf16.msra.mxu0 %v8275_v7 }
 0x169   :  { %4927 = vmatprep.subr.bf16.mxu0 %v5929_v36 }
 0x16a   :  { %4950 = vmatpush3.bf16.msra.mxu1 %v8275_v7 }
 0x16b   :  { %4951 = vmatprep.subr.bf16.mxu1 %v5929_v36 }
 0x16c   :  { %4928 = vmatpush3.bf16.msra.mxu0 %v5929_v36 }
 0x16e   :  { %4952 = vmatpush3.bf16.msra.mxu1 %v5929_v36 }
 0x16f   :  { %4930 = vmatmul.mubr.bf16.vlgmr.msra.gmra.mrb[40].mxu0 %v4436_v18 }
 0x170   :  { %4933 = vmatprep.mubr.bf16.mxu0 %v4437_v17 }
 0x171   :  { %4954 = vmatmul.mubr.bf16.vlgmr.msra.gmra.mrb[32].mxu1 %v4440_v12 }
 0x172   :  { %4957 = vmatprep.mubr.bf16.mxu1 %v4441_v63 }
 0x177   :  { %4934 = vmatmul.mubr.bf16.gmra.mrb[44].mxu0 %v4438_v54 }
 0x179   :  { %4958 = vmatmul.mubr.bf16.gmra.mrb[36].mxu1 %v4442_v16 }
 0x1df   :  { %v4787_v26 = vpop.f32.mrb[16].mxu0 }
 0x1e0   :  { %v651_v34 = vrot.slane %v4787_v26, 4  ;;  %v6613_v35 = vpop.f32.mrb[17].mxu0 }
 0x1e1   :  { %v639_v56 = vrot.slane %v6613_v35, 4  ;;  %v6618_v55 = vpop.f32.mrb[18].mxu0 }
 0x1e2   :  { %v4811_v29 = vpop.f32.mrb[8].mxu1  ;;  %v652_v32 = vmax.f32 %v4787_v26, %v651_v34  ;;  %v657_v53 = vrot.slane %v6618_v55, 4  ;;  %v6624_v6 = vpop.f32.mrb[19].mxu0 }
 0x1e3   :  { %v996_v36 = vrot.slane %v4811_v29, 4  ;;  %v6615_v41 = vpop.f32.mrb[9].mxu1  ;;  %v640_v18 = vmax.f32 %v6613_v35, %v639_v56  ;;  %v645_v48 = vrot.slane %v6624_v6, 4 }
 0x1e4   :  { %v984_v61 = vrot.slane %v6615_v41, 4  ;;  %v6621_v10 = vpop.f32.mrb[10].mxu1  ;;  %v653_v49 = vrot.slane %v652_v32, 2  ;;  %v658_v12 = vmax.f32 %v6618_v55, %v657_v53 }
 0x1e5   :  { %v997_v60 = vmax.f32 %v4811_v29, %v996_v36  ;;  %v1002_v50 = vrot.slane %v6621_v10, 4  ;;  %v6627_v0 = vpop.f32.mrb[11].mxu1  ;;  %v641_v39 = vrot.slane %v640_v18, 2  ;;  %v646_v23 = vmax.f32 %v6624_v6, %v645_v48 }
 0x1e6   :  { %v985_v37 = vmax.f32 %v6615_v41, %v984_v61  ;;  %v990_v21 = vrot.slane %v6627_v0, 4  ;;  %v654_v63 = vmax.f32 %v652_v32, %v653_v49  ;;  %v659_v30 = vrot.slane %v658_v12, 2 }
 0x1e7   :  { %v998_v17 = vrot.slane %v997_v60, 2  ;;  %v1003_v11 = vmax.f32 %v6621_v10, %v1002_v50  ;;  %v642_v1 = vmax.f32 %v640_v18, %v641_v39  ;;  %v647_v52 = vrot.slane %v646_v23, 2 }
 0x1e8   :  { %v986_v62 = vrot.slane %v985_v37, 2  ;;  %v991_v43 = vmax.f32 %v6627_v0, %v990_v21  ;;  %v655_v57 = vrot.slane %v654_v63, 1  ;;  %v660_v5 = vmax.f32 %v658_v12, %v659_v30 }
 0x1e9   :  { %v999_v54 = vmax.f32 %v997_v60, %v998_v17  ;;  %v1004_v27 = vrot.slane %v1003_v11, 2  ;;  %v643_v3 = vrot.slane %v642_v1, 1  ;;  %v648_v8 = vmax.f32 %v646_v23, %v647_v52 }
 0x1ea   :  { %v987_v44 = vmax.f32 %v985_v37, %v986_v62  ;;  %v992_v16 = vrot.slane %v991_v43, 2  ;;  %v656_v15 = vmax.f32 %v654_v63, %v655_v57  ;;  %v661_v13 = vrot.slane %v660_v5, 1 }
 0x1eb   :  { %v1000_v19 = vrot.slane %v999_v54, 1  ;;  %v1005_v59 = vmax.f32 %v1003_v11, %v1004_v27  ;;  %v644_v46 = vmax.f32 %v642_v1, %v643_v3  ;;  %v649_v45 = vrot.slane %v648_v8, 1 }
 0x1ec   :  { %v988_v42 = vrot.slane %v987_v44, 1  ;;  %v993_v7 = vmax.f32 %v991_v43, %v992_v16  ;;  %v689_v9 = vsub.f32 %v4787_v26, %v656_v15  ;;  %v662_v31 = vmax.f32 %v660_v5, %v661_v13 }
 0x1ed   :  { %v1001_v28 = vmax.f32 %v999_v54, %v1000_v19  ;;  %v1006_v40 = vrot.slane %v1005_v59, 1  ;;  %v687_v34 = vsub.f32 %v6613_v35, %v644_v46  ;;  %v650_v36 = vmax.f32 %v648_v8, %v649_v45 }
 0x1ee   :  { %v989_v4 = vmax.f32 %v987_v44, %v988_v42  ;;  %v994_v51 = vrot.slane %v993_v7, 1  ;;  %v699_v53 = vmul.f32 1.442695, %v689_v9  ;;  %v690_v60 = vsub.f32 %v6618_v55, %v662_v31 }
 0x1ef   :  { %v1034_v33 = vsub.f32 %v4811_v29, %v1001_v28  ;;  %v1007_v24 = vmax.f32 %v1005_v59, %v1006_v40  ;;  %v6639_v32 = vpop.f32.mrb[20].mxu0  ;;  %v695_v26 = vmul.f32 1.442695, %v687_v34  ;;  %v688_v29 = vsub.f32 %v6624_v6, %v650_v36 }
 0x1f0   :  { %v1032_v56 = vsub.f32 %v6615_v41, %v989_v4  ;;  %v995_v61 = vmax.f32 %v993_v7, %v994_v51  ;;  %v6643_v48 = vpop.f32.mrb[21].mxu0  ;;  %5402 = vpow2.f32 %v699_v53  ;;  %v701_v49 = vmul.f32 1.442695, %v690_v60 }
 0x1f1   :  { %v1044_v50 = vmul.f32 1.442695, %v1034_v33  ;;  %v1035_v18 = vsub.f32 %v6621_v10, %v1007_v24  ;;  %v6647_v21 = vpop.f32.mrb[22].mxu0  ;;  %v6649_v41 = vpop.f32.mrb[12].mxu1  ;;  %v675_v55 = vrot.slane %v6639_v32, 4  ;;  %5404 = vpow2.f32 %v695_v26 }
 0x1f2   :  { %v1040_v37 = vmul.f32 1.442695, %v1032_v56  ;;  %v1033_v35 = vsub.f32 %v6627_v0, %v995_v61  ;;  %v6652_v17 = vpop.f32.mrb[23].mxu0  ;;  %v697_v10 = vmul.f32 1.442695, %v688_v29  ;;  %v663_v39 = vrot.slane %v6643_v48, 4 }
 0x1f3   :  { %v1046_v12 = vmul.f32 1.442695, %v1035_v18  ;;  %v6655_v6 = vpop.f32.mrb[13].mxu1  ;;  %5406 = vpow2.f32 %v701_v49  ;;  %v676_v0 = vmax.f32 %v6639_v32, %v675_v55  ;;  %v681_v23 = vrot.slane %v6647_v21, 4 }
 0x1f4   :  { %v1042_v11 = vmul.f32 1.442695, %v1033_v35  ;;  %v1020_v62 = vrot.slane %v6649_v41, 4  ;;  %v6660_v43 = vpop.f32.mrb[14].mxu1  ;;  %5408 = vpow2.f32 %v1044_v50  ;;  %v664_v63 = vmax.f32 %v6643_v48, %v663_v39 }
 0x1f5   :  { %v669_v30 = vrot.slane %v6652_v17, 4  ;;  %v1008_v54 = vrot.slane %v6655_v6, 4  ;;  %v6665_v27 = vpop.f32.mrb[15].mxu1  ;;  %5410 = vpow2.f32 %v697_v10  ;;  %v677_v1 = vrot.slane %v676_v0, 2 }
 0x1f6   :  { %v682_v52 = vmax.f32 %v6647_v21, %v681_v23  ;;  %v1021_v44 = vmax.f32 %v6649_v41, %v1020_v62  ;;  %5412 = vpow2.f32 %v1040_v37  ;;  %v665_v16 = vrot.slane %v664_v63, 2 }
 0x1f7   :  { %v670_v57 = vmax.f32 %v6652_v17, %v669_v30  ;;  %v1009_v5 = vmax.f32 %v6655_v6, %v1008_v54  ;;  %5414 = vpow2.f32 %v1046_v12  ;;  %v678_v19 = vmax.f32 %v676_v0, %v677_v1 }
 0x1f8   :  { %v683_v59 = vrot.slane %v682_v52, 2  ;;  %v1022_v3 = vrot.slane %v1021_v44, 2  ;;  %5416 = vpow2.f32 %v1042_v11  ;;  %v666_v8 = vmax.f32 %v664_v63, %v665_v16 }
 0x1f9   :  { %v671_v42 = vrot.slane %v670_v57, 2  ;;  %v1010_v7 = vrot.slane %v1009_v5, 2  ;;  %v679_v15 = vrot.slane %v678_v19, 1  ;;  %v1026_v40 = vrot.slane %v6660_v43, 4 }
 0x1fa   :  { %v684_v13 = vmax.f32 %v682_v52, %v683_v59  ;;  %v1023_v28 = vmax.f32 %v1021_v44, %v1022_v3  ;;  %v667_v46 = vrot.slane %v666_v8, 1  ;;  %v6675_v9 = vpop.eup %5402 }
 0x1fb   :  { %v672_v45 = vmax.f32 %v670_v57, %v671_v42  ;;  %v6672_v4 = vmax.f32 %v1009_v5, %v1010_v7  ;;  %v680_v31 = vmax.f32 %v678_v19, %v679_v15  ;;  %v6678_v34 = vmax.f32 %v6660_v43, %v1026_v40  ;;  %v6680_v36 = vpop.eup %5404 }
 0x1fc   :  { %v685_v33 = vrot.slane %v684_v13, 1  ;;  %v1024_v24 = vrot.slane %v1023_v28, 1  ;;  %v723_v56 = vrot.slane %v6675_v9, 4  ;;  %v668_v61 = vmax.f32 %v666_v8, %v667_v46 }
 0x1fd   :  { %v673_v53 = vrot.slane %v672_v45, 1  ;;  %v1012_v60 = vrot.slane %v6672_v4, 1  ;;  %v6684_v50 = vpop.eup %5406  ;;  %v711_v18 = vrot.slane %v6680_v36, 4  ;;  %v693_v26 = vsub.f32 %v6639_v32, %v680_v31 }
 0x1fe   :  { %v6688_v29 = vmax.f32 %v684_v13, %v685_v33  ;;  %v6690_v37 = vmax.f32 %v1023_v28, %v1024_v24  ;;  %v6692_v35 = vpop.eup %5408  ;;  %v724_v49 = vadd.f32 %v6675_v9, %v723_v56  ;;  %v729_v12 = vrot.slane %v6684_v50, 4 }
 0x1ff   :  { %v691_v55 = vsub.f32 %v6643_v48, %v668_v61  ;;  %v6697_v10 = vmax.f32 %v672_v45, %v673_v53  ;;  %v6699_v11 = vpop.eup %5410  ;;  %v712_v39 = vadd.f32 %v6680_v36, %v711_v18  ;;  %v1068_v32 = vrot.slane %v6692_v35, 4 }
 0x200   :  { %v707_v0 = vmul.f32 1.442695, %v693_v26  ;;  %v694_v23 = vsub.f32 %v6647_v21, %v6688_v29  ;;  %v6705_v62 = vpop.eup %5412  ;;  %v725_v63 = vrot.slane %v724_v49, 2  ;;  %v730_v30 = vadd.f32 %v6684_v50, %v729_v12 }
 0x201   :  { %v717_v54 = vrot.slane %v6699_v11, 4  ;;  %v6709_v48 = vmul.f32 1.442695, %v691_v55  ;;  %v6715_v44 = vpop.eup %5414  ;;  %v713_v16 = vrot.slane %v712_v39, 2  ;;  %v1069_v57 = vadd.f32 %v6692_v35, %v1068_v32 }
 0x202   :  { %v6711_v1 = vpop.f32.mrb[24].mxu0  ;;  %v6713_v52 = vpop.f32.mrb[16].mxu1  ;;  %v1056_v21 = vrot.slane %v6705_v62, 4  ;;  %5418 = vpow2.f32 %v707_v0  ;;  %v726_v3 = vadd.f32 %v725_v63, %v724_v49  ;;  %v731_v8 = vrot.slane %v730_v30, 2 }
 0x203   :  { %v6719_v5 = vpop.f32.mrb[25].mxu0  ;;  %v6721_v19 = vpop.f32.mrb[17].mxu1  ;;  %v718_v42 = vadd.f32 %v6699_v11, %v717_v54  ;;  %v1074_v7 = vrot.slane %v6715_v44, 4  ;;  %v714_v28 = vadd.f32 %v713_v16, %v712_v39  ;;  %v1070_v40 = vrot.slane %v1069_v57, 2 }
 0x204   :  { %v6723_v59 = vpop.eup %5416  ;;  %v6727_v15 = vpop.f32.mrb[26].mxu0  ;;  %v1057_v46 = vadd.f32 %v6705_v62, %v1056_v21  ;;  %v727_v24 = vrot.slane %v726_v3, 1  ;;  %v732_v56 = vadd.f32 %v731_v8, %v730_v30 }
 0x205   :  { %v6729_v13 = vpop.f32.mrb[18].mxu1  ;;  %v1062_v45 = vrot.slane %v6723_v59, 4  ;;  %v6733_v31 = vpop.f32.mrb[27].mxu0  ;;  %v719_v61 = vrot.slane %v718_v42, 2  ;;  %v1075_v53 = vadd.f32 %v6715_v44, %v1074_v7  ;;  %v715_v18 = vrot.slane %v714_v28, 1 }
 0x206   :  { %v6735_v33 = vpop.f32.mrb[19].mxu1  ;;  %v1071_v26 = vadd.f32 %v1070_v40, %v1069_v57  ;;  %v1058_v29 = vrot.slane %v1057_v46, 2  ;;  %v728_v12 = vadd.f32 %v727_v24, %v726_v3  ;;  %v733_v55 = vrot.slane %v732_v56, 1 }
 0x207   :  { %v1063_v49 = vadd.f32 %v6723_v59, %v1062_v45  ;;  %v720_v39 = vadd.f32 %v719_v61, %v718_v42  ;;  %v1076_v32 = vrot.slane %v1075_v53, 2  ;;  %v716_v0 = vadd.f32 %v715_v18, %v714_v28 }
 0x208   :  { %v1072_v63 = vrot.slane %v1071_v26, 1  ;;  %v1059_v54 = vadd.f32 %v1058_v29, %v1057_v46  ;;  %5420 = vrcp.f32 %v728_v12  ;;  %v734_v21 = vadd.f32 %v733_v55, %v732_v56 }
 0x209   :  { %v1064_v16 = vrot.slane %v1063_v49, 2  ;;  %v721_v51 = vrot.slane %v720_v39, 1  ;;  %v1077_v30 = vadd.f32 %v1076_v32, %v1075_v53  ;;  %5422 = vrcp.f32 %v716_v0 }
 0x20a   :  { %v1073_v57 = vadd.f32 %v1072_v63, %v1071_v26  ;;  %v1060_v40 = vrot.slane %v1059_v54, 1  ;;  %5424 = vrcp.f32 %v734_v21  ;;  %v709_v24 = vmul.f32 1.442695, %v694_v23 }
 0x20b   :  { %v1065_v45 = vadd.f32 %v1064_v16, %v1063_v49  ;;  %v722_v28 = vadd.f32 %v721_v51, %v720_v39  ;;  %v1078_v46 = vrot.slane %v1077_v30, 1  ;;  %v1038_v26 = vsub.f32 %v6649_v41, %v6690_v37 }
 0x20c   :  { %v6739_v8 = vpop.f32.mrb[28].mxu0  ;;  %v6741_v7 = vpop.f32.mrb[20].mxu1  ;;  %5426 = vrcp.f32 %v1073_v57  ;;  %v1061_v18 = vadd.f32 %v1060_v40, %v1059_v54  ;;  %v692_v55 = vsub.f32 %v6652_v17, %v6697_v10  ;;  %v1013_v0 = vmax.f32 %v6672_v4, %v1012_v60 }
 0x20d   :  { %v6743_v3 = vpop.f32.mrb[29].mxu0  ;;  %v6745_v42 = vpop.f32.mrb[21].mxu1  ;;  %v1066_v29 = vrot.slane %v1065_v45, 1  ;;  %5428 = vrcp.f32 %v722_v28  ;;  %v1079_v51 = vadd.f32 %v1078_v46, %v1077_v30  ;;  %v1052_v32 = vmul.f32 1.442695, %v1038_v26 }
 0x20e   :  { %v6747_v61 = vpop.f32.mrb[30].mxu0  ;;  %v6749_v56 = vpop.f32.mrb[22].mxu1  ;;  %5430 = vrcp.f32 %v1061_v18  ;;  %v705_v37 = vmul.f32 1.442695, %v692_v55  ;;  %v1028_v63 = vrot.slane %v6678_v34, 2  ;;  %v1036_v54 = vsub.f32 %v6655_v6, %v1013_v0 }
 0x20f   :  { %v6751_v53 = vpop.eup %5418  ;;  %v6755_v49 = vpop.f32.mrb[31].mxu0  ;;  %v1067_v39 = vadd.f32 %v1066_v29, %v1065_v45  ;;  %5432 = vrcp.f32 %v1079_v51  ;;  %v8288_v16 = vrot.slane %v6665_v27, 4  ;;  %v1317_v10 = vrot.slane %v6711_v1, 4 }
 0x210   :  { %v6757_v12 = vpop.f32.mrb[23].mxu1  ;;  %v747_v23 = vrot.slane %v6751_v53, 4  ;;  %v1029_v4 = vmax.f32 %v6678_v34, %v1028_v63  ;;  %v1305_v60 = vrot.slane %v6719_v5, 4  ;;  %v1048_v30 = vmul.f32 1.442695, %v1036_v54 }
 0x211   :  { %5434 = vrcp.f32 %v1067_v39  ;;  %v1015_v17 = vmax.f32 %v6665_v27, %v8288_v16  ;;  %v1318_v40 = vmax.f32 %v6711_v1, %v1317_v10 }
 0x212   :  { %v748_v41 = vadd.f32 %v6751_v53, %v747_v23  ;;  %5436 = vpow2.f32 %v6709_v48  ;;  %v5421_v45 = vpop.eup %5420  ;;  %v1030_v28 = vrot.slane %v1029_v4, 1 }
 0x213   :  { %5438 = vpow2.f32 %v709_v24  ;;  %v1016_v57 = vrot.slane %v1015_v17, 2  ;;  %v5423_v46 = vpop.eup %5422  ;;  %v769_v18 = vmul.f32 %v5421_v45, %v6675_v9  ;;  %v1319_v26 = vrot.slane %v1318_v40, 2 }
 0x214   :  { %v749_v21 = vrot.slane %v748_v41, 2  ;;  %5440 = vpow2.f32 %v1052_v32  ;;  %v5425_v48 = vpop.eup %5424  ;;  %v1031_v34 = vmax.f32 %v1029_v4, %v1030_v28  ;;  %v1306_v24 = vmax.f32 %v6719_v5, %v1305_v60 }
 0x215   :  { %5442 = vpow2.f32 %v705_v37  ;;  %v1017_v29 = vmax.f32 %v1015_v17, %v1016_v57  ;;  %v777_v55 = vmul.f32 %v769_v18, %v6459_v2  ;;  %v770_v39 = vmul.f32 %v5425_v48, %v6684_v50 }
 0x216   :  { %v750_v6 = vadd.f32 %v749_v21, %v748_v41  ;;  %5444 = vpow2.f32 %v1048_v30  ;;  %v5427_v23 = vpop.eup %5426  ;;  %v1039_v9 = vsub.f32 %v6660_v43, %v1031_v34  ;;  %v1320_v37 = vmax.f32 %v1318_v40, %v1319_v26 }
 0x217   :  { %v1018_v0 = vrot.slane %v1017_v29, 1  ;;  %v5429_v32 = vpop.eup %5428  ;;  %v1114_v41 = vmul.f32 %v5427_v23, %v6692_v35  ;;  %v795_v16 = vrot.slane %v777_v55, 4  ;;  %v778_v17 = vmul.f32 %v770_v39, %v6473_v58 }
 0x218   :  { %v751_v51 = vrot.slane %v750_v6, 1  ;;  %v5431_v54 = vpop.eup %5430  ;;  %v6784_v4 = vmul.f32 %v5423_v46, %v6680_v36  ;;  %v1054_v50 = vmul.f32 1.442695, %v1039_v9  ;;  %v1307_v30 = vrot.slane %v1306_v24, 2 }
 0x219   :  { %v1019_v10 = vmax.f32 %v1017_v29, %v1018_v0  ;;  %v5433_v21 = vpop.eup %5432  ;;  %v1122_v60 = vmul.f32 %v1114_v41, %v6459_v2  ;;  %v6788_v35 = vmul.f32 %v5429_v32, %v6699_v11  ;;  %v6797_v36 = vmul.f32 %v5431_v54, %v6705_v62 }
 0x21a   :  { %v752_v63 = vadd.f32 %v751_v51, %v750_v6  ;;  %8289 = vst [vmem:[#allocation9_spill] sm:$0xff] %v6784_v4  ;;  %v1115_v43 = vmul.f32 %v5433_v21, %v6715_v44  ;;  %v6794_v6 = vadd.f32 %v795_v16, %v777_v55  ;;  %v1321_v28 = vrot.slane %v1320_v37, 1 }
 0x21b   :  { %v5435_v57 = vpop.eup %5434  ;;  %8290 = vst [vmem:[#allocation10_spill] sm:$0xff] %v6788_v35  ;;  %v1037_v40 = vsub.f32 %v6665_v27, %v1019_v10  ;;  %8292 = vst [vmem:[#allocation3_spill] sm:$0xff] %v6797_v36  ;;  %v801_v18 = vrot.slane %v778_v17, 4  ;;  %v1140_v27 = vrot.slane %v1122_v60, 4  ;;  %v1308_v34 = vmax.f32 %v1306_v24, %v1307_v30 }
 0x21c   :  { %5446 = vrcp.f32 %v752_v63  ;;  %v6792_v45 = vpop.eup %5436  ;;  %8291 = vst [vmem:[#allocation2_spill] sm:$0xff] %v6794_v6  ;;  %v6802_v11 = vmul.f32 %v1115_v43, %v6473_v58  ;;  %v1322_v51 = vmax.f32 %v1320_v37, %v1321_v28  ;;  %v6811_v23 = vmul.f32 %v5435_v57, %v6723_v59 }
 0x21d   :  { %5448 = vpow2.f32 %v1054_v50  ;;  %v6799_v46 = vpop.eup %5438  ;;  %v735_v44 = vrot.slane %v6792_v45, 4  ;;  %v1050_v29 = vmul.f32 1.442695, %v1037_v40  ;;  %v1309_v9 = vrot.slane %v1308_v34, 1 }
 0x21e   :  { %v6805_v26 = vpop.eup %5440  ;;  %v753_v48 = vrot.slane %v6799_v46, 4  ;;  %8293 = vst [vmem:[#allocation4_spill] sm:$0xff] %v6811_v23  ;;  %v1355_v63 = vsub.f32 %v6711_v1, %v1322_v51  ;;  %v6820_v24 = vadd.f32 %v801_v18, %v778_v17  ;;  %v1323_v1 = vrot.slane %v6727_v15, 4 }
 0x21f   :  { %v6808_v62 = vpop.eup %5442  ;;  %v736_v55 = vadd.f32 %v6792_v45, %v735_v44  ;;  %v1092_v39 = vrot.slane %v6805_v26, 4  ;;  %5450 = vpow2.f32 %v1050_v29  ;;  %v1310_v50 = vmax.f32 %v1308_v34, %v1309_v9 }
 0x220   :  { %v6815_v0 = vpop.eup %5444  ;;  %v754_v32 = vadd.f32 %v6799_v46, %v753_v48  ;;  %v741_v41 = vrot.slane %v6808_v62, 4  ;;  %8294 = vst [vmem:[#allocation5_spill] sm:$0xff] %v6820_v24  ;;  %v1365_v21 = vmul.f32 1.442695, %v1355_v63  ;;  %v6838_v34 = vadd.f32 %v1140_v27, %v1122_v60 }
 0x221   :  { %v737_v37 = vrot.slane %v736_v55, 2  ;;  %v1093_v59 = vadd.f32 %v6805_v26, %v1092_v39  ;;  %v1080_v54 = vrot.slane %v6815_v0, 4  ;;  %v1353_v44 = vsub.f32 %v6719_v5, %v1310_v50 }
 0x222   :  { %v755_v16 = vrot.slane %v754_v32, 2  ;;  %v742_v10 = vadd.f32 %v6808_v62, %v741_v41  ;;  %v6825_v30 = vpop.f32.mrb[32].mxu0  ;;  %5452 = vpow2.f32 %v1365_v21  ;;  %v6834_v48 = vpop.f32.mrb[24].mxu1  ;;  %8295 = vst [vmem:[#allocation11_spill] sm:$0xff] %v6838_v34  ;;  %v1644_v6 = vrot.slane %v6729_v13, 4 }
 0x223   :  { %v738_v57 = vadd.f32 %v737_v37, %v736_v55  ;;  %v1094_v43 = vrot.slane %v1093_v59, 2  ;;  %v1081_v40 = vadd.f32 %v6815_v0, %v1080_v54  ;;  %v6829_v17 = vpop.f32.mrb[33].mxu0  ;;  %v6842_v9 = vpop.f32.mrb[25].mxu1  ;;  %v1361_v5 = vmul.f32 1.442695, %v1353_v44 }
 0x224   :  { %v756_v28 = vadd.f32 %v755_v16, %v754_v32  ;;  %v743_v18 = vrot.slane %v742_v10, 2  ;;  %v6832_v29 = vpop.f32.mrb[34].mxu0  ;;  %v1324_v16 = vmax.f32 %v6727_v15, %v1323_v1  ;;  %v6847_v21 = vpop.f32.mrb[26].mxu1 }
 0x225   :  { %v739_v55 = vrot.slane %v738_v57, 1  ;;  %v1095_v39 = vadd.f32 %v1094_v43, %v1093_v59  ;;  %v1082_v41 = vrot.slane %v1081_v40, 2  ;;  %v6840_v63 = vpop.f32.mrb[35].mxu0  ;;  %v6850_v59 = vpop.f32.mrb[27].mxu1  ;;  %5454 = vpow2.f32 %v1361_v5 }
 0x226   :  { %v6836_v51 = vpop.eup %5446  ;;  %v757_v37 = vrot.slane %v756_v28, 1  ;;  %v744_v54 = vadd.f32 %v743_v18, %v742_v10  ;;  %v1325_v25 = vrot.slane %v1324_v16, 2 }
 0x227   :  { %v6844_v32 = vpop.eup %5448  ;;  %v740_v50 = vadd.f32 %v739_v55, %v738_v57  ;;  %v1096_v14 = vrot.slane %v1095_v39, 1  ;;  %v1083_v60 = vadd.f32 %v1082_v41, %v1081_v40  ;;  %v1146_v41 = vrot.slane %v6802_v11, 4 }
 0x228   :  { %v1098_v27 = vrot.slane %v6844_v32, 4  ;;  %v758_v43 = vadd.f32 %v757_v37, %v756_v28  ;;  %v745_v38 = vrot.slane %v744_v54, 1  ;;  %v1326_v40 = vmax.f32 %v1324_v16, %v1325_v25 }
 0x229   :  { %v6852_v47 = vpop.eup %5450  ;;  %5456 = vrcp.f32 %v740_v50  ;;  %v1097_v10 = vadd.f32 %v1096_v14, %v1095_v39  ;;  %v1084_v18 = vrot.slane %v1083_v60, 1  ;;  %v1638_v37 = vrot.slane %v6713_v52, 4 }
 0x22a   :  { %v1099_v1 = vadd.f32 %v6844_v32, %v1098_v27  ;;  %5458 = vrcp.f32 %v758_v43  ;;  %v746_v44 = vadd.f32 %v745_v38, %v744_v54  ;;  %v1086_v57 = vrot.slane %v6852_v47, 4  ;;  %v6856_v55 = vpop.f32.mrb[36].mxu0 }
 0x22b   :  { %5460 = vrcp.f32 %v1097_v10  ;;  %v6860_v5 = vpop.f32.mrb[37].mxu0  ;;  %v1085_v50 = vadd.f32 %v1084_v18, %v1083_v60  ;;  %v1327_v39 = vrot.slane %v1326_v40, 1  ;;  %v1311_v27 = vrot.slane %v6733_v31, 4 }
 0x22c   :  { %v1100_v28 = vrot.slane %v1099_v1, 2  ;;  %v1087_v14 = vadd.f32 %v6852_v47, %v1086_v57  ;;  %v6864_v38 = vpop.f32.mrb[38].mxu0  ;;  %v6866_v54 = vpop.f32.mrb[28].mxu1  ;;  %5462 = vrcp.f32 %v746_v44  ;;  %v1639_v16 = vmax.f32 %v6713_v52, %v1638_v37 }
 0x22d   :  { %8296 = vst [vmem:[#allocation12_spill] sm:$0xff] %v6864_v38  ;;  %8297 = vst [vmem:[#allocation15_spill] sm:$0xff] %v6866_v54  ;;  %v1626_v43 = vrot.slane %v6721_v19, 4  ;;  %v6870_v10 = vpop.f32.mrb[39].mxu0  ;;  %v6872_v34 = vpop.f32.mrb[29].mxu1  ;;  %v1328_v57 = vmax.f32 %v1326_v40, %v1327_v39  ;;  %v1312_v24 = vmax.f32 %v6733_v31, %v1311_v27  ;;  %v1645_v40 = vmax.f32 %v6729_v13, %v1644_v6 }
 0x22e   :  { %v1101_v25 = vadd.f32 %v1100_v28, %v1099_v1  ;;  %8298 = vst [vmem:[#allocation16_spill] sm:$0xff] %v6870_v10  ;;  %8299 = vst [vmem:[#allocation13_spill] sm:$0xff] %v6872_v34  ;;  %v6874_v60 = vpop.eup %5452  ;;  %v1088_v18 = vrot.slane %v1087_v14, 2  ;;  %v6878_v23 = vpop.f32.mrb[30].mxu1  ;;  %v1640_v28 = vrot.slane %v1639_v16, 2  ;;  %5464 = vrcp.f32 %v1085_v50 }
 0x22f   :  { %8300 = vst [vmem:[#allocation14_spill] sm:$0xff] %v6878_v23  ;;  %v1389_v1 = vrot.slane %v6874_v60, 4  ;;  %v1627_v37 = vmax.f32 %v6721_v19, %v1626_v43  ;;  %v6882_v36 = vpop.f32.mrb[31].mxu1  ;;  %v1356_v20 = vsub.f32 %v6727_v15, %v1328_v57  ;;  %v1313_v4 = vrot.slane %v1312_v24, 2  ;;  %v6887_v23 = vpop.eup %5454 }
 0x230   :  { %v1102_v44 = vrot.slane %v1101_v25, 1  ;;  %8301 = vst [vmem:[#allocation24_spill] sm:$0xff] %v6882_v36  ;;  %v1089_v35 = vadd.f32 %v1088_v18, %v1087_v14  ;;  %v1641_v22 = vmax.f32 %v1639_v16, %v1640_v28  ;;  %8302 = vst [vmem:[#allocation25_spill] sm:$0xff] %v6887_v23  ;;  %v6890_v36 = vadd.f32 %v1146_v41, %v6802_v11 }
 0x231   :  { %v1390_v27 = vadd.f32 %v6874_v60, %v1389_v1  ;;  %v1367_v10 = vmul.f32 1.442695, %v1356_v20  ;;  %v1314_v54 = vmax.f32 %v1312_v24, %v1313_v4  ;;  %v1628_v38 = vrot.slane %v1627_v37, 2 }
 0x232   :  { %v1103_v39 = vadd.f32 %v1102_v44, %v1101_v25  ;;  %v1090_v34 = vrot.slane %v1089_v35, 1  ;;  %8303 = vst [vmem:[#allocation26_spill] sm:$0xff] %v6890_v36  ;;  %v1377_v15 = vrot.slane %v6887_v23, 4  ;;  %v1642_v18 = vrot.slane %v1641_v22, 1 }
 0x233   :  { %v5457_v43 = vpop.eup %5456  ;;  %v1391_v14 = vrot.slane %v1390_v27, 2  ;;  %5466 = vpow2.f32 %v1367_v10  ;;  %v1315_v25 = vrot.slane %v1314_v54, 1  ;;  %v1646_v57 = vrot.slane %v1645_v40, 2 }
 0x234   :  { %v5459_v6 = vpop.eup %5458  ;;  %v1091_v50 = vadd.f32 %v1090_v34, %v1089_v35  ;;  %v6895_v44 = vmul.f32 %v6836_v51, %v6751_v53  ;;  %v1378_v4 = vadd.f32 %v6887_v23, %v1377_v15  ;;  %v1643_v24 = vmax.f32 %v1641_v22, %v1642_v18 }
 0x235   :  { %v5461_v16 = vpop.eup %5460  ;;  %v1392_v20 = vadd.f32 %v1391_v14, %v1390_v27  ;;  %v6899_v11 = vmul.f32 %v5457_v43, %v6792_v45  ;;  %5468 = vrcp.f32 %v1103_v39  ;;  %v1316_v41 = vmax.f32 %v1314_v54, %v1315_v25 }
 0x236   :  { %8304 = vst [vmem:[#allocation27_spill] sm:$0xff] %v6895_v44  ;;  %v1629_v1 = vmax.f32 %v1627_v37, %v1628_v38  ;;  %v5463_v28 = vpop.eup %5462  ;;  %v6902_v35 = vmul.f32 %v5459_v6, %v6799_v46  ;;  %v1379_v10 = vrot.slane %v1378_v4, 2  ;;  %v1676_v36 = vsub.f32 %v6713_v52, %v1643_v24 }
 0x237   :  { %8305 = vst [vmem:[#allocation28_spill] sm:$0xff] %v6899_v11  ;;  %v1393_v34 = vrot.slane %v1392_v20, 1  ;;  %5470 = vrcp.f32 %v1091_v50  ;;  %v1354_v53 = vsub.f32 %v6733_v31, %v1316_v41  ;;  %v1647_v27 = vmax.f32 %v1645_v40, %v1646_v57 }
 0x238   :  { %8306 = vst [vmem:[#allocation29_spill] sm:$0xff] %v6902_v35  ;;  %v1630_v51 = vrot.slane %v1629_v1, 1  ;;  %v1380_v14 = vadd.f32 %v1379_v10, %v1378_v4  ;;  %v1686_v45 = vmul.f32 1.442695, %v1676_v36  ;;  %v1632_v39 = vrot.slane %v6735_v33, 4  ;;  %v5465_v43 = vpop.eup %5464 }
 0x239   :  { %v1394_v22 = vadd.f32 %v1393_v34, %v1392_v20  ;;  %v1363_v54 = vmul.f32 1.442695, %v1354_v53  ;;  %v1648_v37 = vrot.slane %v1647_v27, 1  ;;  %v1341_v46 = vrot.slane %v6739_v8, 4 }
 0x23a   :  { %v1631_v38 = vmax.f32 %v1629_v1, %v1630_v51  ;;  %v6909_v15 = vmul.f32 %v5461_v16, %v6805_v26  ;;  %v1633_v52 = vmax.f32 %v6735_v33, %v1632_v39  ;;  %v1329_v31 = vrot.slane %v6743_v3, 4 }
 0x23b   :  { %5472 = vrcp.f32 %v1394_v22  ;;  %v1649_v36 = vmax.f32 %v1647_v27, %v1648_v37  ;;  %v1342_v18 = vmax.f32 %v6739_v8, %v1341_v46  ;;  %v1381_v6 = vrot.slane %v1380_v14, 1 }
 0x23c   :  { %8307 = vst [vmem:[#allocation30_spill] sm:$0xff] %v6909_v15  ;;  %5474 = vpow2.f32 %v1686_v45  ;;  %v1674_v40 = vsub.f32 %v6721_v19, %v1631_v38  ;;  %v1634_v50 = vrot.slane %v1633_v52, 2  ;;  %v1330_v25 = vmax.f32 %v6743_v3, %v1329_v31 }
 0x23d   :  { %5476 = vpow2.f32 %v1363_v54  ;;  %v6916_v57 = vpop.eup %5466  ;;  %v6919_v26 = vmul.f32 %v5463_v28, %v6808_v62  ;;  %v1677_v20 = vsub.f32 %v6729_v13, %v1649_v36  ;;  %v1343_v4 = vrot.slane %v1342_v18, 2 }
 0x23e   :  { %v1682_v16 = vmul.f32 1.442695, %v1674_v40  ;;  %v6923_v24 = vmul.f32 %v5465_v43, %v6815_v0  ;;  %v1395_v19 = vrot.slane %v6916_v57, 4  ;;  %v1635_v41 = vmax.f32 %v1633_v52, %v1634_v50 }
 0x23f   :  { %8308 = vst [vmem:[#allocation31_spill] sm:$0xff] %v6919_v26  ;;  %v1331_v1 = vrot.slane %v1330_v25, 2  ;;  %v5469_v34 = vpop.eup %5468  ;;  %v1688_v10 = vmul.f32 1.442695, %v1677_v20  ;;  %v1344_v53 = vmax.f32 %v1342_v18, %v1343_v4  ;;  %v1347_v51 = vrot.slane %v6747_v61, 4 }
 0x240   :  { %8309 = vst [vmem:[#allocation32_spill] sm:$0xff] %v6923_v24  ;;  %5478 = vpow2.f32 %v1682_v16  ;;  %v6927_v27 = vadd.f32 %v1381_v6, %v1380_v14  ;;  %v1396_v62 = vadd.f32 %v6916_v57, %v1395_v19  ;;  %v1636_v28 = vrot.slane %v1635_v41, 1 }
 0x241   :  { %v1332_v13 = vmax.f32 %v1330_v25, %v1331_v1  ;;  %v6930_v22 = vpop.eup %5470  ;;  %5480 = vpow2.f32 %v1688_v10  ;;  %v1345_v0 = vrot.slane %v1344_v53, 1  ;;  %v1348_v45 = vmax.f32 %v6747_v61, %v1347_v51 }
 0x242   :  { %v1662_v39 = vrot.slane %v6741_v7, 4  ;;  %v6934_v54 = vpop.f32.mrb[40].mxu0  ;;  %v1397_v38 = vrot.slane %v1396_v62, 2  ;;  %v1637_v37 = vmax.f32 %v1635_v41, %v1636_v28  ;;  %v1335_v14 = vrot.slane %v6755_v49, 4 }
 0x243   :  { %v1333_v46 = vrot.slane %v1332_v13, 1  ;;  %v6937_v43 = vpop.f32.mrb[41].mxu0  ;;  %v6940_v52 = vmul.f32 %v5469_v34, %v6844_v32  ;;  %v1346_v31 = vmax.f32 %v1344_v53, %v1345_v0  ;;  %v1349_v40 = vrot.slane %v1348_v45, 2 }
 0x244   :  { %v1663_v36 = vmax.f32 %v6741_v7, %v1662_v39  ;;  %v6943_v18 = vpop.f32.mrb[42].mxu0  ;;  %v6945_v6 = vpop.f32.mrb[32].mxu1  ;;  %v1398_v25 = vadd.f32 %v1397_v38, %v1396_v62  ;;  %v1675_v16 = vsub.f32 %v6735_v33, %v1637_v37  ;;  %v1336_v4 = vmax.f32 %v6755_v49, %v1335_v14 }
 0x245   :  { %8310 = vst [vmem:[#allocation33_spill] sm:$0xff] %v6940_v52  ;;  %v5473_v50 = vpop.eup %5472  ;;  %v1334_v20 = vmax.f32 %v1332_v13, %v1333_v46  ;;  %v6949_v19 = vpop.f32.mrb[43].mxu0  ;;  %v1359_v34 = vsub.f32 %v6739_v8, %v1346_v31  ;;  %v1350_v10 = vmax.f32 %v1348_v45, %v1349_v40 }
 0x246   :  { %v6951_v41 = vpop.f32.mrb[33].mxu1  ;;  %v6953_v32 = vpop.eup %5474  ;;  %v1435_v1 = vmul.f32 %v5473_v50, %v6874_v60  ;;  %v1664_v53 = vrot.slane %v1663_v36, 2  ;;  %v1399_v33 = vrot.slane %v1398_v25, 1  ;;  %v1684_v13 = vmul.f32 1.442695, %v1675_v16 }
 0x247   :  { %v6957_v51 = vpop.f32.mrb[34].mxu1  ;;  %v6959_v62 = vpop.eup %5476  ;;  %v1710_v28 = vrot.slane %v6953_v32, 4  ;;  %v1357_v0 = vsub.f32 %v6743_v3, %v1334_v20  ;;  %v1373_v8 = vmul.f32 1.442695, %v1359_v34  ;;  %v1351_v45 = vrot.slane %v1350_v10, 1 }
 0x248   :  { %8311 = vst [vmem:[#allocation34_spill] sm:$0xff] %v6959_v62  ;;  %v6963_v39 = vpop.f32.mrb[35].mxu1  ;;  %v6966_v38 = vmul.f32 %v1435_v1, %v6459_v2  ;;  %v1383_v60 = vrot.slane %v6959_v62, 4  ;;  %v1400_v37 = vadd.f32 %v1399_v33, %v1398_v25  ;;  %5482 = vpow2.f32 %v1684_v13 }
 0x249   :  { %v1711_v46 = vadd.f32 %v6953_v32, %v1710_v28  ;;  %v1369_v14 = vmul.f32 1.442695, %v1357_v0  ;;  %5484 = vpow2.f32 %v1373_v8  ;;  %v1352_v3 = vmax.f32 %v1350_v10, %v1351_v45 }
 0x24a   :  { %8312 = vst [vmem:[#allocation35_spill] sm:$0xff] %v6966_v38  ;;  %v6970_v31 = vpop.eup %5478  ;;  %v1384_v40 = vadd.f32 %v6959_v62, %v1383_v60  ;;  %v1650_v50 = vrot.slane %v6745_v42, 4  ;;  %v6974_v16 = vpop.f32.mrb[44].mxu0  ;;  %5486 = vrcp.f32 %v1400_v37  ;;  %v1665_v34 = vmax.f32 %v1663_v36, %v1664_v53 }
 0x24b   :  { %8313 = vst [vmem:[#allocation36_spill] sm:$0xff] %v6970_v31  ;;  %v1712_v20 = vrot.slane %v1711_v46, 2  ;;  %v1698_v1 = vrot.slane %v6970_v31, 4  ;;  %v6977_v25 = vpop.f32.mrb[45].mxu0  ;;  %v6979_v33 = vpop.eup %5480  ;;  %5488 = vpow2.f32 %v1369_v14  ;;  %v1360_v13 = vsub.f32 %v6747_v61, %v1352_v3 }
 0x24c   :  { %v1385_v28 = vrot.slane %v1384_v40, 2  ;;  %v1337_v0 = vrot.slane %v1336_v4, 2  ;;  %v6982_v60 = vpop.f32.mrb[46].mxu0  ;;  %v6984_v10 = vpop.f32.mrb[36].mxu1  ;;  %v1716_v37 = vrot.slane %v6979_v33, 4  ;;  %v1666_v52 = vrot.slane %v1665_v34, 1 }
 0x24d   :  { %v1713_v8 = vadd.f32 %v1712_v20, %v1711_v46  ;;  %v1699_v45 = vadd.f32 %v6970_v31, %v1698_v1  ;;  %v6988_v36 = vpop.f32.mrb[47].mxu0  ;;  %v6990_v53 = vpop.f32.mrb[37].mxu1  ;;  %v1375_v35 = vmul.f32 1.442695, %v1360_v13  ;;  %v1651_v61 = vmax.f32 %v6745_v42, %v1650_v50 }
 0x24e   :  { %v1386_v15 = vadd.f32 %v1385_v28, %v1384_v40  ;;  %v1338_v14 = vmax.f32 %v1336_v4, %v1337_v0  ;;  %v6993_v3 = vpop.f32.mrb[38].mxu1  ;;  %v1717_v46 = vadd.f32 %v6979_v33, %v1716_v37  ;;  %v1667_v20 = vmax.f32 %v1665_v34, %v1666_v52 }
 0x24f   :  { %v1714_v44 = vrot.slane %v1713_v8, 1  ;;  %v1700_v24 = vrot.slane %v1699_v45, 2  ;;  %v6996_v1 = vpop.f32.mrb[39].mxu1  ;;  %5490 = vpow2.f32 %v1375_v35  ;;  %v1652_v31 = vrot.slane %v1651_v61, 2 }
 0x250   :  { %v1387_v26 = vrot.slane %v1386_v15, 1  ;;  %v1339_v11 = vrot.slane %v1338_v14, 1  ;;  %v1718_v40 = vrot.slane %v1717_v46, 2  ;;  %v1680_v4 = vsub.f32 %v6741_v7, %v1667_v20 }
 0x251   :  { %v1715_v62 = vadd.f32 %v1714_v44, %v1713_v8  ;;  %v1701_v23 = vadd.f32 %v1700_v24, %v1699_v45  ;;  %v7001_v50 = vmul.f32 %v6930_v22, %v6852_v47  ;;  %5492 = vrcp.f32 %v6927_v27 }
 0x252   :  { %v1340_v28 = vmax.f32 %v1338_v14, %v1339_v11  ;;  %v1653_v13 = vmax.f32 %v1651_v61, %v1652_v31  ;;  %v7004_v52 = vpop.eup %5482  ;;  %v1388_v34 = vadd.f32 %v1387_v26, %v1386_v15  ;;  %v1719_v35 = vadd.f32 %v1718_v40, %v1717_v46 }
 0x253   :  { %8314 = vst [vmem:[#allocation37_spill] sm:$0xff] %v7001_v50  ;;  %5494 = vrcp.f32 %v1715_v62  ;;  %v1694_v0 = vmul.f32 1.442695, %v1680_v4  ;;  %v7006_v37 = vpop.eup %5484  ;;  %v1704_v44 = vrot.slane %v7004_v52, 4  ;;  %v1668_v47 = vrot.slane %v6749_v56, 4 }
 0x254   :  { %8315 = vst [vmem:[#allocation38_spill] sm:$0xff] %v7006_v37  ;;  %v1358_v7 = vsub.f32 %v6755_v49, %v1340_v28  ;;  %v1654_v24 = vrot.slane %v1653_v13, 1  ;;  %v5487_v22 = vpop.eup %5486  ;;  %v1702_v8 = vrot.slane %v1701_v23, 1  ;;  %v1720_v27 = vrot.slane %v1719_v35, 1 }
 0x255   :  { %v1413_v11 = vrot.slane %v7006_v37, 4  ;;  %5496 = vpow2.f32 %v1694_v0  ;;  %v7012_v31 = vpop.eup %5488  ;;  %v1436_v15 = vmul.f32 %v5487_v22, %v6916_v57  ;;  %v1705_v26 = vadd.f32 %v7004_v52, %v1704_v44 }
 0x256   :  { %8316 = vst [vmem:[#allocation39_spill] sm:$0xff] %v7012_v31  ;;  %v1371_v62 = vmul.f32 1.442695, %v1358_v7  ;;  %v1655_v45 = vmax.f32 %v1653_v13, %v1654_v24  ;;  %5498 = vrcp.f32 %v1388_v34  ;;  %v1721_v14 = vadd.f32 %v1720_v27, %v1719_v35 }
 0x257   :  { %v1414_v49 = vadd.f32 %v7006_v37, %v1413_v11  ;;  %v1401_v61 = vrot.slane %v7012_v31, 4  ;;  %v7019_v46 = vmul.f32 %v1436_v15, %v6473_v58  ;;  %v1706_v20 = vrot.slane %v1705_v26, 2 }
 0x258   :  { %5500 = vpow2.f32 %v1371_v62  ;;  %v1678_v40 = vsub.f32 %v6745_v42, %v1655_v45  ;;  %v1669_v28 = vmax.f32 %v6749_v56, %v1668_v47  ;;  %v1703_v34 = vadd.f32 %v1702_v8, %v1701_v23 }
 0x259   :  { %8317 = vst [vmem:[#allocation40_spill] sm:$0xff] %v7019_v46  ;;  %5502 = vrcp.f32 %v1721_v14  ;;  %v1415_v4 = vrot.slane %v1414_v49, 2  ;;  %v1402_v57 = vadd.f32 %v7012_v31, %v1401_v61  ;;  %v7024_v13 = vpop.eup %5490  ;;  %v1707_v35 = vadd.f32 %v1706_v20, %v1705_v26 }
 0x25a   :  { %8318 = vst [vmem:[#allocation41_spill] sm:$0xff] %v7024_v13  ;;  %v1690_v0 = vmul.f32 1.442695, %v1678_v40  ;;  %v1656_v44 = vrot.slane %v6757_v12, 4  ;;  %v1419_v22 = vrot.slane %v7024_v13, 4  ;;  %v1670_v27 = vrot.slane %v1669_v28, 2 }
 0x25b   :  { %v1416_v7 = vadd.f32 %v1415_v4, %v1414_v49  ;;  %v1403_v24 = vrot.slane %v1402_v57, 2  ;;  %v7028_v11 = vpop.eup %5492  ;;  %v1708_v42 = vrot.slane %v1707_v35, 1  ;;  %v1959_v47 = vrot.slane %v6825_v30, 4 }
 0x25c   :  { %5504 = vpow2.f32 %v1690_v0  ;;  %v1657_v15 = vmax.f32 %v6757_v12, %v1656_v44  ;;  %v1420_v8 = vadd.f32 %v7024_v13, %v1419_v22  ;;  %v1671_v26 = vmax.f32 %v1669_v28, %v1670_v27 }
 0x25d   :  { %v5495_v62 = vpop.eup %5494  ;;  %v1417_v45 = vrot.slane %v1416_v7, 1  ;;  %v1404_v23 = vadd.f32 %v1403_v24, %v1402_v57  ;;  %v1709_v49 = vadd.f32 %v1708_v42, %v1707_v35  ;;  %v1960_v20 = vmax.f32 %v6825_v30, %v1959_v47 }
 0x25e   :  { %v1756_v14 = vmul.f32 %v5495_v62, %v6953_v32  ;;  %v1658_v61 = vrot.slane %v1657_v15, 2  ;;  %v1421_v37 = vrot.slane %v1420_v8, 2  ;;  %v1672_v44 = vrot.slane %v1671_v26, 1 }
 0x25f   :  { %v7035_v40 = vpop.eup %5496  ;;  %v1418_v4 = vadd.f32 %v1417_v45, %v1416_v7  ;;  %v1405_v0 = vrot.slane %v1404_v23, 1  ;;  %5506 = vrcp.f32 %v1703_v34  ;;  %v1961_v47 = vrot.slane %v1960_v20, 2 }
 0x260   :  { %8319 = vst [vmem:[#allocation42_spill] sm:$0xff] %v7035_v40  ;;  %v7038_v31 = vmul.f32 %v1756_v14, %v6459_v2  ;;  %v1734_v57 = vrot.slane %v7035_v40, 4  ;;  %v1659_v24 = vmax.f32 %v1657_v15, %v1658_v61  ;;  %v7041_v28 = vpop.eup %5498  ;;  %5508 = vrcp.f32 %v1709_v49 }
 0x261   :  { %v1406_v32 = vadd.f32 %v1405_v0, %v1404_v23  ;;  %v1422_v35 = vadd.f32 %v1421_v37, %v1420_v8  ;;  %v1673_v22 = vmax.f32 %v1671_v26, %v1672_v44  ;;  %v1947_v62 = vrot.slane %v6829_v17, 4 }
 0x262   :  { %8320 = vst [vmem:[#allocation43_spill] sm:$0xff] %v7038_v31  ;;  %v7043_v27 = vpop.eup %5500  ;;  %v1735_v7 = vadd.f32 %v7035_v40, %v1734_v57  ;;  %v1660_v42 = vrot.slane %v1659_v24, 1  ;;  %5510 = vrcp.f32 %v1418_v4  ;;  %v1962_v8 = vmax.f32 %v1960_v20, %v1961_v47 }
 0x263   :  { %8321 = vst [vmem:[#allocation44_spill] sm:$0xff] %v7043_v27  ;;  %v5503_v45 = vpop.eup %5502  ;;  %v1423_v34 = vrot.slane %v1422_v35, 1  ;;  %v1407_v14 = vrot.slane %v7043_v27, 4  ;;  %v1681_v15 = vsub.f32 %v6749_v56, %v1673_v22  ;;  %5512 = vrcp.f32 %v1406_v32 }
 0x264   :  { %v1757_v49 = vmul.f32 %v5503_v45, %v6979_v33  ;;  %v1736_v23 = vrot.slane %v1735_v7, 2  ;;  %v1661_v37 = vmax.f32 %v1659_v24, %v1660_v42  ;;  %v1948_v0 = vmax.f32 %v6829_v17, %v1947_v62 }
 0x265   :  { %v1408_v26 = vadd.f32 %v7043_v27, %v1407_v14  ;;  %v1696_v61 = vmul.f32 1.442695, %v1681_v15  ;;  %v1963_v56 = vrot.slane %v1962_v8, 1  ;;  %v1424_v22 = vadd.f32 %v1423_v34, %v1422_v35 }
 0x266   :  { %v7052_v44 = vpop.eup %5504  ;;  %v7055_v4 = vmul.f32 %v1757_v49, %v6473_v58  ;;  %v1737_v57 = vadd.f32 %v1736_v23, %v1735_v7  ;;  %v1679_v40 = vsub.f32 %v6757_v12, %v1661_v37  ;;  %v1949_v20 = vrot.slane %v1948_v0, 2 }
 0x267   :  { %8322 = vst [vmem:[#allocation45_spill] sm:$0xff] %v7052_v44  ;;  %v1409_v33 = vrot.slane %v1408_v26, 2  ;;  %v1722_v24 = vrot.slane %v7052_v44, 4  ;;  %5514 = vpow2.f32 %v1696_v61  ;;  %v1964_v47 = vmax.f32 %v1962_v8, %v1963_v56 }
 0x268   :  { %8323 = vst [vmem:[#allocation46_spill] sm:$0xff] %v7055_v4  ;;  %v1738_v32 = vrot.slane %v1737_v57, 1  ;;  %v1692_v42 = vmul.f32 1.442695, %v1679_v40  ;;  %v1950_v14 = vmax.f32 %v1948_v0, %v1949_v20  ;;  %v1965_v15 = vrot.slane %v6832_v29, 4 }
 0x269   :  { %v1410_v45 = vadd.f32 %v1409_v33, %v1408_v26  ;;  %v1723_v62 = vadd.f32 %v7052_v44, %v1722_v24  ;;  %v7061_v49 = vpop.eup %5506  ;;  %v1997_v35 = vsub.f32 %v6825_v30, %v1964_v47  ;;  %v2280_v7 = vrot.slane %v6834_v48, 4 }
 0x26a   :  { %5516 = vpow2.f32 %v1692_v42  ;;  %v7066_v34 = vpop.eup %5508  ;;  %v1739_v23 = vadd.f32 %v1738_v32, %v1737_v57  ;;  %v1951_v37 = vrot.slane %v1950_v14, 1  ;;  %v1966_v8 = vmax.f32 %v6832_v29, %v1965_v15  ;;  %v5350_v57 = vld [vmem:[%s8143_s3] sm:$0xff]  }
 0x26b   :  { %v1724_v40 = vrot.slane %v1723_v62, 2  ;;  %v1411_v26 = vrot.slane %v1410_v45, 1  ;;  %v2007_v61 = vmul.f32 1.442695, %v1997_v35  ;;  %v2281_v0 = vmax.f32 %v6834_v48, %v2280_v7  ;;  %4961 = vmatprep.subr.bf16.mxu0 %v5350_v57 }
 0x26c   :  { %v1953_v56 = vrot.slane %v6840_v63, 4  ;;  %v7071_v33 = vpop.eup %5510  ;;  %5518 = vrcp.f32 %v1424_v22  ;;  %v1952_v30 = vmax.f32 %v1950_v14, %v1951_v37  ;;  %v1967_v20 = vrot.slane %v1966_v8, 2  ;;  %4962 = vmatpush3.bf16.msra.mxu0 %v5350_v57 }
 0x26d   :  { %8324 = vst [vmem:[#allocation47_spill] sm:$0xff] %v7071_v33  ;;  %v1725_v24 = vadd.f32 %v1724_v40, %v1723_v62  ;;  %5520 = vpow2.f32 %v2007_v61  ;;  %v2282_v32 = vrot.slane %v2281_v0, 2  ;;  %v2268_v47 = vrot.slane %v6842_v9, 4  ;;  %v7078_v15 = vpop.eup %5512  ;;  %v5351_v61 = vld [vmem:[%s8143_s3 + $0x8] sm:$0xff]  }
 0x26e   :  { %v1954_v42 = vmax.f32 %v6840_v63, %v1953_v56  ;;  %8325 = vst [vmem:[#allocation48_spill] sm:$0xff] %v7078_v15  ;;  %5522 = vrcp.f32 %v1739_v23  ;;  %v1995_v7 = vsub.f32 %v6829_v17, %v1952_v30  ;;  %v1968_v22 = vmax.f32 %v1966_v8, %v1967_v20  ;;  %v5352_v23 = vld [vmem:[%s8143_s3 + $0x10] sm:$0xff]   ;;  %4963 = vmatprep.subr.bf16.mxu0 %v5351_v61 }
 0x26f   :  { %v1726_v35 = vrot.slane %v1725_v24, 1  ;;  %v2283_v62 = vmax.f32 %v2281_v0, %v2282_v32  ;;  %v2269_v40 = vmax.f32 %v6842_v9, %v2268_v47  ;;  %v2286_v37 = vrot.slane %v6847_v21, 4 }
 0x270   :  { %v1955_v14 = vrot.slane %v1954_v42, 2  ;;  %v1412_v56 = vadd.f32 %v1411_v26, %v1410_v45  ;;  %v2003_v12 = vmul.f32 1.442695, %v1995_v7  ;;  %v1969_v17 = vrot.slane %v1968_v22, 1  ;;  %4964 = vmatpush3.bf16.msra.mxu0 %v5351_v61 }
 0x271   :  { %v2274_v8 = vrot.slane %v6850_v59, 4  ;;  %v7090_v0 = vpop.eup %5514  ;;  %v2284_v30 = vrot.slane %v2283_v62, 1  ;;  %v2270_v32 = vrot.slane %v2269_v40, 2  ;;  %v2287_v57 = vmax.f32 %v6847_v21, %v2286_v37  ;;  %4965 = vmatprep.subr.bf16.mxu0 %v5352_v23 }
 0x272   :  { %8326 = vst [vmem:[#allocation49_spill] sm:$0xff] %v7090_v0  ;;  %v1956_v20 = vmax.f32 %v1954_v42, %v1955_v14  ;;  %v1727_v47 = vadd.f32 %v1726_v35, %v1725_v24  ;;  %v1740_v13 = vrot.slane %v7090_v0, 4  ;;  %v1970_v33 = vmax.f32 %v1968_v22, %v1969_v17  ;;  %v5353_v42 = vld [vmem:[%s8143_s3 + $0x18] sm:$0xff]  }
 0x273   :  { %v2275_v44 = vmax.f32 %v6850_v59, %v2274_v8  ;;  %5524 = vpow2.f32 %v2003_v12  ;;  %v2285_v45 = vmax.f32 %v2283_v62, %v2284_v30  ;;  %v2271_v7 = vmax.f32 %v2269_v40, %v2270_v32 }
 0x274   :  { %v7095_v27 = vpop.eup %5516  ;;  %v1957_v26 = vrot.slane %v1956_v20, 1  ;;  %v1741_v14 = vadd.f32 %v7090_v0, %v1740_v13  ;;  %v1998_v35 = vsub.f32 %v6832_v29, %v1970_v33  ;;  %v2288_v22 = vrot.slane %v2287_v57, 2  ;;  %4966 = vmatpush3.bf16.msra.mxu0 %v5352_v23 }
 0x275   :  { %8327 = vst [vmem:[#allocation50_spill] sm:$0xff] %v7095_v27  ;;  %v1728_v24 = vrot.slane %v7095_v27, 4  ;;  %v2318_v37 = vsub.f32 %v6834_v48, %v2285_v45  ;;  %v2272_v12 = vrot.slane %v2271_v7, 1  ;;  %v2276_v62 = vrot.slane %v2275_v44, 2  ;;  %4967 = vmatprep.subr.bf16.mxu0 %v5353_v42 }
 0x276   :  { %v1958_v17 = vmax.f32 %v1956_v20, %v1957_v26  ;;  %v7104_v8 = vpop.eup %5518  ;;  %v1742_v40 = vrot.slane %v1741_v14, 2  ;;  %v2009_v30 = vmul.f32 1.442695, %v1998_v35  ;;  %v2289_v32 = vmax.f32 %v2287_v57, %v2288_v22  ;;  %v5354_v57 = vld [vmem:[%s8143_s3 + $0x20] sm:$0xff]  }
 0x277   :  { %8328 = vst [vmem:[#allocation51_spill] sm:$0xff] %v7104_v8  ;;  %v1729_v61 = vadd.f32 %v7095_v27, %v1728_v24  ;;  %v7107_v15 = vpop.eup %5520  ;;  %v2328_v13 = vmul.f32 1.442695, %v2318_v37  ;;  %v2273_v29 = vmax.f32 %v2271_v7, %v2272_v12  ;;  %v2277_v33 = vmax.f32 %v2275_v44, %v2276_v62 }
 0x278   :  { %v1996_v0 = vsub.f32 %v6840_v63, %v1958_v17  ;;  %v7110_v50 = vpop.eup %5522  ;;  %v1743_v48 = vadd.f32 %v1742_v40, %v1741_v14  ;;  %v2031_v45 = vrot.slane %v7107_v15, 4  ;;  %5526 = vpow2.f32 %v2009_v30  ;;  %4968 = vmatpush3.bf16.msra.mxu0 %v5353_v42 }
 0x279   :  { %8329 = vst [vmem:[#allocation52_spill] sm:$0xff] %v7110_v50  ;;  %v1730_v20 = vrot.slane %v1729_v61, 2  ;;  %5528 = vpow2.f32 %v2328_v13  ;;  %v2316_v24 = vsub.f32 %v6842_v9, %v2273_v29  ;;  %v2290_v63 = vrot.slane %v2289_v32, 1  ;;  %4969 = vmatprep.subr.bf16.mxu0 %v5354_v57  ;;  %v5355_v9 = vld [vmem:[%s8143_s3 + $0x28] sm:$0xff]  }
 0x27a   :  { %v2005_v26 = vmul.f32 1.442695, %v1996_v0  ;;  %v1744_v7 = vrot.slane %v1743_v48, 1  ;;  %v2032_v23 = vadd.f32 %v7107_v15, %v2031_v45  ;;  %v2278_v14 = vrot.slane %v2277_v33, 1  ;;  %v8330_v45 = vld [vmem:[#allocation12_spill] sm:$0xff] }
 0x27b   :  { %v7117_v44 = vadd.f32 %v1730_v20, %v1729_v61  ;;  %v2324_v35 = vmul.f32 1.442695, %v2316_v24  ;;  %v2291_v22 = vmax.f32 %v2289_v32, %v2290_v63  ;;  %v1983_v37 = vrot.slane %v6856_v55, 4 }
 0x27c   :  { %5530 = vpow2.f32 %v2005_v26  ;;  %v1745_v17 = vadd.f32 %v1744_v7, %v1743_v48  ;;  %v2033_v12 = vrot.slane %v2032_v23, 2  ;;  %v2279_v62 = vmax.f32 %v2277_v33, %v2278_v14  ;;  %4970 = vmatpush3.bf16.msra.mxu0 %v5354_v57 }
 0x27d   :  { %5532 = vrcp.f32 %v1412_v56  ;;  %v7124_v0 = vpop.eup %5524  ;;  %v2319_v40 = vsub.f32 %v6847_v21, %v2291_v22  ;;  %v1984_v61 = vmax.f32 %v6856_v55, %v1983_v37  ;;  %v1971_v30 = vrot.slane %v6860_v5, 4  ;;  %4971 = vmatprep.subr.bf16.mxu0 %v5355_v9 }
 0x27e   :  { %5534 = vpow2.f32 %v2324_v35  ;;  %v1732_v56 = vrot.slane %v7117_v44, 1  ;;  %v2034_v42 = vadd.f32 %v2033_v12, %v2032_v23  ;;  %v2019_v32 = vrot.slane %v7124_v0, 4  ;;  %v8331_v35 = vld [vmem:[#allocation15_spill] sm:$0xff] }
 0x27f   :  { %5536 = vrcp.f32 %v1727_v47  ;;  %v2330_v13 = vmul.f32 1.442695, %v2319_v40  ;;  %v2317_v29 = vsub.f32 %v6850_v59, %v2279_v62  ;;  %v1985_v33 = vrot.slane %v1984_v61, 2  ;;  %v5356_v47 = vld [vmem:[%s8143_s3 + $0x30] sm:$0xff]  }
 0x280   :  { %v1972_v48 = vmax.f32 %v6860_v5, %v1971_v30  ;;  %5538 = vrcp.f32 %v1745_v17  ;;  %v2035_v20 = vrot.slane %v2034_v42, 1  ;;  %v2020_v21 = vadd.f32 %v7124_v0, %v2019_v32  ;;  %4972 = vmatpush3.bf16.msra.mxu0 %v5355_v9 }
 0x281   :  { %v1989_v26 = vrot.slane %v8330_v45, 4  ;;  %5540 = vpow2.f32 %v2330_v13  ;;  %v2326_v24 = vmul.f32 1.442695, %v2317_v29  ;;  %v1986_v63 = vmax.f32 %v1984_v61, %v1985_v33  ;;  %4973 = vmatprep.subr.bf16.mxu0 %v5356_v47 }
 0x282   :  { %v1973_v7 = vrot.slane %v1972_v48, 2  ;;  %v7138_v59 = vpop.eup %5526  ;;  %v2036_v23 = vadd.f32 %v2035_v20, %v2034_v42  ;;  %v2021_v14 = vrot.slane %v2020_v21, 2  ;;  %v2304_v22 = vrot.slane %v8331_v35, 4  ;;  %v5357_v42 = vld [vmem:[%s8143_s3 + $0x38] sm:$0xff]  }
 0x283   :  { %v1990_v57 = vmax.f32 %v8330_v45, %v1989_v26  ;;  %v7142_v37 = vpop.eup %5528  ;;  %v2037_v17 = vrot.slane %v7138_v59, 4  ;;  %5542 = vpow2.f32 %v2326_v24  ;;  %v1987_v12 = vrot.slane %v1986_v63, 1 }
 0x284   :  { %v1974_v62 = vmax.f32 %v1972_v48, %v1973_v7  ;;  %5544 = vrcp.f32 %v2036_v23  ;;  %v2022_v40 = vadd.f32 %v2021_v14, %v2020_v21  ;;  %v2352_v61 = vrot.slane %v7142_v37, 4  ;;  %4974 = vmatpush3.bf16.msra.mxu0 %v5356_v47 }
 0x285   :  { %v1991_v30 = vrot.slane %v1990_v57, 2  ;;  %v2038_v13 = vadd.f32 %v7138_v59, %v2037_v17  ;;  %v1988_v29 = vmax.f32 %v1986_v63, %v1987_v12  ;;  %v2305_v20 = vmax.f32 %v8331_v35, %v2304_v22  ;;  %4975 = vmatprep.subr.bf16.mxu0 %v5357_v42 }
 0x286   :  { %v7149_v32 = vpop.eup %5530  ;;  %v1975_v33 = vrot.slane %v1974_v62, 1  ;;  %v2023_v9 = vrot.slane %v2022_v40, 1  ;;  %v2353_v21 = vadd.f32 %v7142_v37, %v2352_v61  ;;  %v1733_v23 = vadd.f32 %v1732_v56, %v7117_v44 }
 0x287   :  { %v7153_v48 = vpop.eup %5532  ;;  %v2025_v26 = vrot.slane %v7149_v32, 4  ;;  %v1992_v24 = vmax.f32 %v1990_v57, %v1991_v30  ;;  %v2039_v14 = vrot.slane %v2038_v13, 2  ;;  %v2001_v50 = vsub.f32 %v6856_v55, %v1988_v29 }
 0x288   :  { %8332 = vst [vmem:[#allocation12_spill] sm:$0xff] %v7153_v48  ;;  %v7157_v7 = vpop.eup %5534  ;;  %v1976_v17 = vmax.f32 %v1974_v62, %v1975_v33  ;;  %v2354_v22 = vrot.slane %v2353_v21, 2  ;;  %v2306_v61 = vrot.slane %v2305_v20, 2  ;;  %v2024_v56 = vadd.f32 %v2023_v9, %v2022_v40  ;;  %4976 = vmatpush3.bf16.msra.mxu0 %v5357_v42 }
 0x289   :  { %v7161_v63 = vpop.eup %5536  ;;  %v2026_v12 = vadd.f32 %v7149_v32, %v2025_v26  ;;  %v2340_v8 = vrot.slane %v7157_v7, 4  ;;  %v2040_v27 = vadd.f32 %v2039_v14, %v2038_v13  ;;  %v2015_v57 = vmul.f32 1.442695, %v2001_v50 }
 0x28a   :  { %8333 = vst [vmem:[#allocation15_spill] sm:$0xff] %v7161_v63  ;;  %v1999_v30 = vsub.f32 %v6860_v5, %v1976_v17  ;;  %v1993_v48 = vrot.slane %v1992_v24, 1  ;;  %v7166_v44 = vpop.eup %5538  ;;  %v2355_v55 = vadd.f32 %v2354_v22, %v2353_v21  ;;  %v2307_v9 = vmax.f32 %v2305_v20, %v2306_v61  ;;  %v8336_v20 = vld [vmem:[#allocation16_spill] sm:$0xff]  ;;  %v8338_v61 = vld [vmem:[#allocation13_spill] sm:$0xff] }
 0x28b   :  { %8334 = vst [vmem:[#allocation53_spill] sm:$0xff] %v7166_v44  ;;  %v2027_v62 = vrot.slane %v2026_v12, 2  ;;  %v2341_v47 = vadd.f32 %v7157_v7, %v2340_v8  ;;  %v7169_v29 = vpop.eup %5540  ;;  %v2041_v33 = vrot.slane %v2040_v27, 1  ;;  %5546 = vpow2.f32 %v2015_v57 }
 0x28c   :  { %v2011_v26 = vmul.f32 1.442695, %v1999_v30  ;;  %v1994_v63 = vmax.f32 %v1992_v24, %v1993_v48  ;;  %v2356_v58 = vrot.slane %v2355_v55, 1  ;;  %v2358_v5 = vrot.slane %v7169_v29, 4 }
 0x28d   :  { %v2028_v13 = vadd.f32 %v2027_v62, %v2026_v12  ;;  %v2342_v50 = vrot.slane %v2341_v47, 2  ;;  %v7172_v14 = vpop.eup %5542  ;;  %v2042_v17 = vadd.f32 %v2041_v33, %v2040_v27 }
 0x28e   :  { %8335 = vst [vmem:[#allocation54_spill] sm:$0xff] %v7172_v14  ;;  %5548 = vpow2.f32 %v2011_v26  ;;  %v2002_v40 = vsub.f32 %v8330_v45, %v1994_v63  ;;  %v5545_v8 = vpop.eup %5544  ;;  %v2357_v21 = vadd.f32 %v2356_v58, %v2355_v55  ;;  %v2359_v57 = vadd.f32 %v7169_v29, %v2358_v5 }
 0x28f   :  { %5550 = vrcp.f32 %v1733_v23  ;;  %v2029_v22 = vrot.slane %v2028_v13, 1  ;;  %v2346_v48 = vrot.slane %v7172_v14, 4  ;;  %v2343_v30 = vadd.f32 %v2342_v50, %v2341_v47 }
 0x290   :  { %5552 = vrcp.f32 %v2024_v56  ;;  %v2017_v24 = vmul.f32 1.442695, %v2002_v40  ;;  %v2360_v27 = vrot.slane %v2359_v57, 2  ;;  %v2308_v45 = vrot.slane %v2307_v9, 1  ;;  %v8340_v40 = vld [vmem:[#allocation24_spill] sm:$0xff] }
 0x291   :  { %5554 = vrcp.f32 %v2042_v17  ;;  %v2030_v12 = vadd.f32 %v2029_v22, %v2028_v13  ;;  %v2347_v62 = vadd.f32 %v7172_v14, %v2346_v48  ;;  %v1977_v23 = vrot.slane %v8336_v20, 4  ;;  %v8339_v13 = vld [vmem:[#allocation14_spill] sm:$0xff] }
 0x292   :  { %5556 = vpow2.f32 %v2017_v24  ;;  %v7181_v58 = vmul.f32 %v5545_v8, %v7107_v15  ;;  %v2361_v63 = vadd.f32 %v2360_v27, %v2359_v57  ;;  %v2292_v56 = vrot.slane %v8338_v61, 4 }
 0x293   :  { %5558 = vrcp.f32 %v2357_v21  ;;  %v2348_v55 = vrot.slane %v2347_v62, 2  ;;  %v2309_v33 = vmax.f32 %v2307_v9, %v2308_v45  ;;  %v1978_v26 = vmax.f32 %v8336_v20, %v1977_v23 }
 0x294   :  { %8337 = vst [vmem:[#allocation16_spill] sm:$0xff] %v7181_v58  ;;  %v2310_v47 = vrot.slane %v8339_v13, 4  ;;  %v2344_v50 = vrot.slane %v2343_v30, 1  ;;  %v2362_v5 = vrot.slane %v2361_v63, 1  ;;  %v2293_v17 = vmax.f32 %v8338_v61, %v2292_v56 }
 0x295   :  { %v2298_v22 = vrot.slane %v8340_v40, 4  ;;  %v7188_v48 = vpop.eup %5546  ;;  %5560 = vrcp.f32 %v2030_v12  ;;  %v2322_v15 = vsub.f32 %v8331_v35, %v2309_v33  ;;  %v1979_v8 = vrot.slane %v1978_v26, 2 }
 0x296   :  { %8341 = vst [vmem:[#allocation13_spill] sm:$0xff] %v7188_v48  ;;  %v2311_v21 = vmax.f32 %v8339_v13, %v2310_v47  ;;  %v2363_v57 = vadd.f32 %v2362_v5, %v2361_v63  ;;  %v2349_v9 = vadd.f32 %v2348_v55, %v2347_v62  ;;  %v2055_v24 = vrot.slane %v7188_v48, 4 }
 0x297   :  { %v2294_v27 = vrot.slane %v2293_v17, 2  ;;  %v2336_v23 = vmul.f32 1.442695, %v2322_v15  ;;  %v1980_v42 = vmax.f32 %v1978_v26, %v1979_v8  ;;  %v2299_v44 = vmax.f32 %v8340_v40, %v2298_v22 }
 0x298   :  { %v7193_v45 = vpop.eup %5548  ;;  %v2312_v56 = vrot.slane %v2311_v21, 2  ;;  %v7198_v12 = vadd.f32 %v2344_v50, %v2343_v30  ;;  %v2056_v35 = vadd.f32 %v7188_v48, %v2055_v24  ;;  %v2601_v5 = vrot.slane %v6934_v54, 4 }
 0x299   :  { %8342 = vst [vmem:[#allocation14_spill] sm:$0xff] %v7193_v45  ;;  %v7196_v58 = vpop.eup %5550  ;;  %v2043_v33 = vrot.slane %v7193_v45, 4  ;;  %v2295_v63 = vmax.f32 %v2293_v17, %v2294_v27  ;;  %5562 = vpow2.f32 %v2336_v23  ;;  %v1981_v55 = vrot.slane %v1980_v42, 1 }
 0x29a   :  { %8343 = vst [vmem:[#allocation24_spill] sm:$0xff] %v7196_v58  ;;  %v7202_v62 = vpop.eup %5552  ;;  %v2313_v47 = vmax.f32 %v2311_v21, %v2312_v56  ;;  %v2350_v15 = vrot.slane %v2349_v9, 1  ;;  %v2057_v8 = vrot.slane %v2056_v35, 2  ;;  %5564 = vrcp.f32 %v2363_v57 }
 0x29b   :  { %v5555_v26 = vpop.eup %5554  ;;  %v2044_v22 = vadd.f32 %v7193_v45, %v2043_v33  ;;  %v2296_v58 = vrot.slane %v2295_v63, 1  ;;  %v1982_v50 = vmax.f32 %v1980_v42, %v1981_v55  ;;  %v2300_v48 = vrot.slane %v2299_v44, 2 }
 0x29c   :  { %v7206_v30 = vpop.eup %5556  ;;  %v2314_v24 = vrot.slane %v2313_v47, 1  ;;  %v2058_v27 = vadd.f32 %v2057_v8, %v2056_v35  ;;  %v2602_v46 = vmax.f32 %v6934_v54, %v2601_v5 }
 0x29d   :  { %8344 = vst [vmem:[#allocation55_spill] sm:$0xff] %v7206_v30  ;;  %v5559_v17 = vpop.eup %5558  ;;  %v2045_v2 = vrot.slane %v2044_v22, 2  ;;  %v2061_v23 = vrot.slane %v7206_v30, 4  ;;  %v2297_v21 = vmax.f32 %v2295_v63, %v2296_v58  ;;  %v2000_v56 = vsub.f32 %v8336_v20, %v1982_v50 }
 0x29e   :  { %v2315_v4 = vmax.f32 %v2313_v47, %v2314_v24  ;;  %v2301_v31 = vmax.f32 %v2299_v44, %v2300_v48  ;;  %v2059_v33 = vrot.slane %v2058_v27, 1  ;;  %v2603_v14 = vrot.slane %v2602_v46, 2 }
 0x29f   :  { %v2046_v45 = vadd.f32 %v2045_v2, %v2044_v22  ;;  %v2062_v38 = vadd.f32 %v7206_v30, %v2061_v23  ;;  %v2320_v42 = vsub.f32 %v8338_v61, %v2297_v21  ;;  %v7213_v57 = vpop.eup %5560  ;;  %v2013_v55 = vmul.f32 1.442695, %v2000_v56 }
 0x2a0   :  { %v2323_v35 = vsub.f32 %v8339_v13, %v2315_v4  ;;  %v2302_v8 = vrot.slane %v2301_v31, 1  ;;  %v2060_v58 = vadd.f32 %v2059_v33, %v2058_v27  ;;  %v2604_v5 = vmax.f32 %v2602_v46, %v2603_v14 }
 0x2a1   :  { %v2047_v63 = vrot.slane %v2046_v45, 1  ;;  %v2063_v20 = vrot.slane %v2062_v38, 2  ;;  %v2332_v47 = vmul.f32 1.442695, %v2320_v42  ;;  %5566 = vpow2.f32 %v2013_v55 }
 0x2a2   :  { %v2338_v44 = vmul.f32 1.442695, %v2323_v35  ;;  %v2303_v48 = vmax.f32 %v2301_v31, %v2302_v8  ;;  %v7217_v2 = vmul.f32 %v5555_v26, %v7138_v59  ;;  %v7219_v22 = vadd.f32 %v2350_v15, %v2349_v9 }
 0x2a3   :  { %v2048_v61 = vadd.f32 %v2047_v63, %v2046_v45  ;;  %v2589_v50 = vrot.slane %v6937_v43, 4  ;;  %v7222_v24 = vpop.eup %5562  ;;  %v7225_v4 = vmul.f32 %v5559_v17, %v7142_v37  ;;  %5568 = vpow2.f32 %v2332_v47 }
 0x2a4   :  { %8345 = vst [vmem:[#allocation56_spill] sm:$0xff] %v7222_v24  ;;  %v2321_v13 = vsub.f32 %v8340_v40, %v2303_v48  ;;  %v2605_v27 = vrot.slane %v2604_v5, 1  ;;  %5570 = vrcp.f32 %v2060_v58  ;;  %v2064_v31 = vadd.f32 %v2063_v20, %v2062_v38  ;;  %v7230_v14 = vpop.eup %5564 }
 0x2a5   :  { %v2376_v46 = vrot.slane %v7222_v24, 4  ;;  %v2590_v59 = vmax.f32 %v6937_v43, %v2589_v50  ;;  %5572 = vpow2.f32 %v2338_v44  ;;  %v2607_v26 = vrot.slane %v6943_v18, 4 }
 0x2a6   :  { %v2334_v9 = vmul.f32 1.442695, %v2321_v13  ;;  %v2606_v45 = vmax.f32 %v2604_v5, %v2605_v27  ;;  %5574 = vrcp.f32 %v2048_v61  ;;  %v2922_v40 = vrot.slane %v6945_v6, 4 }
 0x2a7   :  { %v2377_v37 = vadd.f32 %v7222_v24, %v2376_v46  ;;  %v2591_v15 = vrot.slane %v2590_v59, 2  ;;  %v2608_v17 = vmax.f32 %v6943_v18, %v2607_v26  ;;  %v2595_v23 = vrot.slane %v6949_v19, 4 }
 0x2a8   :  { %5576 = vpow2.f32 %v2334_v9  ;;  %v2639_v38 = vsub.f32 %v6934_v54, %v2606_v45  ;;  %v2065_v21 = vrot.slane %v2064_v31, 1  ;;  %v2923_v42 = vmax.f32 %v6945_v6, %v2922_v40 }
 0x2a9   :  { %v2378_v56 = vrot.slane %v2377_v37, 2  ;;  %v2592_v33 = vmax.f32 %v2590_v59, %v2591_v15  ;;  %v2609_v35 = vrot.slane %v2608_v17, 2  ;;  %v2596_v8 = vmax.f32 %v6949_v19, %v2595_v23 }
 0x2aa   :  { %v2649_v55 = vmul.f32 1.442695, %v2639_v38  ;;  %v2910_v58 = vrot.slane %v6951_v41, 4  ;;  %v2924_v47 = vrot.slane %v2923_v42, 2  ;;  %v2928_v54 = vrot.slane %v6957_v51, 4 }
 0x2ab   :  { %v7241_v63 = vadd.f32 %v2378_v56, %v2377_v37  ;;  %v2593_v20 = vrot.slane %v2592_v33, 1  ;;  %v7244_v44 = vpop.eup %5566  ;;  %v2610_v48 = vmax.f32 %v2608_v17, %v2609_v35  ;;  %v2597_v5 = vrot.slane %v2596_v8, 2 }
 0x2ac   :  { %8346 = vst [vmem:[#allocation57_spill] sm:$0xff] %v7244_v44  ;;  %5578 = vpow2.f32 %v2649_v55  ;;  %v2911_v61 = vmax.f32 %v6951_v41, %v2910_v58  ;;  %v2066_v50 = vadd.f32 %v2065_v21, %v2064_v31  ;;  %v2049_v13 = vrot.slane %v7244_v44, 4 }
 0x2ad   :  { %v2594_v27 = vmax.f32 %v2592_v33, %v2593_v20  ;;  %v2925_v46 = vmax.f32 %v2923_v42, %v2924_v47  ;;  %v7248_v59 = vpop.eup %5568  ;;  %v2380_v9 = vrot.slane %v7241_v63, 1  ;;  %v2611_v45 = vrot.slane %v2610_v48, 1 }
 0x2ae   :  { %8347 = vst [vmem:[#allocation58_spill] sm:$0xff] %v7248_v59  ;;  %v2598_v26 = vmax.f32 %v2596_v8, %v2597_v5  ;;  %v2912_v37 = vrot.slane %v2911_v61, 2  ;;  %v7251_v15 = vpop.eup %5570  ;;  %v2050_v40 = vadd.f32 %v7244_v44, %v2049_v13  ;;  %v2364_v38 = vrot.slane %v7248_v59, 4 }
 0x2af   :  { %8348 = vst [vmem:[#allocation59_spill] sm:$0xff] %v7251_v15  ;;  %v2637_v17 = vsub.f32 %v6937_v43, %v2594_v27  ;;  %v2929_v31 = vmax.f32 %v6957_v51, %v2928_v54  ;;  %v7257_v23 = vpop.eup %5572  ;;  %v2612_v21 = vmax.f32 %v2610_v48, %v2611_v45  ;;  %v2926_v56 = vrot.slane %v2925_v46, 1 }
 0x2b0   :  { %8349 = vst [vmem:[#allocation60_spill] sm:$0xff] %v7257_v23  ;;  %v2599_v33 = vrot.slane %v2598_v26, 1  ;;  %v2913_v42 = vmax.f32 %v2911_v61, %v2912_v37  ;;  %v7259_v55 = vpop.eup %5574  ;;  %v2051_v35 = vrot.slane %v2050_v40, 2  ;;  %v2365_v8 = vadd.f32 %v7248_v59, %v2364_v38 }
 0x2b1   :  { %8350 = vst [vmem:[#allocation61_spill] sm:$0xff] %v7259_v55  ;;  %v2382_v58 = vrot.slane %v7257_v23, 4  ;;  %v2645_v20 = vmul.f32 1.442695, %v2637_v17  ;;  %v2640_v43 = vsub.f32 %v6943_v18, %v2612_v21  ;;  %v2927_v5 = vmax.f32 %v2925_v46, %v2926_v56 }
 0x2b2   :  { %v7263_v47 = vpop.eup %5576  ;;  %v2600_v54 = vmax.f32 %v2598_v26, %v2599_v33  ;;  %v2914_v13 = vrot.slane %v2913_v42, 1  ;;  %v2052_v27 = vadd.f32 %v2051_v35, %v2050_v40  ;;  %v2366_v48 = vrot.slane %v2365_v8, 2 }
 0x2b3   :  { %8351 = vst [vmem:[#allocation62_spill] sm:$0xff] %v7263_v47  ;;  %v2383_v45 = vadd.f32 %v7257_v23, %v2382_v58  ;;  %v2370_v61 = vrot.slane %v7263_v47, 4  ;;  %5580 = vpow2.f32 %v2645_v20  ;;  %v2651_v37 = vmul.f32 1.442695, %v2640_v43 }
 0x2b4   :  { %v2960_v38 = vsub.f32 %v6945_v6, %v2927_v5  ;;  %v2638_v24 = vsub.f32 %v6949_v19, %v2600_v54  ;;  %v2053_v17 = vrot.slane %v2052_v27, 1  ;;  %v2367_v30 = vadd.f32 %v2366_v48, %v2365_v8 }
 0x2b5   :  { %v2384_v15 = vrot.slane %v2383_v45, 2  ;;  %v2371_v18 = vadd.f32 %v7263_v47, %v2370_v61  ;;  %5582 = vpow2.f32 %v2651_v37  ;;  %v2915_v21 = vmax.f32 %v2913_v42, %v2914_v13 }
 0x2b6   :  { %v7271_v46 = vpop.eup %5578  ;;  %v2970_v26 = vmul.f32 1.442695, %v2960_v38  ;;  %v2647_v40 = vmul.f32 1.442695, %v2638_v24  ;;  %5584 = vrcp.f32 %v2066_v50  ;;  %v2054_v56 = vadd.f32 %v2053_v17, %v2052_v27 }
 0x2b7   :  { %v2368_v33 = vrot.slane %v2367_v30, 1  ;;  %v2385_v35 = vadd.f32 %v2384_v15, %v2383_v45  ;;  %v2673_v58 = vrot.slane %v7271_v46, 4  ;;  %v2958_v6 = vsub.f32 %v6951_v41, %v2915_v21 }
 0x2b8   :  { %5586 = vpow2.f32 %v2970_v26  ;;  %v2930_v19 = vrot.slane %v2929_v31, 2  ;;  %v7277_v8 = vmul.f32 %v7230_v14, %v7169_v29  ;;  %v7280_v20 = vadd.f32 %v2380_v9, %v7241_v63 }
 0x2b9   :  { %5588 = vrcp.f32 %v2054_v56  ;;  %v2372_v24 = vrot.slane %v2371_v18, 2  ;;  %v2674_v50 = vadd.f32 %v7271_v46, %v2673_v58  ;;  %v2966_v42 = vmul.f32 1.442695, %v2958_v6 }
 0x2ba   :  { %8352 = vst [vmem:[#allocation63_spill] sm:$0xff] %v7280_v20  ;;  %5590 = vpow2.f32 %v2647_v40  ;;  %v2931_v15 = vmax.f32 %v2929_v31, %v2930_v19  ;;  %v7283_v43 = vadd.f32 %v2368_v33, %v2367_v30  ;;  %v2386_v5 = vrot.slane %v2385_v35, 1 }
 0x2bb   :  { %v2916_v41 = vrot.slane %v6963_v39, 4  ;;  %v2625_v54 = vrot.slane %v6974_v16, 4  ;;  %v2675_v13 = vrot.slane %v2674_v50, 2  ;;  %5592 = vpow2.f32 %v2966_v42 }
 0x2bc   :  { %8353 = vst [vmem:[#allocation64_spill] sm:$0xff] %v7283_v43  ;;  %v2932_v29 = vrot.slane %v2931_v15, 1  ;;  %v2613_v14 = vrot.slane %v6977_v25, 4  ;;  %v2373_v63 = vadd.f32 %v2372_v24, %v2371_v18  ;;  %v2631_v48 = vrot.slane %v6982_v60, 4 }
 0x2bd   :  { %v2917_v9 = vmax.f32 %v6963_v39, %v2916_v41  ;;  %v2626_v27 = vmax.f32 %v6974_v16, %v2625_v54  ;;  %v7291_v31 = vpop.eup %5580  ;;  %v2676_v30 = vadd.f32 %v2675_v13, %v2674_v50  ;;  %v2946_v37 = vrot.slane %v6984_v10, 4 }
 0x2be   :  { %v2933_v45 = vmax.f32 %v2931_v15, %v2932_v29  ;;  %v2614_v61 = vmax.f32 %v6977_v25, %v2613_v14  ;;  %v2661_v38 = vrot.slane %v7291_v31, 4  ;;  %v2632_v18 = vmax.f32 %v6982_v60, %v2631_v48 }
 0x2bf   :  { %v2918_v17 = vrot.slane %v2917_v9, 2  ;;  %v2627_v26 = vrot.slane %v2626_v27, 2  ;;  %v7297_v40 = vpop.eup %5582  ;;  %v7299_v21 = vadd.f32 %v2386_v5, %v2385_v35  ;;  %v2677_v56 = vrot.slane %v2676_v30, 1 }
 0x2c0   :  { %v2961_v33 = vsub.f32 %v6957_v51, %v2933_v45  ;;  %v2615_v58 = vrot.slane %v2614_v61, 2  ;;  %v7302_v6 = vpop.eup %5584  ;;  %v2662_v19 = vadd.f32 %v7291_v31, %v2661_v38  ;;  %v2679_v24 = vrot.slane %v7297_v40, 4 }
 0x2c1   :  { %8354 = vst [vmem:[#allocation65_spill] sm:$0xff] %v7299_v21  ;;  %8355 = vst [vmem:[#allocation66_spill] sm:$0xff] %v7302_v6  ;;  %v2919_v50 = vmax.f32 %v2917_v9, %v2918_v17  ;;  %v2628_v42 = vmax.f32 %v2626_v27, %v2627_v26  ;;  %v2374_v41 = vrot.slane %v2373_v63, 1  ;;  %v2633_v29 = vrot.slane %v2632_v18, 2 }
 0x2c2   :  { %v7306_v15 = vpop.eup %5586  ;;  %v2972_v54 = vmul.f32 1.442695, %v2961_v33  ;;  %v2616_v13 = vmax.f32 %v2614_v61, %v2615_v58  ;;  %v2680_v5 = vadd.f32 %v7297_v40, %v2679_v24  ;;  %v2947_v48 = vmax.f32 %v6984_v10, %v2946_v37 }
 0x2c3   :  { %v7308_v35 = vpop.eup %5588  ;;  %v2994_v51 = vrot.slane %v7306_v15, 4  ;;  %v2920_v14 = vrot.slane %v2919_v50, 1  ;;  %v2678_v38 = vadd.f32 %v2677_v56, %v2676_v30  ;;  %v2629_v9 = vrot.slane %v2628_v42, 1 }
 0x2c4   :  { %8356 = vst [vmem:[#allocation67_spill] sm:$0xff] %v7308_v35  ;;  %v7313_v45 = vpop.eup %5590  ;;  %v2617_v27 = vrot.slane %v2616_v13, 1  ;;  %v2634_v17 = vmax.f32 %v2632_v18, %v2633_v29  ;;  %v2663_v26 = vrot.slane %v2662_v19, 2  ;;  %v2681_v23 = vrot.slane %v2680_v5, 2 }
 0x2c5   :  { %v2995_v61 = vadd.f32 %v7306_v15, %v2994_v51  ;;  %v2667_v33 = vrot.slane %v7313_v45, 4  ;;  %v7317_v58 = vpop.eup %5592  ;;  %5594 = vpow2.f32 %v2972_v54  ;;  %v2921_v24 = vmax.f32 %v2919_v50, %v2920_v14 }
 0x2c6   :  { %v2630_v21 = vmax.f32 %v2628_v42, %v2629_v9  ;;  %v2618_v20 = vmax.f32 %v2616_v13, %v2617_v27  ;;  %v2682_v6 = vadd.f32 %v2681_v23, %v2680_v5  ;;  %v2982_v30 = vrot.slane %v7317_v58, 4 }
 0x2c7   :  { %v2996_v37 = vrot.slane %v2995_v61, 2  ;;  %v2668_v47 = vadd.f32 %v7313_v45, %v2667_v33  ;;  %v2959_v18 = vsub.f32 %v6963_v39, %v2921_v24  ;;  %v2635_v51 = vrot.slane %v2634_v17, 1  ;;  %v8358_v33 = vld [vmem:[#allocation18_spill] sm:$0xff]  ;;  %v8359_v24 = vld [vmem:[#allocation9_spill] sm:$0xff] }
 0x2c8   :  { %v2643_v56 = vsub.f32 %v6974_v16, %v2630_v21  ;;  %v2641_v29 = vsub.f32 %v6977_v25, %v2618_v20  ;;  %v7324_v59 = vadd.f32 %v2374_v41, %v2373_v63  ;;  %v2683_v43 = vrot.slane %v2682_v6, 1 }
 0x2c9   :  { %v2997_v54 = vadd.f32 %v2996_v37, %v2995_v61  ;;  %v2669_v50 = vrot.slane %v2668_v47, 2  ;;  %5596 = vrcp.f32 %v2678_v38  ;;  %v2968_v42 = vmul.f32 1.442695, %v2959_v18 }
 0x2ca   :  { %8357 = vst [vmem:[#allocation68_spill] sm:$0xff] %v7324_v59  ;;  %v2657_v23 = vmul.f32 1.442695, %v2643_v56  ;;  %v2636_v13 = vmax.f32 %v2634_v17, %v2635_v51  ;;  %v7326_v5 = vadd.f32 %v2663_v26, %v2662_v19  ;;  %v2684_v14 = vadd.f32 %v2683_v43, %v2682_v6 }
 0x2cb   :  { %v7329_v9 = vadd.f32 %v7317_v58, %v2982_v30  ;;  %v2653_v39 = vmul.f32 1.442695, %v2641_v29  ;;  %5598 = vpow2.f32 %v2968_v42  ;;  %v2948_v25 = vrot.slane %v2947_v48, 2  ;;  %v8361_v42 = vld [vmem:[#allocation10_spill] sm:$0xff] }
 0x2cc   :  { %v2644_v16 = vsub.f32 %v6982_v60, %v2636_v13  ;;  %v2619_v20 = vrot.slane %v6988_v36, 4  ;;  %v2998_v63 = vrot.slane %v2997_v54, 1  ;;  %v7333_v21 = vadd.f32 %v2669_v50, %v2668_v47  ;;  %v8360_v50 = vld [vmem:[#allocation20_spill] sm:$0xff] }
 0x2cd   :  { %v2934_v41 = vrot.slane %v6990_v53, 4  ;;  %v2952_v38 = vrot.slane %v6993_v3, 4  ;;  %5600 = vpow2.f32 %v2657_v23  ;;  %v2949_v43 = vmax.f32 %v2947_v48, %v2948_v25 }
 0x2ce   :  { %v2659_v19 = vmul.f32 1.442695, %v2644_v16  ;;  %v2620_v6 = vmax.f32 %v6988_v36, %v2619_v20  ;;  %5602 = vrcp.f32 %v2684_v14  ;;  %v2940_v17 = vrot.slane %v6996_v1, 4 }
 0x2cf   :  { %v2935_v27 = vmax.f32 %v6990_v53, %v2934_v41  ;;  %v2953_v60 = vmax.f32 %v6993_v3, %v2952_v38  ;;  %v7341_v26 = vpop.eup %5594  ;;  %5604 = vpow2.f32 %v2653_v39  ;;  %v2950_v47 = vrot.slane %v2949_v43, 1 }
 0x2d0   :  { %v2621_v61 = vrot.slane %v2620_v6, 2  ;;  %v775_v37 = vmul.f32 %v8359_v24, %v8358_v33  ;;  %v3000_v30 = vrot.slane %v7341_v26, 4  ;;  %5606 = vpow2.f32 %v2659_v19 }
 0x2d1   :  { %v2936_v48 = vrot.slane %v2935_v27, 2  ;;  %v2954_v18 = vrot.slane %v2953_v60, 2  ;;  %v2951_v56 = vmax.f32 %v2949_v43, %v2950_v47  ;;  %v2941_v51 = vmax.f32 %v6996_v1, %v2940_v17 }
 0x2d2   :  { %v2622_v29 = vmax.f32 %v2620_v6, %v2621_v61  ;;  %v776_v23 = vmul.f32 %v8361_v42, %v8360_v50  ;;  %v3001_v13 = vadd.f32 %v7341_v26, %v3000_v30  ;;  %v783_v16 = vrot.slane %v775_v37, 4 }
 0x2d3   :  { %v2937_v14 = vmax.f32 %v2935_v27, %v2936_v48  ;;  %v2955_v39 = vmax.f32 %v2953_v60, %v2954_v18  ;;  %v7350_v25 = vpop.eup %5596  ;;  %v2964_v20 = vsub.f32 %v6984_v10, %v2951_v56  ;;  %v2942_v38 = vrot.slane %v2941_v51, 2 }
 0x2d4   :  { %v2623_v41 = vrot.slane %v2622_v29, 1  ;;  %v789_v19 = vrot.slane %v776_v23, 4  ;;  %v3002_v24 = vrot.slane %v3001_v13, 2  ;;  %v784_v47 = vadd.f32 %v783_v16, %v775_v37 }
 0x2d5   :  { %v2938_v43 = vrot.slane %v2937_v14, 1  ;;  %v2956_v6 = vrot.slane %v2955_v39, 1  ;;  %v7353_v17 = vpop.eup %5598  ;;  %v2999_v61 = vadd.f32 %v2998_v63, %v2997_v54  ;;  %v2978_v42 = vmul.f32 1.442695, %v2964_v20 }
 0x2d6   :  { %v2624_v59 = vmax.f32 %v2622_v29, %v2623_v41  ;;  %v2943_v30 = vmax.f32 %v2941_v51, %v2942_v38  ;;  %v3003_v27 = vadd.f32 %v3002_v24, %v3001_v13  ;;  %v2988_v60 = vrot.slane %v7353_v17, 4 }
 0x2d7   :  { %v2939_v48 = vmax.f32 %v2937_v14, %v2938_v43  ;;  %v2957_v18 = vmax.f32 %v2955_v39, %v2956_v6  ;;  %v7356_v35 = vpop.eup %5600  ;;  %5608 = vpow2.f32 %v2978_v42  ;;  %v785_v44 = vrot.slane %v784_v47, 2 }
 0x2d8   :  { %8362 = vst [vmem:[#allocation18_spill] sm:$0xff] %v7356_v35  ;;  %v2642_v10 = vsub.f32 %v6988_v36, %v2624_v59  ;;  %v2944_v56 = vrot.slane %v2943_v30, 1  ;;  %v7359_v55 = vpop.eup %5602  ;;  %v3004_v37 = vrot.slane %v3003_v27, 1  ;;  %v2697_v54 = vrot.slane %v7356_v35, 4 }
 0x2d9   :  { %v2962_v63 = vsub.f32 %v6990_v53, %v2939_v48  ;;  %v790_v29 = vadd.f32 %v789_v19, %v776_v23  ;;  %v7363_v51 = vpop.eup %5604  ;;  %v2965_v14 = vsub.f32 %v6993_v3, %v2957_v18  ;;  %v786_v16 = vadd.f32 %v785_v44, %v784_v47  ;;  %v8365_v48 = vld [vmem:[#allocation3_spill] sm:$0xff] }
 0x2da   :  { %v2655_v13 = vmul.f32 1.442695, %v2642_v10  ;;  %v2945_v39 = vmax.f32 %v2943_v30, %v2944_v56  ;;  %v7366_v20 = vpop.eup %5606  ;;  %v3005_v36 = vadd.f32 %v3004_v37, %v3003_v27  ;;  %v7369_v59 = vadd.f32 %v7353_v17, %v2988_v60  ;;  %v8367_v37 = vld [vmem:[#allocation25_spill] sm:$0xff] }
 0x2db   :  { %8363 = vst [vmem:[#allocation9_spill] sm:$0xff] %v7366_v20  ;;  %v2698_v41 = vadd.f32 %v7356_v35, %v2697_v54  ;;  %v2685_v38 = vrot.slane %v7363_v51, 4  ;;  %v2703_v53 = vrot.slane %v7366_v20, 4  ;;  %v2974_v23 = vmul.f32 1.442695, %v2962_v63 }
 0x2dc   :  { %5610 = vpow2.f32 %v2655_v13  ;;  %v2980_v19 = vmul.f32 1.442695, %v2965_v14  ;;  %v2963_v44 = vsub.f32 %v6996_v1, %v2945_v39  ;;  %v787_v6 = vrot.slane %v786_v16, 1  ;;  %v8366_v1 = vld [vmem:[#allocation4_spill] sm:$0xff] }
 0x2dd   :  { %5612 = vrcp.f32 %v2999_v61  ;;  %v2699_v24 = vrot.slane %v2698_v41, 2  ;;  %v2686_v3 = vadd.f32 %v7363_v51, %v2685_v38  ;;  %v2704_v43 = vadd.f32 %v7366_v20, %v2703_v53 }
 0x2de   :  { %5614 = vpow2.f32 %v2974_v23  ;;  %v791_v47 = vrot.slane %v790_v29, 2  ;;  %v2976_v27 = vmul.f32 1.442695, %v2963_v44  ;;  %v1120_v18 = vmul.f32 %v8365_v48, %v8358_v33 }
 0x2df   :  { %5616 = vpow2.f32 %v2980_v19  ;;  %v7379_v60 = vadd.f32 %v2699_v24, %v2698_v41  ;;  %v2687_v61 = vrot.slane %v2686_v3, 2  ;;  %v2705_v10 = vrot.slane %v2704_v43, 2  ;;  %v8370_v19 = vld [vmem:[#allocation36_spill] sm:$0xff] }
 0x2e0   :  { %5618 = vrcp.f32 %v3005_v36  ;;  %v1121_v56 = vmul.f32 %v8366_v1, %v8360_v50  ;;  %v1433_v54 = vmul.f32 %v7028_v11, %v8367_v37  ;;  %v7389_v13 = vadd.f32 %v787_v6, %v786_v16  ;;  %v8369_v36 = vld [vmem:[#allocation34_spill] sm:$0xff] }
 0x2e1   :  { %8364 = vst [vmem:[#allocation20_spill] sm:$0xff] %v7379_v60  ;;  %5620 = vpow2.f32 %v2976_v27  ;;  %v7387_v63 = vpop.eup %5608  ;;  %v792_v14 = vadd.f32 %v791_v47, %v790_v29  ;;  %v1128_v39 = vrot.slane %v1120_v18, 4  ;;  %v1434_v41 = vmul.f32 %v7041_v28, %v8369_v36 }
 0x2e2   :  { %8368 = vst [vmem:[#allocation10_spill] sm:$0xff] %v7387_v63  ;;  %v3018_v38 = vrot.slane %v7387_v63, 4  ;;  %v1134_v53 = vrot.slane %v1121_v56, 4  ;;  %v1441_v23 = vmul.f32 %v1433_v54, %v8358_v33  ;;  %v1754_v24 = vmul.f32 %v7061_v49, %v8370_v19 }
 0x2e3   :  { %v7397_v44 = vadd.f32 %v2687_v61, %v2686_v3  ;;  %v1129_v11 = vadd.f32 %v1128_v39, %v1120_v18  ;;  %v1442_v27 = vmul.f32 %v1434_v41, %v8360_v50  ;;  %v1755_v29 = vmul.f32 %v7066_v34, %v7004_v52 }
 0x2e4   :  { %v7402_v16 = vadd.f32 %v2705_v10, %v2704_v43  ;;  %v1135_v6 = vadd.f32 %v1134_v53, %v1121_v56  ;;  %v1449_v28 = vrot.slane %v1441_v23, 4  ;;  %v1762_v47 = vmul.f32 %v1754_v24, %v8358_v33 }
 0x2e5   :  { %v793_v1 = vrot.slane %v792_v14, 1  ;;  %v1130_v37 = vrot.slane %v1129_v11, 2  ;;  %v1455_v54 = vrot.slane %v1442_v27, 4  ;;  %v1763_v49 = vmul.f32 %v1755_v29, %v8360_v50 }
 0x2e6   :  { %8371 = vst [vmem:[#allocation3_spill] sm:$0xff] %v7402_v16  ;;  %v7405_v48 = vpop.eup %5610  ;;  %v7411_v61 = vadd.f32 %v7387_v63, %v3018_v38  ;;  %v1136_v34 = vrot.slane %v1135_v6, 2  ;;  %v1450_v43 = vadd.f32 %v1449_v28, %v1441_v23  ;;  %v1770_v39 = vrot.slane %v1762_v47, 4 }
 0x2e7   :  { %v7408_v3 = vpop.eup %5612  ;;  %v2691_v52 = vrot.slane %v7405_v48, 4  ;;  %v1131_v10 = vadd.f32 %v1130_v37, %v1129_v11  ;;  %v1456_v56 = vadd.f32 %v1455_v54, %v1442_v27  ;;  %v2075_v36 = vmul.f32 %v7202_v62, %v7124_v0 }
 0x2e8   :  { %v7414_v18 = vpop.eup %5614  ;;  %v1137_v38 = vadd.f32 %v1136_v34, %v1135_v6  ;;  %v1451_v24 = vrot.slane %v1450_v43, 2  ;;  %v1771_v11 = vadd.f32 %v1770_v39, %v1762_v47  ;;  %v1776_v62 = vrot.slane %v1763_v49, 4 }
 0x2e9   :  { %v7418_v41 = vpop.eup %5616  ;;  %v2692_v53 = vadd.f32 %v7405_v48, %v2691_v52  ;;  %v3006_v19 = vrot.slane %v7414_v18, 4  ;;  %v1132_v28 = vrot.slane %v1131_v10, 1  ;;  %v1457_v30 = vrot.slane %v1456_v56, 2 }
 0x2ea   :  { %v7422_v29 = vpop.eup %5618  ;;  %v3024_v23 = vrot.slane %v7418_v41, 4  ;;  %v1138_v54 = vrot.slane %v1137_v38, 1  ;;  %v1452_v0 = vadd.f32 %v1451_v24, %v1450_v43  ;;  %v794_v63 = vadd.f32 %v793_v1, %v792_v14 }
 0x2eb   :  { %v7425_v27 = vpop.eup %5620  ;;  %v2693_v37 = vrot.slane %v2692_v53, 2  ;;  %v1458_v6 = vadd.f32 %v1457_v30, %v1456_v56  ;;  %v7430_v34 = vadd.f32 %v7414_v18, %v3006_v19  ;;  %v1133_v35 = vadd.f32 %v1132_v28, %v1131_v10 }
 0x2ec   :  { %v3012_v52 = vrot.slane %v7425_v27, 4  ;;  %v7433_v20 = vadd.f32 %v7418_v41, %v3024_v23  ;;  %v1453_v47 = vrot.slane %v1452_v0, 1  ;;  %v1139_v16 = vadd.f32 %v1138_v54, %v1137_v38 }
 0x2ed   :  { %v7435_v39 = vadd.f32 %v2693_v37, %v2692_v53  ;;  %v1459_v60 = vrot.slane %v1458_v6, 1  ;;  %v1772_v43 = vrot.slane %v1771_v11, 2  ;;  %v1777_v42 = vadd.f32 %v1776_v62, %v1763_v49 }
 0x2ee   :  { %v7438_v24 = vadd.f32 %v7425_v27, %v3012_v52  ;;  %v2076_v30 = vmul.f32 %v7213_v57, %v7149_v32  ;;  %v2083_v14 = vmul.f32 %v2075_v36, %v8358_v33  ;;  %v1454_v1 = vadd.f32 %v1453_v47, %v1452_v0 }
 0x2ef   :  { %v1460_v56 = vadd.f32 %v1459_v60, %v1458_v6  ;;  %v1773_v19 = vadd.f32 %v1772_v43, %v1771_v11  ;;  %5622 = vrcp.f32 %v7198_v12  ;;  %v1778_v10 = vrot.slane %v1777_v42, 2 }
 0x2f0   :  { %v2084_v53 = vmul.f32 %v2076_v30, %v8360_v50  ;;  %v2091_v38 = vrot.slane %v2083_v14, 4  ;;  %5624 = vrcp.f32 %v7219_v22  ;;  %v2665_v28 = vrot.slane %v7326_v5, 1 }
 0x2f1   :  { %v1774_v23 = vrot.slane %v1773_v19, 1  ;;  %v2671_v49 = vrot.slane %v7333_v21, 1  ;;  %v8372_v32 = vrot.slane %v7329_v9, 2  ;;  %v1779_v36 = vadd.f32 %v1778_v10, %v1777_v42 }
 0x2f2   :  { %v2092_v60 = vadd.f32 %v2091_v38, %v2083_v14  ;;  %v2097_v11 = vrot.slane %v2084_v53, 4  ;;  %v8373_v12 = vrot.slane %v7369_v59, 2  ;;  %v2666_v0 = vadd.f32 %v2665_v28, %v7326_v5 }
 0x2f3   :  { %v2985_v57 = vadd.f32 %v8372_v32, %v7329_v9  ;;  %v1775_v54 = vadd.f32 %v1774_v23, %v1773_v19  ;;  %v2672_v22 = vadd.f32 %v2671_v49, %v7333_v21  ;;  %v1780_v52 = vrot.slane %v1779_v36, 1 }
 0x2f4   :  { %v2991_v37 = vadd.f32 %v8373_v12, %v7369_v59  ;;  %v2093_v6 = vrot.slane %v2092_v60, 2  ;;  %v2098_v47 = vadd.f32 %v2097_v11, %v2084_v53  ;;  %5626 = vrcp.f32 %v2666_v0 }
 0x2f5   :  { %v2986_v62 = vrot.slane %v2985_v57, 1  ;;  %v1781_v9 = vadd.f32 %v1780_v52, %v1779_v36  ;;  %5628 = vrcp.f32 %v2672_v22  ;;  %v3103_v5 = vsel %vm3102_vm0, %v7389_v13, %v1133_v35  ;;  %v8376_v22 = vld [vmem:[#allocation5_spill] sm:$0xff] }
 0x2f6   :  { %v2992_v43 = vrot.slane %v2991_v37, 1  ;;  %v2094_v42 = vadd.f32 %v2093_v6, %v2092_v60  ;;  %v2099_v14 = vrot.slane %v2098_v47, 2  ;;  %v3104_v21 = vsel %vm3102_vm0, %v794_v63, %v1139_v16  ;;  %v8374_v16 = vld [vmem:[#allocation54_spill] sm:$0xff] }
 0x2f7   :  { %v2987_v30 = vadd.f32 %v2986_v62, %v2985_v57  ;;  %v3112_v53 = vsel %vm3111_vm1, %v3103_v5, %v1454_v1  ;;  %v3113_v38 = vsel %vm3111_vm1, %v3104_v21, %v1460_v56  ;;  %v3008_v28 = vrot.slane %v7430_v34, 2  ;;  %v8377_v62 = vld [vmem:[#allocation11_spill] sm:$0xff]  ;;  %v8378_v6 = vld [vmem:[#allocation26_spill] sm:$0xff] }
 0x2f8   :  { %v2993_v10 = vadd.f32 %v2992_v43, %v2991_v37  ;;  %v2095_v59 = vrot.slane %v2094_v42, 1  ;;  %v2100_v19 = vadd.f32 %v2099_v14, %v2098_v47  ;;  %v3121_v35 = vsel %vm3120_vm2, %v3112_v53, %v1775_v54  ;;  %v8375_v37 = vld [vmem:[#allocation2_spill] sm:$0xff] }
 0x2f9   :  { %5630 = vrcp.f32 %v2987_v30  ;;  %v5623_v23 = vpop.eup %5622  ;;  %v3026_v63 = vrot.slane %v7433_v20, 2  ;;  %v3014_v13 = vrot.slane %v7438_v24, 2  ;;  %v3122_v56 = vsel %vm3120_vm2, %v3113_v38, %v1781_v9 }
 0x2fa   :  { %5632 = vrcp.f32 %v2993_v10  ;;  %v5625_v49 = vpop.eup %5624  ;;  %v2096_v32 = vadd.f32 %v2095_v59, %v2094_v42  ;;  %v2101_v57 = vrot.slane %v2100_v19, 1  ;;  %v2396_v36 = vmul.f32 %v5623_v23, %v7157_v7  ;;  %v8379_v42 = vld [vmem:[#allocation35_spill] sm:$0xff] }
 0x2fb   :  { %v2397_v1 = vmul.f32 %v5625_v49, %v8374_v16  ;;  %v797_v0 = vrot.slane %v8375_v37, 2  ;;  %v803_v54 = vrot.slane %v8376_v22, 2  ;;  %v1142_v52 = vrot.slane %v8377_v62, 2 }
 0x2fc   :  { %v2102_v60 = vadd.f32 %v2101_v57, %v2100_v19  ;;  %v2404_v11 = vmul.f32 %v2396_v36, %v8358_v33  ;;  %v7470_v12 = vsel %vm3129_vm3, %v3121_v35, %v2096_v32  ;;  %v1148_v47 = vrot.slane %v8378_v6, 2 }
 0x2fd   :  { %v2405_v7 = vmul.f32 %v2397_v1, %v8360_v50  ;;  %v798_v9 = vadd.f32 %v797_v0, %v8375_v37  ;;  %v8380_v14 = vrot.slane %v8379_v42, 4  ;;  %v804_v59 = vadd.f32 %v803_v54, %v8376_v22 }
 0x2fe   :  { %v2412_v43 = vrot.slane %v2404_v11, 4  ;;  %v3131_v30 = vsel %vm3129_vm3, %v3122_v56, %v2102_v60  ;;  %v5627_v5 = vpop.eup %5626  ;;  %v1143_v19 = vadd.f32 %v1142_v52, %v8377_v62  ;;  %v1149_v53 = vadd.f32 %v1148_v47, %v8378_v6 }
 0x2ff   :  { %v1462_v10 = vadd.f32 %v8380_v14, %v8379_v42  ;;  %v2418_v21 = vrot.slane %v2405_v7, 4  ;;  %v5629_v38 = vpop.eup %5628  ;;  %v2717_v49 = vmul.f32 %v5627_v5, %v7291_v31  ;;  %v799_v32 = vrot.slane %v798_v9, 1 }
 0x300   :  { %v2413_v23 = vadd.f32 %v2412_v43, %v2404_v11  ;;  %v2718_v16 = vmul.f32 %v5629_v38, %v7313_v45  ;;  %v805_v1 = vrot.slane %v804_v59, 1  ;;  %v1144_v56 = vrot.slane %v1143_v19, 1 }
 0x301   :  { %v1463_v57 = vrot.slane %v1462_v10, 2  ;;  %v2419_v35 = vadd.f32 %v2418_v21, %v2405_v7  ;;  %v2725_v37 = vmul.f32 %v2717_v49, %v8358_v33  ;;  %v7489_v22 = vadd.f32 %v799_v32, %v798_v9 }
 0x302   :  { %v2414_v60 = vrot.slane %v2413_v23, 2  ;;  %v2726_v11 = vmul.f32 %v2718_v16, %v8360_v50  ;;  %v7492_v31 = vadd.f32 %v805_v1, %v804_v59  ;;  %v7494_v52 = vadd.f32 %v1144_v56, %v1143_v19 }
 0x303   :  { %v5631_v36 = vpop.eup %5630  ;;  %v2420_v62 = vrot.slane %v2419_v35, 2  ;;  %v2733_v6 = vrot.slane %v2725_v37, 4  ;;  %v1464_v9 = vadd.f32 %v1463_v57, %v1462_v10  ;;  %v8381_v10 = vld [vmem:[#allocation40_spill] sm:$0xff] }
 0x304   :  { %v3038_v0 = vmul.f32 %v5631_v36, %v7317_v58  ;;  %v5633_v54 = vpop.eup %5632  ;;  %v2415_v7 = vadd.f32 %v2414_v60, %v2413_v23  ;;  %v2739_v42 = vrot.slane %v2726_v11, 4  ;;  %v1150_v58 = vrot.slane %v1149_v53, 1 }
 0x305   :  { %v3039_v45 = vmul.f32 %v5633_v54, %v7353_v17  ;;  %v2421_v43 = vadd.f32 %v2420_v62, %v2419_v35  ;;  %v2734_v5 = vadd.f32 %v2733_v6, %v2725_v37  ;;  %v1465_v23 = vrot.slane %v1464_v9, 1 }
 0x306   :  { %v3046_v47 = vmul.f32 %v3038_v0, %v8358_v33  ;;  %v2416_v14 = vrot.slane %v2415_v7, 1  ;;  %v2740_v49 = vadd.f32 %v2739_v42, %v2726_v11  ;;  %v7499_v19 = vadd.f32 %v1150_v58, %v1149_v53  ;;  %v8383_v11 = vld [vmem:[#allocation43_spill] sm:$0xff] }
 0x307   :  { %v3047_v21 = vmul.f32 %v3039_v45, %v8360_v50  ;;  %v2422_v59 = vrot.slane %v2421_v43, 1  ;;  %v2735_v17 = vrot.slane %v2734_v5, 2  ;;  %v7501_v1 = vadd.f32 %v1465_v23, %v1464_v9 }
 0x308   :  { %v3054_v38 = vrot.slane %v3046_v47, 4  ;;  %v2417_v32 = vadd.f32 %v2416_v14, %v2415_v7  ;;  %v2741_v16 = vrot.slane %v2740_v49, 2  ;;  %v8382_v57 = vrot.slane %v8381_v10, 4 }
 0x309   :  { %v3060_v33 = vrot.slane %v3047_v21, 4  ;;  %v2423_v35 = vadd.f32 %v2422_v59, %v2421_v43  ;;  %v2736_v50 = vadd.f32 %v2735_v17, %v2734_v5  ;;  %v1782_v7 = vrot.slane %v8383_v11, 4  ;;  %v8384_v43 = vld [vmem:[#allocation46_spill] sm:$0xff]  ;;  %v8385_v5 = vld [vmem:[#allocation17_spill] sm:$0xff] }
 0x30a   :  { %v3055_v36 = vadd.f32 %v3054_v38, %v3046_v47  ;;  %v1468_v56 = vadd.f32 %v8382_v57, %v8381_v10  ;;  %v3139_v53 = vsel %vm3138_vm4, %v7470_v12, %v2417_v32  ;;  %v2742_v0 = vadd.f32 %v2741_v16, %v2740_v49 }
 0x30b   :  { %v3061_v37 = vadd.f32 %v3060_v33, %v3047_v21  ;;  %v3140_v54 = vsel %vm3138_vm4, %v3131_v30, %v2423_v35  ;;  %v2737_v6 = vrot.slane %v2736_v50, 1  ;;  %v1788_v42 = vrot.slane %v8384_v43, 4  ;;  %v8386_v21 = vld [vmem:[#allocation16_spill] sm:$0xff]  ;;  %v8387_v33 = vld [vmem:[#allocation19_spill] sm:$0xff] }
 0x30c   :  { %v3056_v60 = vrot.slane %v3055_v36, 2  ;;  %v1469_v62 = vrot.slane %v1468_v56, 2  ;;  %v2743_v58 = vrot.slane %v2742_v0, 1  ;;  %v1783_v14 = vadd.f32 %v1782_v7, %v8383_v11 }
 0x30d   :  { %v3062_v47 = vrot.slane %v3061_v37, 2  ;;  %v2085_v38 = vmul.f32 %v8386_v21, %v8385_v5  ;;  %v2738_v59 = vadd.f32 %v2737_v6, %v2736_v50  ;;  %v1789_v30 = vadd.f32 %v1788_v42, %v8384_v43 }
 0x30e   :  { %v3057_v45 = vadd.f32 %v3056_v60, %v3055_v36  ;;  %v1470_v9 = vadd.f32 %v1469_v62, %v1468_v56  ;;  %v2744_v23 = vadd.f32 %v2743_v58, %v2742_v0  ;;  %v1784_v17 = vrot.slane %v1783_v14, 2 }
 0x30f   :  { %v3063_v49 = vadd.f32 %v3062_v47, %v3061_v37  ;;  %v2086_v36 = vmul.f32 %v7217_v2, %v8387_v33  ;;  %v3148_v10 = vsel %vm3147_vm5, %v3139_v53, %v2738_v59  ;;  %v1790_v57 = vrot.slane %v1789_v30, 2 }
 0x310   :  { %v3058_v12 = vrot.slane %v3057_v45, 1  ;;  %v1471_v32 = vrot.slane %v1470_v9, 1  ;;  %v3149_v56 = vsel %vm3147_vm5, %v3140_v54, %v2744_v23  ;;  %v1785_v50 = vadd.f32 %v1784_v17, %v1783_v14 }
 0x311   :  { %v3064_v16 = vrot.slane %v3063_v49, 1  ;;  %v2103_v62 = vrot.slane %v2085_v38, 4  ;;  %v1791_v0 = vadd.f32 %v1790_v57, %v1789_v30  ;;  %v2109_v7 = vrot.slane %v2086_v36, 4 }
 0x312   :  { %v3059_v35 = vadd.f32 %v3058_v12, %v3057_v45  ;;  %v7519_v60 = vadd.f32 %v1471_v32, %v1470_v9  ;;  %v1786_v6 = vrot.slane %v1785_v50, 1  ;;  %v2406_v2 = vmul.f32 %v7225_v4, %v8385_v5 }
 0x313   :  { %v3065_v37 = vadd.f32 %v3064_v16, %v3063_v49  ;;  %v2104_v47 = vadd.f32 %v2103_v62, %v2085_v38  ;;  %v2407_v53 = vmul.f32 %v7277_v8, %v8387_v33  ;;  %v1792_v54 = vrot.slane %v1791_v0, 1 }
 0x314   :  { %v3157_v11 = vsel %vm3156_vm6, %v3148_v10, %v3059_v35  ;;  %v2110_v43 = vadd.f32 %v2109_v7, %v2086_v36  ;;  %v2719_v42 = vmul.f32 %v7350_v25, %v7271_v46  ;;  %v1787_v9 = vadd.f32 %v1786_v6, %v1785_v50 }
 0x315   :  { %v3158_v45 = vsel %vm3156_vm6, %v3149_v56, %v3065_v37  ;;  %v2105_v14 = vrot.slane %v2104_v47, 2  ;;  %v2424_v21 = vrot.slane %v2406_v2, 4  ;;  %v1793_v59 = vadd.f32 %v1792_v54, %v1791_v0 }
 0x316   :  { %v3165_v58 = vpack.c.bf16 %v3158_v45, %v3157_v11  ;;  %v2111_v12 = vrot.slane %v2110_v43, 2  ;;  %v2430_v38 = vrot.slane %v2407_v53, 4  ;;  %v2720_v4 = vmul.f32 %v7359_v55, %v7297_v40 }
 0x317   :  { %v2106_v49 = vadd.f32 %v2105_v14, %v2104_v47  ;;  %v2425_v8 = vadd.f32 %v2424_v21, %v2406_v2  ;;  %v2727_v30 = vmul.f32 %v2719_v42, %v8385_v5  ;;  %v3040_v23 = vmul.f32 %v7408_v3, %v7306_v15 }
 0x318   :  { %4977 = vmatprep.mubr.bf16.mxu0 %v3165_v58  ;;  %v2112_v32 = vadd.f32 %v2111_v12, %v2110_v43  ;;  %v2431_v46 = vadd.f32 %v2430_v38, %v2407_v53  ;;  %v2728_v25 = vmul.f32 %v2720_v4, %v8387_v33  ;;  %v3041_v17 = vmul.f32 %v7422_v29, %v7341_v26 }
 0x319   :  { %v2107_v36 = vrot.slane %v2106_v49, 1  ;;  %v2426_v35 = vrot.slane %v2425_v8, 2  ;;  %v2745_v16 = vrot.slane %v2727_v30, 4  ;;  %v3048_v55 = vmul.f32 %v3040_v23, %v8385_v5 }
 0x31a   :  { %v2113_v40 = vrot.slane %v2112_v32, 1  ;;  %v2432_v10 = vrot.slane %v2431_v46, 2  ;;  %v2751_v57 = vrot.slane %v2728_v25, 4  ;;  %v3049_v56 = vmul.f32 %v3041_v17, %v8387_v33  ;;  %v8389_v17 = vld [vmem:[#allocation28_spill] sm:$0xff] }
 0x31b   :  { %v2108_v50 = vadd.f32 %v2107_v36, %v2106_v49  ;;  %v2427_v62 = vadd.f32 %v2426_v35, %v2425_v8  ;;  %v2746_v15 = vadd.f32 %v2745_v16, %v2727_v30  ;;  %v3066_v3 = vrot.slane %v3048_v55, 4  ;;  %v8391_v35 = vld [vmem:[#allocation31_spill] sm:$0xff] }
 0x31c   :  { %v2114_v37 = vadd.f32 %v2113_v40, %v2112_v32  ;;  %v2433_v11 = vadd.f32 %v2432_v10, %v2431_v46  ;;  %v2752_v0 = vadd.f32 %v2751_v57, %v2728_v25  ;;  %v3072_v7 = vrot.slane %v3049_v56, 4  ;;  %v8388_v25 = vld [vmem:[#allocation22_spill] sm:$0xff]  ;;  %v8392_v40 = vld [vmem:[#allocation32_spill] sm:$0xff]  ;;  %v8393_v57 = vld [vmem:[#allocation37_spill] sm:$0xff] }
 0x31d   :  { %v2428_v6 = vrot.slane %v2427_v62, 1  ;;  %v2747_v26 = vrot.slane %v2746_v15, 2  ;;  %v3067_v29 = vadd.f32 %v3066_v3, %v3048_v55  ;;  %v3105_v5 = vsel %vm3102_vm0, %v7489_v22, %v7494_v52 }
 0x31e   :  { %v2434_v47 = vrot.slane %v2433_v11, 1  ;;  %v2753_v2 = vrot.slane %v2752_v0, 2  ;;  %v3073_v53 = vadd.f32 %v3072_v7, %v3049_v56  ;;  %v3106_v33 = vsel %vm3102_vm0, %v7492_v31, %v7499_v19  ;;  %v8394_v7 = vld [vmem:[#allocation39_spill] sm:$0xff] }
 0x31f   :  { %v2429_v45 = vadd.f32 %v2428_v6, %v2427_v62  ;;  %v2748_v54 = vadd.f32 %v2747_v26, %v2746_v15  ;;  %v3068_v43 = vrot.slane %v3067_v29, 2  ;;  %v3114_v42 = vsel %vm3111_vm1, %v3105_v5, %v7501_v1  ;;  %v8395_v6 = vld [vmem:[#allocation48_spill] sm:$0xff] }
 0x320   :  { %v2435_v58 = vadd.f32 %v2434_v47, %v2433_v11  ;;  %v2754_v14 = vadd.f32 %v2753_v2, %v2752_v0  ;;  %v3074_v21 = vrot.slane %v3073_v53, 2  ;;  %v3115_v12 = vsel %vm3111_vm1, %v3106_v33, %v7519_v60  ;;  %v8396_v2 = vld [vmem:[#allocation44_spill] sm:$0xff] }
 0x321   :  { %v2749_v22 = vrot.slane %v2748_v54, 1  ;;  %v3069_v52 = vadd.f32 %v3068_v43, %v3067_v29  ;;  %v3123_v38 = vsel %vm3120_vm2, %v3114_v42, %v1787_v9  ;;  %v3124_v4 = vsel %vm3120_vm2, %v3115_v12, %v1793_v59  ;;  %v8390_v9 = vld [vmem:[#allocation8_spill] sm:$0xff]  ;;  %v8398_v12 = vld [vmem:[#allocation45_spill] sm:$0xff] }
 0x322   :  { %v2755_v49 = vrot.slane %v2754_v14, 1  ;;  %v3075_v31 = vadd.f32 %v3074_v21, %v3073_v53  ;;  %v3132_v19 = vsel %vm3129_vm3, %v3123_v38, %v2108_v50  ;;  %v3133_v8 = vsel %vm3129_vm3, %v3124_v4, %v2114_v37  ;;  %v8397_v53 = vld [vmem:[#allocation12_spill] sm:$0xff] }
 0x323   :  { %v2750_v30 = vadd.f32 %v2749_v22, %v2748_v54  ;;  %v3070_v1 = vrot.slane %v3069_v52, 1  ;;  %v3141_v23 = vsel %vm3138_vm4, %v3132_v19, %v2429_v45  ;;  %v3142_v32 = vsel %vm3138_vm4, %v3133_v8, %v2435_v58  ;;  %v8399_v22 = vld [vmem:[#allocation15_spill] sm:$0xff]  ;;  %v8401_v19 = vld [vmem:[#allocation24_spill] sm:$0xff] }
 0x324   :  { %v2756_v46 = vadd.f32 %v2755_v49, %v2754_v14  ;;  %v3076_v60 = vrot.slane %v3075_v31, 1  ;;  %v779_v36 = vmul.f32 %v8389_v17, %v8388_v25  ;;  %v780_v59 = vmul.f32 %v8391_v35, %v8390_v9 }
 0x325   :  { %v3071_v16 = vadd.f32 %v3070_v1, %v3069_v52  ;;  %v3150_v55 = vsel %vm3147_vm5, %v3141_v23, %v2750_v30  ;;  %v1124_v10 = vmul.f32 %v8392_v40, %v8388_v25  ;;  %v1125_v56 = vmul.f32 %v8393_v57, %v8390_v9 }
 0x326   :  { %v3077_v50 = vadd.f32 %v3076_v60, %v3075_v31  ;;  %v3151_v62 = vsel %vm3147_vm5, %v3142_v32, %v2756_v46  ;;  %v807_v15 = vrot.slane %v779_v36, 4  ;;  %v813_v3 = vrot.slane %v780_v59, 4  ;;  %v8400_v31 = vld [vmem:[#allocation50_spill] sm:$0xff] }
 0x327   :  { %v3159_v37 = vsel %vm3156_vm6, %v3150_v55, %v3071_v16  ;;  %v1152_v11 = vrot.slane %v1124_v10, 4  ;;  %v1158_v0 = vrot.slane %v1125_v56, 4  ;;  %v1437_v26 = vmul.f32 %v8395_v6, %v8394_v7 }
 0x328   :  { %v3160_v29 = vsel %vm3156_vm6, %v3151_v62, %v3077_v50  ;;  %v808_v5 = vadd.f32 %v807_v15, %v779_v36  ;;  %v814_v47 = vadd.f32 %v813_v3, %v780_v59  ;;  %v1438_v33 = vmul.f32 %v8397_v53, %v8396_v2  ;;  %v8404_v2 = vld [vmem:[#allocation57_spill] sm:$0xff]  ;;  %v8405_v53 = vld [vmem:[#allocation67_spill] sm:$0xff] }
 0x329   :  { %v3166_v45 = vpack.c.bf16 %v3160_v29, %v3159_v37  ;;  %v1153_v54 = vadd.f32 %v1152_v11, %v1124_v10  ;;  %v1159_v43 = vadd.f32 %v1158_v0, %v1125_v56  ;;  %v1445_v42 = vmul.f32 %v1437_v26, %v8388_v25  ;;  %v8402_v29 = vld [vmem:[#allocation14_spill] sm:$0xff] }
 0x32a   :  { %v809_v58 = vrot.slane %v808_v5, 2  ;;  %v815_v14 = vrot.slane %v814_v47, 2  ;;  %v1446_v21 = vmul.f32 %v1438_v33, %v8390_v9  ;;  %v1758_v52 = vmul.f32 %v8399_v22, %v8398_v12 }
 0x32b   :  { %4978 = vmatmul.mubr.bf16.vlgmr.msra.gmra.mrb[48].mxu0 %v3166_v45  ;;  %v1154_v38 = vrot.slane %v1153_v54, 2  ;;  %v1160_v4 = vrot.slane %v1159_v43, 2  ;;  %v1473_v49 = vrot.slane %v1445_v42, 4  ;;  %v1759_v8 = vmul.f32 %v8401_v19, %v8400_v31 }
 0x32c   :  { %v810_v30 = vadd.f32 %v809_v58, %v808_v5  ;;  %v816_v1 = vadd.f32 %v815_v14, %v814_v47  ;;  %v1479_v23 = vrot.slane %v1446_v21, 4  ;;  %v1766_v32 = vmul.f32 %v1758_v52, %v8388_v25  ;;  %v8403_v5 = vld [vmem:[#allocation61_spill] sm:$0xff] }
 0x32d   :  { %v1155_v46 = vadd.f32 %v1154_v38, %v1153_v54  ;;  %v1161_v60 = vadd.f32 %v1160_v4, %v1159_v43  ;;  %v1474_v17 = vadd.f32 %v1473_v49, %v1445_v42  ;;  %v1767_v36 = vmul.f32 %v1759_v8, %v8390_v9  ;;  %v8406_v43 = vld [vmem:[#allocation64_spill] sm:$0xff] }
 0x32e   :  { %v811_v35 = vrot.slane %v810_v30, 1  ;;  %v817_v59 = vrot.slane %v816_v1, 1  ;;  %v1480_v16 = vadd.f32 %v1479_v23, %v1446_v21  ;;  %v1794_v55 = vrot.slane %v1766_v32, 4  ;;  %v8407_v38 = vld [vmem:[#allocation68_spill] sm:$0xff] }
 0x32f   :  { %v1156_v40 = vrot.slane %v1155_v46, 1  ;;  %v1162_v10 = vrot.slane %v1161_v60, 1  ;;  %v1475_v57 = vrot.slane %v1474_v17, 2  ;;  %v1800_v56 = vrot.slane %v1767_v36, 4 }
 0x330   :  { %v812_v50 = vadd.f32 %v811_v35, %v810_v30  ;;  %v818_v62 = vadd.f32 %v817_v59, %v816_v1  ;;  %v1481_v15 = vrot.slane %v1480_v16, 2  ;;  %v1795_v3 = vadd.f32 %v1794_v55, %v1766_v32 }
 0x331   :  { %v1157_v37 = vadd.f32 %v1156_v40, %v1155_v46  ;;  %v1163_v11 = vadd.f32 %v1162_v10, %v1161_v60  ;;  %v1476_v0 = vadd.f32 %v1475_v57, %v1474_v17  ;;  %v1801_v7 = vadd.f32 %v1800_v56, %v1767_v36 }
 0x332   :  { %v1482_v6 = vadd.f32 %v1481_v15, %v1480_v16  ;;  %v1796_v26 = vrot.slane %v1795_v3, 2  ;;  %v2079_v47 = vmul.f32 %v8403_v5, %v8402_v29  ;;  %v2080_v33 = vmul.f32 %v8405_v53, %v8404_v2  ;;  %v8412_v29 = vld [vmem:[#allocation58_spill] sm:$0xff] }
 0x333   :  { %v1477_v45 = vrot.slane %v1476_v0, 1  ;;  %v1802_v54 = vrot.slane %v1801_v7, 2  ;;  %5634 = vrcp.f32 %v8406_v43  ;;  %v2689_v42 = vrot.slane %v7397_v44, 1 }
 0x334   :  { %v1483_v58 = vrot.slane %v1482_v6, 1  ;;  %v1797_v14 = vadd.f32 %v1796_v26, %v1795_v3  ;;  %v2087_v21 = vmul.f32 %v2079_v47, %v8388_v25  ;;  %v2088_v12 = vmul.f32 %v2080_v33, %v8390_v9  ;;  %v8408_v3 = vld [vmem:[#allocation21_spill] sm:$0xff]  ;;  %v8413_v33 = vld [vmem:[#allocation30_spill] sm:$0xff] }
 0x335   :  { %v1478_v22 = vadd.f32 %v1477_v45, %v1476_v0  ;;  %v1803_v52 = vadd.f32 %v1802_v54, %v1801_v7  ;;  %5636 = vrcp.f32 %v8407_v38  ;;  %v2690_v4 = vadd.f32 %v2689_v42, %v7397_v44  ;;  %v8410_v7 = vld [vmem:[#allocation23_spill] sm:$0xff]  ;;  %v8414_v54 = vld [vmem:[#allocation33_spill] sm:$0xff] }
 0x336   :  { %v1484_v49 = vadd.f32 %v1483_v58, %v1482_v6  ;;  %v1798_v31 = vrot.slane %v1797_v14, 1  ;;  %v2115_v19 = vrot.slane %v2087_v21, 4  ;;  %v2121_v8 = vrot.slane %v2088_v12, 4 }
 0x337   :  { %v1804_v30 = vrot.slane %v1803_v52, 1  ;;  %v2695_v1 = vrot.slane %v7435_v39, 1  ;;  %5638 = vrcp.f32 %v2690_v4  ;;  %v3009_v23 = vadd.f32 %v3008_v28, %v7430_v34 }
 0x338   :  { %v1799_v32 = vadd.f32 %v1798_v31, %v1797_v14  ;;  %v2116_v46 = vadd.f32 %v2115_v19, %v2087_v21  ;;  %v2122_v60 = vadd.f32 %v2121_v8, %v2088_v12  ;;  %v3015_v17 = vadd.f32 %v3014_v13, %v7438_v24  ;;  %v8415_v14 = vld [vmem:[#allocation62_spill] sm:$0xff] }
 0x339   :  { %v1805_v44 = vadd.f32 %v1804_v30, %v1803_v52  ;;  %v2696_v36 = vadd.f32 %v2695_v1, %v7435_v39  ;;  %v3010_v35 = vrot.slane %v3009_v23, 1  ;;  %v3107_v59 = vsel %vm3102_vm0, %v812_v50, %v1157_v37  ;;  %v8409_v37 = vld [vmem:[#allocation27_spill] sm:$0xff] }
 0x33a   :  { %v2117_v16 = vrot.slane %v2116_v46, 2  ;;  %v2123_v55 = vrot.slane %v2122_v60, 2  ;;  %v3016_v40 = vrot.slane %v3015_v17, 1  ;;  %v3108_v10 = vsel %vm3102_vm0, %v818_v62, %v1163_v11  ;;  %v8411_v62 = vld [vmem:[#allocation29_spill] sm:$0xff] }
 0x33b   :  { %5640 = vrcp.f32 %v2696_v36  ;;  %v3011_v34 = vadd.f32 %v3010_v35, %v3009_v23  ;;  %v3116_v28 = vsel %vm3111_vm1, %v3107_v59, %v1478_v22  ;;  %v3117_v57 = vsel %vm3111_vm1, %v3108_v10, %v1484_v49  ;;  %v8417_v10 = vld [vmem:[#allocation47_spill] sm:$0xff] }
 0x33c   :  { %v2118_v56 = vadd.f32 %v2117_v16, %v2116_v46  ;;  %v2124_v15 = vadd.f32 %v2123_v55, %v2122_v60  ;;  %v3017_v24 = vadd.f32 %v3016_v40, %v3015_v17  ;;  %v3125_v13 = vsel %vm3120_vm2, %v3116_v28, %v1799_v32  ;;  %v8416_v40 = vld [vmem:[#allocation38_spill] sm:$0xff] }
 0x33d   :  { %v5635_v39 = vpop.eup %5634  ;;  %5642 = vrcp.f32 %v3011_v34  ;;  %v3126_v50 = vsel %vm3120_vm2, %v3117_v57, %v1805_v44  ;;  %v781_v0 = vmul.f32 %v8409_v37, %v8408_v3  ;;  %v782_v11 = vmul.f32 %v8411_v62, %v8410_v7 }
 0x33e   :  { %v2119_v6 = vrot.slane %v2118_v56, 1  ;;  %v2125_v26 = vrot.slane %v2124_v15, 1  ;;  %v2400_v5 = vmul.f32 %v5635_v39, %v8412_v29  ;;  %5644 = vrcp.f32 %v3017_v24 }
 0x33f   :  { %v5637_v47 = vpop.eup %5636  ;;  %v819_v2 = vrot.slane %v781_v0, 4  ;;  %v825_v53 = vrot.slane %v782_v11, 4  ;;  %v1126_v45 = vmul.f32 %v8413_v33, %v8408_v3  ;;  %v1127_v43 = vmul.f32 %v8414_v54, %v8410_v7 }
 0x340   :  { %v2120_v42 = vadd.f32 %v2119_v6, %v2118_v56  ;;  %v2126_v58 = vadd.f32 %v2125_v26, %v2124_v15  ;;  %v2401_v21 = vmul.f32 %v5637_v47, %v8415_v14  ;;  %v2408_v12 = vmul.f32 %v2400_v5, %v8388_v25 }
 0x341   :  { %v5639_v22 = vpop.eup %5638  ;;  %v820_v52 = vadd.f32 %v819_v2, %v781_v0  ;;  %v826_v38 = vadd.f32 %v825_v53, %v782_v11  ;;  %v1164_v4 = vrot.slane %v1126_v45, 4  ;;  %v1170_v49 = vrot.slane %v1127_v43, 4 }
 0x342   :  { %v2409_v31 = vmul.f32 %v2401_v21, %v8390_v9  ;;  %v2436_v19 = vrot.slane %v2408_v12, 4  ;;  %v2721_v8 = vmul.f32 %v5639_v22, %v7363_v51  ;;  %v3134_v30 = vsel %vm3129_vm3, %v3125_v13, %v2120_v42 }
 0x343   :  { %v3135_v1 = vsel %vm3129_vm3, %v3126_v50, %v2126_v58  ;;  %v821_v23 = vrot.slane %v820_v52, 2  ;;  %v827_v32 = vrot.slane %v826_v38, 2  ;;  %v1165_v46 = vadd.f32 %v1164_v4, %v1126_v45 }
 0x344   :  { %v2437_v60 = vadd.f32 %v2436_v19, %v2408_v12  ;;  %v2442_v17 = vrot.slane %v2409_v31, 4  ;;  %v2729_v44 = vmul.f32 %v2721_v8, %v8388_v25  ;;  %v1171_v36 = vadd.f32 %v1170_v49, %v1127_v43 }
 0x345   :  { %v5641_v35 = vpop.eup %5640  ;;  %v822_v59 = vadd.f32 %v821_v23, %v820_v52  ;;  %v828_v16 = vadd.f32 %v827_v32, %v826_v38  ;;  %v1166_v55 = vrot.slane %v1165_v46, 2  ;;  %v1439_v34 = vmul.f32 %v8417_v10, %v8416_v40  ;;  %v8419_v23 = vld [vmem:[#allocation51_spill] sm:$0xff] }
 0x346   :  { %v2438_v51 = vrot.slane %v2437_v60, 2  ;;  %v2443_v28 = vadd.f32 %v2442_v17, %v2409_v31  ;;  %v2722_v57 = vmul.f32 %v5641_v35, %v7405_v48  ;;  %v2757_v56 = vrot.slane %v2729_v44, 4 }
 0x347   :  { %v5643_v15 = vpop.eup %5642  ;;  %v823_v24 = vrot.slane %v822_v59, 1  ;;  %v829_v13 = vrot.slane %v828_v16, 1  ;;  %v1167_v39 = vadd.f32 %v1166_v55, %v1165_v46  ;;  %v1172_v50 = vrot.slane %v1171_v36, 2  ;;  %v8421_v55 = vld [vmem:[#allocation52_spill] sm:$0xff] }
 0x348   :  { %v5645_v37 = vpop.eup %5644  ;;  %v2439_v0 = vadd.f32 %v2438_v51, %v2437_v60  ;;  %v2444_v62 = vrot.slane %v2443_v28, 2  ;;  %v2730_v11 = vmul.f32 %v2722_v57, %v8390_v9  ;;  %v2758_v6 = vadd.f32 %v2757_v56, %v2729_v44  ;;  %v8423_v57 = vld [vmem:[#allocation53_spill] sm:$0xff] }
 0x349   :  { %v3042_v26 = vmul.f32 %v5643_v15, %v7414_v18  ;;  %v3043_v29 = vmul.f32 %v5645_v37, %v7425_v27  ;;  %v7625_v5 = vadd.f32 %v823_v24, %v822_v59  ;;  %v7627_v47 = vadd.f32 %v829_v13, %v828_v16  ;;  %v8420_v16 = vld [vmem:[#allocation42_spill] sm:$0xff]  ;;  %v8424_v37 = vld [vmem:[#allocation13_spill] sm:$0xff] }
 0x34a   :  { %v2440_v48 = vrot.slane %v2439_v0, 1  ;;  %v2445_v2 = vadd.f32 %v2444_v62, %v2443_v28  ;;  %v2759_v53 = vrot.slane %v2758_v6, 2  ;;  %v2763_v33 = vrot.slane %v2730_v11, 4  ;;  %v8422_v28 = vld [vmem:[#allocation49_spill] sm:$0xff] }
 0x34b   :  { %v3050_v45 = vmul.f32 %v3042_v26, %v8388_v25  ;;  %v3051_v54 = vmul.f32 %v3043_v29, %v8390_v9  ;;  %v1168_v43 = vrot.slane %v1167_v39, 1  ;;  %v1173_v42 = vadd.f32 %v1172_v50, %v1171_v36  ;;  %v8418_v9 = vld [vmem:[#allocation41_spill] sm:$0xff] }
 0x34c   :  { %v2441_v58 = vadd.f32 %v2440_v48, %v2439_v0  ;;  %v2446_v14 = vrot.slane %v2445_v2, 1  ;;  %v2760_v21 = vadd.f32 %v2759_v53, %v2758_v6  ;;  %v2764_v18 = vadd.f32 %v2763_v33, %v2730_v11  ;;  %v8425_v0 = vld [vmem:[#allocation59_spill] sm:$0xff] }
 0x34d   :  { %v3078_v12 = vrot.slane %v3050_v45, 4  ;;  %v3084_v27 = vrot.slane %v3051_v54, 4  ;;  %v7631_v22 = vadd.f32 %v1168_v43, %v1167_v39  ;;  %v1174_v52 = vrot.slane %v1173_v42, 1  ;;  %v8426_v33 = vld [vmem:[#allocation55_spill] sm:$0xff] }
 0x34e   :  { %v2447_v38 = vadd.f32 %v2446_v14, %v2445_v2  ;;  %v2761_v4 = vrot.slane %v2760_v21, 1  ;;  %v2765_v49 = vrot.slane %v2764_v18, 2  ;;  %v3143_v31 = vsel %vm3138_vm4, %v3134_v30, %v2441_v58 }
 0x34f   :  { %v3079_v19 = vadd.f32 %v3078_v12, %v3050_v45  ;;  %v3085_v25 = vadd.f32 %v3084_v27, %v3051_v54  ;;  %v7634_v8 = vadd.f32 %v1174_v52, %v1173_v42  ;;  %v1440_v32 = vmul.f32 %v8419_v23, %v8418_v9  ;;  %v8427_v45 = vld [vmem:[#allocation66_spill] sm:$0xff] }
 0x350   :  { %v2762_v46 = vadd.f32 %v2761_v4, %v2760_v21  ;;  %v2766_v60 = vadd.f32 %v2765_v49, %v2764_v18  ;;  %v3144_v17 = vsel %vm3138_vm4, %v3135_v1, %v2447_v38  ;;  %v1447_v44 = vmul.f32 %v1439_v34, %v8408_v3 }
 0x351   :  { %v3080_v36 = vrot.slane %v3079_v19, 2  ;;  %v3086_v35 = vrot.slane %v3085_v25, 2  ;;  %v1448_v59 = vmul.f32 %v1440_v32, %v8410_v7  ;;  %v1760_v30 = vmul.f32 %v8421_v55, %v8420_v16 }
 0x352   :  { %v2767_v40 = vrot.slane %v2766_v60, 1  ;;  %v3152_v10 = vsel %vm3147_vm5, %v3143_v31, %v2762_v46  ;;  %v1485_v51 = vrot.slane %v1447_v44, 4  ;;  %v1761_v56 = vmul.f32 %v8423_v57, %v8422_v28  ;;  %v8431_v28 = vld [vmem:[#allocation3_spill] sm:$0xff] }
 0x353   :  { %v3081_v15 = vadd.f32 %v3080_v36, %v3079_v19  ;;  %v3087_v24 = vadd.f32 %v3086_v35, %v3085_v25  ;;  %v1491_v13 = vrot.slane %v1448_v59, 4  ;;  %v1768_v1 = vmul.f32 %v1760_v30, %v8408_v3  ;;  %v8429_v35 = vld [vmem:[#allocation65_spill] sm:$0xff]  ;;  %v8430_v30 = vld [vmem:[#allocation20_spill] sm:$0xff] }
 0x354   :  { %v2768_v34 = vadd.f32 %v2767_v40, %v2766_v60  ;;  %v1486_v39 = vadd.f32 %v1485_v51, %v1447_v44  ;;  %v1769_v50 = vmul.f32 %v1761_v56, %v8410_v7  ;;  %v2081_v62 = vmul.f32 %v8425_v0, %v8424_v37  ;;  %v8428_v60 = vld [vmem:[#allocation63_spill] sm:$0xff] }
 0x355   :  { %v3082_v11 = vrot.slane %v3081_v15, 1  ;;  %v3088_v6 = vrot.slane %v3087_v24, 1  ;;  %v1492_v26 = vadd.f32 %v1491_v13, %v1448_v59  ;;  %v1806_v29 = vrot.slane %v1768_v1, 4 }
 0x356   :  { %v3153_v48 = vsel %vm3147_vm5, %v3144_v17, %v2768_v34  ;;  %v1487_v2 = vrot.slane %v1486_v39, 2  ;;  %v1812_v53 = vrot.slane %v1769_v50, 4  ;;  %v2082_v54 = vmul.f32 %v8427_v45, %v8426_v33 }
 0x357   :  { %v3083_v43 = vadd.f32 %v3082_v11, %v3081_v15  ;;  %v3089_v42 = vadd.f32 %v3088_v6, %v3087_v24  ;;  %v1493_v58 = vrot.slane %v1492_v26, 2  ;;  %v1807_v14 = vadd.f32 %v1806_v29, %v1768_v1  ;;  %v3305_v6 = vld [vmem:[%s8144_s14] sm:$0xff] }
 0x358   :  { %v1488_v21 = vadd.f32 %v1487_v2, %v1486_v39  ;;  %v1813_v18 = vadd.f32 %v1812_v53, %v1769_v50  ;;  %v2089_v12 = vmul.f32 %v2081_v62, %v8408_v3  ;;  %v2090_v27 = vmul.f32 %v2082_v54, %v8410_v7 }
 0x359   :  { %v3161_v52 = vsel %vm3156_vm6, %v3152_v10, %v3083_v43  ;;  %v3162_v38 = vsel %vm3156_vm6, %v3153_v48, %v3089_v42  ;;  %v1494_v4 = vadd.f32 %v1493_v58, %v1492_v26  ;;  %v1808_v49 = vrot.slane %v1807_v14, 2  ;;  %v3307_v48 = vld [vmem:[%s8144_s14 + $0x10] sm:$0xff] }
 0x35a   :  { %v3167_v31 = vpack.c.bf16 %v3162_v38, %v3161_v52  ;;  %v1489_v19 = vrot.slane %v1488_v21, 1  ;;  %v1814_v25 = vrot.slane %v1813_v18, 2  ;;  %v2127_v9 = vrot.slane %v2089_v12, 4  ;;  %v3310_v52 = vld [vmem:[%s8144_s14 + $0x28] sm:$0xff]  ;;  %v8434_v38 = vld [vmem:[#allocation60_spill] sm:$0xff] }
 0x35b   :  { %v1495_v23 = vrot.slane %v1494_v4, 1  ;;  %v1809_v32 = vadd.f32 %v1808_v49, %v1807_v14  ;;  %v2133_v46 = vrot.slane %v2090_v27, 4  ;;  %5646 = vrcp.f32 %v8428_v60 }
 0x35c   :  { %4981 = vmatprep.mubr.bf16.mxu0 %v3167_v31  ;;  %v1490_v17 = vadd.f32 %v1489_v19, %v1488_v21  ;;  %v1815_v44 = vadd.f32 %v1814_v25, %v1813_v18  ;;  %v2128_v36 = vadd.f32 %v2127_v9, %v2089_v12  ;;  %5648 = vrcp.f32 %v8429_v35  ;;  %v8433_v21 = vld [vmem:[#allocation56_spill] sm:$0xff] }
 0x35d   :  { %v1496_v59 = vadd.f32 %v1495_v23, %v1494_v4  ;;  %v1810_v16 = vrot.slane %v1809_v32, 1  ;;  %v2134_v55 = vadd.f32 %v2133_v46, %v2090_v27  ;;  %v2701_v40 = vrot.slane %v8430_v30, 1  ;;  %v3309_v27 = vld [vmem:[%s8144_s14 + $0x20] sm:$0xff]  ;;  %v3311_v23 = vld [vmem:[%s8144_s14 + $0x30] sm:$0xff] }
 0x35e   :  { %v1816_v10 = vrot.slane %v1815_v44, 1  ;;  %v2129_v51 = vrot.slane %v2128_v36, 2  ;;  %v2707_v57 = vrot.slane %v8431_v28, 1  ;;  %v8432_v56 = vrot.slane %v7411_v61, 2 }
 0x35f   :  { %v1811_v24 = vadd.f32 %v1810_v16, %v1809_v32  ;;  %v2135_v13 = vrot.slane %v2134_v55, 2  ;;  %v2702_v1 = vadd.f32 %v2701_v40, %v8430_v30  ;;  %v3027_v34 = vadd.f32 %v3026_v63, %v7433_v20  ;;  %v3306_v63 = vld [vmem:[%s8144_s14 + $0x8] sm:$0xff]  ;;  %v3312_v32 = vld [vmem:[%s8144_s14 + $0x38] sm:$0xff] }
 0x360   :  { %v3021_v15 = vadd.f32 %v8432_v56, %v7411_v61  ;;  %v1817_v39 = vadd.f32 %v1816_v10, %v1815_v44  ;;  %v2130_v50 = vadd.f32 %v2129_v51, %v2128_v36  ;;  %v2708_v37 = vadd.f32 %v2707_v57, %v8431_v28  ;;  %v8435_v36 = vld [vmem:[#allocation18_spill] sm:$0xff]  ;;  %v8436_v16 = vld [vmem:[#allocation9_spill] sm:$0xff]  ;;  %v3314_v57 = vld [vmem:[%s8144_s14 + $0x48] sm:$0xff] }
 0x361   :  { %v2136_v62 = vadd.f32 %v2135_v13, %v2134_v55  ;;  %5650 = vrcp.f32 %v2702_v1  ;;  %v3028_v11 = vrot.slane %v3027_v34, 1  ;;  %v3109_v61 = vsel %vm3102_vm0, %v7625_v5, %v7631_v22  ;;  %v3308_v5 = vld [vmem:[%s8144_s14 + $0x18] sm:$0xff]  ;;  %v3313_v28 = vld [vmem:[%s8144_s14 + $0x40] sm:$0xff] }
 0x362   :  { %v3022_v0 = vrot.slane %v3021_v15, 1  ;;  %v2131_v26 = vrot.slane %v2130_v50, 1  ;;  %5652 = vrcp.f32 %v2708_v37  ;;  %v3110_v20 = vsel %vm3102_vm0, %v7627_v47, %v7634_v8  ;;  %v8437_v13 = vld [vmem:[#allocation10_spill] sm:$0xff] }
 0x363   :  { %v2137_v22 = vrot.slane %v2136_v62, 1  ;;  %v3029_v2 = vadd.f32 %v3028_v11, %v3027_v34  ;;  %v3118_v53 = vsel %vm3111_vm1, %v3109_v61, %v1490_v17  ;;  %v3119_v33 = vsel %vm3111_vm1, %v3110_v20, %v1496_v59 }
 0x364   :  { %v3023_v29 = vadd.f32 %v3022_v0, %v3021_v15  ;;  %v2132_v45 = vadd.f32 %v2131_v26, %v2130_v50  ;;  %v3127_v47 = vsel %vm3120_vm2, %v3118_v53, %v1811_v24  ;;  %v3128_v8 = vsel %vm3120_vm2, %v3119_v33, %v1817_v39 }
 0x365   :  { %v5647_v54 = vpop.eup %5646  ;;  %v2138_v43 = vadd.f32 %v2137_v22, %v2136_v62  ;;  %v7691_v42 = vpack.c.bf16 %v3306_v63, %v3305_v6  ;;  %v7693_v58 = vpack.c.bf16 %v3308_v5, %v3307_v48  ;;  %v7715_v25 = vpack.c.bf16 %v3310_v52, %v3309_v27 }
 0x366   :  { %5654 = vrcp.f32 %v3023_v29  ;;  %v5649_v14 = vpop.eup %5648  ;;  %v2402_v18 = vmul.f32 %v5647_v54, %v8433_v21  ;;  %v7697_v12 = vsel %vm3129_vm3, %v3127_v47, %v2132_v45  ;;  %v7729_v30 = vpack.c.bf16 %v3312_v32, %v3311_v23  ;;  %v3316_v29 = vld [vmem:[%s8144_s14 + $0x58] sm:$0xff] }
 0x367   :  { %5656 = vrcp.f32 %v3029_v2  ;;  %v2403_v4 = vmul.f32 %v5649_v14, %v8434_v38  ;;  %v7707_v49 = vsel %vm3129_vm3, %v3128_v8, %v2138_v43  ;;  %5162 = vmatprep.subr.bf16.mxu1 %v7691_v42  ;;  %5194 = vmatprep.subr.bf16.mxu0 %v7691_v42  ;;  %v7746_v11 = vpack.c.bf16 %v3314_v57, %v3313_v28 }
 0x368   :  { %v2410_v31 = vmul.f32 %v2402_v18, %v8408_v3  ;;  %5164 = vmatpush3.bf16.msra.mxu1 %v7691_v42  ;;  %5196 = vmatpush3.bf16.msra.mxu0 %v7691_v42 }
 0x369   :  { %v2411_v19 = vmul.f32 %v2403_v4, %v8410_v7  ;;  %5166 = vmatprep.subr.bf16.mxu1 %v7693_v58  ;;  %5198 = vmatprep.subr.bf16.mxu0 %v7693_v58 }
 0x36a   :  { %v2448_v9 = vrot.slane %v2410_v31, 4 }
 0x36b   :  { %v5651_v46 = vpop.eup %5650  ;;  %v2454_v60 = vrot.slane %v2411_v19, 4 }
 0x36c   :  { %v5653_v17 = vpop.eup %5652  ;;  %v2449_v44 = vadd.f32 %v2448_v9, %v2410_v31  ;;  %v2723_v35 = vmul.f32 %v5651_v46, %v8435_v36  ;;  %5168 = vmatpush3.bf16.msra.mxu1 %v7693_v58  ;;  %5200 = vmatpush3.bf16.msra.mxu0 %v7693_v58  ;;  %v3318_v36 = vld [vmem:[%s8144_s14 + $0x68] sm:$0xff] }
 0x36d   :  { %v2455_v59 = vadd.f32 %v2454_v60, %v2411_v19  ;;  %v2724_v55 = vmul.f32 %v5653_v17, %v8436_v16  ;;  %5170 = vmatprep.subr.bf16.mxu1 %v7715_v25  ;;  %5202 = vmatprep.subr.bf16.mxu0 %v7715_v25  ;;  %v3320_v16 = vld [vmem:[%s8144_s14 + $0x78] sm:$0xff] }
 0x36e   :  { %v2450_v10 = vrot.slane %v2449_v44, 2  ;;  %v2731_v51 = vmul.f32 %v2723_v35, %v8408_v3 }
 0x36f   :  { %v2456_v15 = vrot.slane %v2455_v59, 2  ;;  %v2732_v24 = vmul.f32 %v2724_v55, %v8410_v7 }
 0x370   :  { %v5655_v40 = vpop.eup %5654  ;;  %v2451_v34 = vadd.f32 %v2450_v10, %v2449_v44  ;;  %v2769_v39 = vrot.slane %v2731_v51, 4  ;;  %5172 = vmatpush3.bf16.msra.mxu1 %v7715_v25  ;;  %5204 = vmatpush3.bf16.msra.mxu0 %v7715_v25  ;;  %v3317_v44 = vld [vmem:[%s8144_s14 + $0x60] sm:$0xff] }
 0x371   :  { %v5657_v56 = vpop.eup %5656  ;;  %v3044_v1 = vmul.f32 %v5655_v40, %v8437_v13  ;;  %v2457_v37 = vadd.f32 %v2456_v15, %v2455_v59  ;;  %v2775_v0 = vrot.slane %v2732_v24, 4  ;;  %5174 = vmatprep.subr.bf16.mxu1 %v7729_v30  ;;  %5206 = vmatprep.subr.bf16.mxu0 %v7729_v30  ;;  %v7783_v35 = vpack.c.bf16 %v3318_v36, %v3317_v44  ;;  %v3319_v59 = vld [vmem:[%s8144_s14 + $0x70] sm:$0xff]  ;;  %v4443_v40 = vld [vmem:[%s8145_s4] ss:$0 sm:$0xff]  ;;  %v5691_v13 = vld [vmem:[%s8140_s0 + $0x8] sm:$0xff]  }
 0x372   :  { %v3045_v50 = vmul.f32 %v5657_v56, %v7418_v41  ;;  %v2452_v61 = vrot.slane %v2451_v34, 1  ;;  %v2770_v6 = vadd.f32 %v2769_v39, %v2731_v51  ;;  %v3315_v41 = vld [vmem:[%s8144_s14 + $0x50] sm:$0xff]  ;;  %v7794_v55 = vpack.c.bf16 %v3320_v16, %v3319_v59  ;;  %v5690_v51 = vld [vmem:[%s8140_s0] sm:$0xff]  }
 0x373   :  { %v3052_v62 = vmul.f32 %v3044_v1, %v8408_v3  ;;  %v2458_v3 = vrot.slane %v2457_v37, 1  ;;  %v2776_v20 = vadd.f32 %v2775_v0, %v2732_v24  ;;  %v7759_v33 = vpack.c.bf16 %v3316_v29, %v3315_v41  ;;  %v5692_v29 = vld [vmem:[%s8140_s0 + $0x10] sm:$0xff]  }
 0x374   :  { %v3053_v26 = vmul.f32 %v3045_v50, %v8410_v7  ;;  %v2453_v48 = vadd.f32 %v2452_v61, %v2451_v34  ;;  %v2771_v5 = vrot.slane %v2770_v6, 2  ;;  %5176 = vmatpush3.bf16.msra.mxu1 %v7729_v30  ;;  %5208 = vmatpush3.bf16.msra.mxu0 %v7729_v30  ;;  %v59_v28 = vunpack.c.l.bf16 %v5690_v51 }
 0x375   :  { %v3090_v63 = vrot.slane %v3052_v62, 4  ;;  %v2459_v2 = vadd.f32 %v2458_v3, %v2457_v37  ;;  %v2777_v7 = vrot.slane %v2776_v20, 2  ;;  %5178 = vmatprep.subr.bf16.mxu1 %v7746_v11  ;;  %5210 = vmatprep.subr.bf16.mxu0 %v7746_v11  ;;  %v60_v24 = vunpack.c.h.bf16 %v5690_v51 }
 0x376   :  { %v3096_v22 = vrot.slane %v3053_v26, 4  ;;  %v2772_v45 = vadd.f32 %v2771_v5, %v2770_v6  ;;  %v3145_v8 = vsel %vm3138_vm4, %v7697_v12, %v2453_v48  ;;  %v61_v1 = vunpack.c.l.bf16 %v5691_v13 }
 0x377   :  { %v3091_v53 = vadd.f32 %v3090_v63, %v3052_v62  ;;  %v2778_v54 = vadd.f32 %v2777_v7, %v2776_v20  ;;  %v3146_v14 = vsel %vm3138_vm4, %v7707_v49, %v2459_v2  ;;  %v62_v0 = vunpack.c.h.bf16 %v5691_v13 }
 0x378   :  { %v3097_v47 = vadd.f32 %v3096_v22, %v3053_v26  ;;  %v2773_v21 = vrot.slane %v2772_v45, 1  ;;  %5180 = vmatpush3.bf16.msra.mxu1 %v7746_v11  ;;  %5212 = vmatpush3.bf16.msra.mxu0 %v7746_v11  ;;  %v63_v3 = vunpack.c.l.bf16 %v5692_v29  ;;  %v64_v5 = vunpack.c.h.bf16 %v5692_v29  ;;  %v5693_v22 = vld [vmem:[%s8140_s0 + $0x18] sm:$0xff]  }
 0x379   :  { %v3092_v43 = vrot.slane %v3091_v53, 2  ;;  %v2779_v27 = vrot.slane %v2778_v54, 1  ;;  %5182 = vmatprep.subr.bf16.mxu1 %v7759_v33  ;;  %5214 = vmatprep.subr.bf16.mxu0 %v7759_v33  ;;  %v65_v2 = vunpack.c.l.bf16 %v5693_v22  ;;  %v5381_v29 = vld [vmem:[%s8146_s7 + $0x74] ss:$8 sps:$4 sm:$0xff]  }
 0x37a   :  { %v3098_v18 = vrot.slane %v3097_v47, 2  ;;  %v2774_v38 = vadd.f32 %v2773_v21, %v2772_v45 }
 0x37b   :  { %v3093_v52 = vadd.f32 %v3092_v43, %v3091_v53  ;;  %v2780_v12 = vadd.f32 %v2779_v27, %v2778_v54  ;;  %v5358_v27 = vld [vmem:[%s8146_s7] ss:$8 sps:$4 sm:$0xff]  }
 0x37c   :  { %v3099_v4 = vadd.f32 %v3098_v18, %v3097_v47  ;;  %v3154_v9 = vsel %vm3147_vm5, %v3145_v8, %v2774_v38  ;;  %5184 = vmatpush3.bf16.msra.mxu1 %v7759_v33  ;;  %5216 = vmatpush3.bf16.msra.mxu0 %v7759_v33  ;;  %v66_v8 = vunpack.c.h.bf16 %v5693_v22  ;;  %v8438_v18 = vmov 0   ;;  %v5363_v38 = vld [vmem:[%s8146_s7 + $0x14] ss:$8 sps:$4 sm:$0xff]  }
 0x37d   :  { %v3094_v31 = vrot.slane %v3093_v52, 1  ;;  %v3155_v23 = vsel %vm3147_vm5, %v3146_v14, %v2780_v12  ;;  %5186 = vmatprep.subr.bf16.mxu1 %v7783_v35  ;;  %5218 = vmatprep.subr.bf16.mxu0 %v7783_v35  ;;  %v5366_v12 = vld [vmem:[%s8146_s7 + $0x24] ss:$8 sps:$4 sm:$0xff]   ;;  %v5386_v22 = vld [vmem:[%s8147_s9 + $0x50] sm:$0xff]  }
 0x37e   :  { %v3100_v19 = vrot.slane %v3099_v4, 1 }
 0x37f   :  { %v3095_v49 = vadd.f32 %v3094_v31, %v3093_v52  ;;  %v5360_v52 = vld [vmem:[%s8146_s7 + $0x4] ss:$8 sps:$4 sm:$0xff]   ;;  %v5364_v31 = vld [vmem:[%s8146_s7 + $0x20] ss:$8 sps:$4 sm:$0xff]  }
 0x380   :  { %v3101_v32 = vadd.f32 %v3100_v19, %v3099_v4  ;;  %5188 = vmatpush3.bf16.msra.mxu1 %v7783_v35  ;;  %5220 = vmatpush3.bf16.msra.mxu0 %v7783_v35  ;;  %v5361_v4 = vld [vmem:[%s8146_s7 + $0x10] ss:$8 sps:$4 sm:$0xff]  }
 0x381   :  { %v3163_v46 = vsel %vm3156_vm6, %v3154_v9, %v3095_v49  ;;  %5190 = vmatprep.subr.bf16.mxu1 %v7794_v55  ;;  %5222 = vmatprep.subr.bf16.mxu0 %v7794_v55 }
 0x382   :  { %v3164_v60 = vsel %vm3156_vm6, %v3155_v23, %v3101_v32 }
 0x383   :  { %v3168_v17 = vpack.c.bf16 %v3164_v60, %v3163_v46 }
 0x384   :  { %5192 = vmatpush3.bf16.msra.mxu1 %v7794_v55  ;;  %5224 = vmatpush3.bf16.msra.mxu0 %v7794_v55 }
 0x385   :  { %4982 = vmatmul.mubr.bf16.gmra.mrb[52].mxu0 %v3168_v17  ;;  %3713 = vmatprep.subr.bf16.mxu1 %v5360_v52  ;;  %v5391_v52 = vld [vmem:[%s8147_s9 + $0x20] sm:$0xff]  }
 0x3fe   :  { %v4979_v10 = vpop.f32.mrb[48].mxu0 }
 0x3ff   :  { %v3274_v57 = vpop.f32.mrb[49].mxu0  ;;  %v3283_v34 = vadd.f32 %v4979_v10, %v4443_v40 }
 0x400   :  { %v3275_v56 = vadd.f32 %v4443_v40, %v3274_v57  ;;  %v4980_v15 = vpop.f32.mrb[50].mxu0 }
 0x401   :  { %v3277_v39 = vpop.f32.mrb[51].mxu0  ;;  %v3286_v62 = vadd.f32 %v4980_v15, %v4443_v40  ;;  %v3323_v6 = vadd.f32 %v3283_v34, %v61_v1 }
 0x402   :  { %v3321_v50 = vadd.f32 %v3275_v56, %v59_v28  ;;  %v3278_v37 = vadd.f32 %v4443_v40, %v3277_v39 }
 0x403   :  { %v3324_v26 = vadd.f32 %v3286_v62, %v62_v0  ;;  %v5372_v0 = vld [vmem:[%s8146_s7 + $0x44] ss:$8 sps:$4 sm:$0xff]   ;;  %v5370_v62 = vld [vmem:[%s8146_s7 + $0x40] ss:$8 sps:$4 sm:$0xff]  }
 0x404   :  { %v3322_v61 = vadd.f32 %v3278_v37, %v60_v24  ;;  %5017 = vmatprep.mubr.f32.mxu1 %v3321_v50  ;;  %v5369_v37 = vld [vmem:[%s8146_s7 + $0x34] ss:$8 sps:$4 sm:$0xff]  }
 0x406   :  { %5018 = vmatmul.mubr.f32.vlgmr.msra.gmra.mrb[40].mxu1 %v3322_v61 }
 0x407   :  { %5020 = vmatprep.mubr.f32.mxu1 %v3323_v6  ;;  %3714 = vmatpush1.bf16.msra.mxu1 %v5358_v27 }
 0x408   :  { %3715 = vmatprep.subr.bf16.mxu1 %v5363_v38 }
 0x40a   :  { %5021 = vmatmul.mubr.f32.gmra.mrb[42].mxu1 %v3324_v26 }
 0x40b   :  { %3716 = vmatpush1.bf16.msra.mxu1 %v5361_v4  ;;  %v5392_v4 = vld [vmem:[%s8147_s9 + $0x68] sm:$0xff]  }
 0x40c   :  { %3717 = vmatprep.subr.bf16.mxu1 %v5366_v12 }
 0x40f   :  { %3718 = vmatpush1.bf16.msra.mxu1 %v5364_v31  ;;  %v7934_v31 = vld [vmem:[%s8148_s5] ss:$0 sm:$0xff] }
 0x410   :  { %3719 = vmatprep.subr.bf16.mxu1 %v5369_v37 }
 0x458   :  { %v4983_v41 = vpop.f32.mrb[52].mxu0 }
 0x459   :  { %v3290_v20 = vpop.f32.mrb[53].mxu0  ;;  %v3299_v7 = vadd.f32 %v4983_v41, %v4443_v40  ;;  %v5378_v41 = vld [vmem:[%s8146_s7 + $0x64] ss:$8 sps:$4 sm:$0xff]  }
 0x45a   :  { %v3291_v63 = vadd.f32 %v4443_v40, %v3290_v20  ;;  %v4984_v48 = vpop.f32.mrb[54].mxu0  ;;  %v5382_v20 = vld [vmem:[%s8147_s9 + $0x40] sm:$0xff]  }
 0x45b   :  { %v3293_v53 = vpop.f32.mrb[55].mxu0  ;;  %v3302_v54 = vadd.f32 %v4984_v48, %v4443_v40  ;;  %v3327_v14 = vadd.f32 %v3299_v7, %v65_v2  ;;  %4657 = vmatprep.subr.bf16.mxu0 %v5382_v20  ;;  %v5384_v48 = vld [vmem:[%s8147_s9 + $0x48] sm:$0xff]   ;;  %v5387_v2 = vld [vmem:[%s8147_s9 + $0x10] sm:$0xff]  }
 0x45c   :  { %v3325_v45 = vadd.f32 %v3291_v63, %v63_v3  ;;  %v3294_v47 = vadd.f32 %v4443_v40, %v3293_v53  ;;  %v5379_v3 = vld [vmem:[%s8146_s7 + $0x70] ss:$8 sps:$4 sm:$0xff]   ;;  %v5383_v63 = vld [vmem:[%s8147_s9] sm:$0xff]  }
 0x45d   :  { %v3328_v21 = vadd.f32 %v3302_v54, %v66_v8  ;;  %v5388_v53 = vld [vmem:[%s8147_s9 + $0x58] sm:$0xff]  }
 0x45e   :  { %v3326_v43 = vadd.f32 %v3294_v47, %v64_v5  ;;  %5023 = vmatprep.mubr.f32.mxu1 %v3325_v45  ;;  %v5385_v5 = vld [vmem:[%s8147_s9 + $0x8] sm:$0xff]   ;;  %v5389_v54 = vld [vmem:[%s8147_s9 + $0x18] sm:$0xff]  }
 0x460   :  { %5024 = vmatmul.mubr.f32.gmra.mrb[44].mxu1 %v3326_v43 }
 0x461   :  { %5026 = vmatprep.mubr.f32.mxu1 %v3327_v14 }
 0x464   :  { %5027 = vmatmul.mubr.f32.gmra.mrb[46].mxu1 %v3328_v21 }
 0x465   :  { %3745 = vmatprep.mubr.bf16.mxu1 %v8438_v18 }
 0x4d9   :  { %v5019_v19 = vpop.f32.mrb[40].mxu1 }
 0x4da   :  { %v7835_v9 = vsub.f32 %v3322_v61, %v5019_v19  ;;  %v3397_v49 = vpop.f32.mrb[41].mxu1  ;;  %v5373_v61 = vld [vmem:[%s8146_s7 + $0x50] ss:$8 sps:$4 sm:$0xff]  }
 0x4db   :  { %v7837_v23 = vsub.f32 %v3321_v50, %v3397_v49  ;;  %v5367_v50 = vld [vmem:[%s8146_s7 + $0x30] ss:$8 sps:$4 sm:$0xff]  }
 0x4dc   :  { %v3445_v60 = vmul.f32 %v7835_v9, %v7835_v9  ;;  %3720 = vmatpush1.bf16.msra.mxu1 %v5367_v50 }
 0x4dd   :  { %v3444_v32 = vmul.f32 %v7837_v23, %v7837_v23  ;;  %v5022_v46 = vpop.f32.mrb[42].mxu1  ;;  %3721 = vmatprep.subr.bf16.mxu1 %v5372_v0 }
 0x4de   :  { %v7843_v17 = vsub.f32 %v3324_v26, %v5022_v46  ;;  %v3407_v44 = vpop.f32.mrb[43].mxu1  ;;  %v5376_v26 = vld [vmem:[%s8146_s7 + $0x60] ss:$8 sps:$4 sm:$0xff]  }
 0x4df   :  { %v7845_v36 = vsub.f32 %v3323_v6, %v3407_v44  ;;  %5061 = vmatprep.mubr.f32.mxu0 %v3444_v32  ;;  %v5375_v6 = vld [vmem:[%s8146_s7 + $0x54] ss:$8 sps:$4 sm:$0xff]   ;;  %v7941_v46 = vld [vmem:[%s8149_s6] ss:$0 sm:$0xff] }
 0x4e0   :  { %5062 = vmatmul.mubr.f32.vlgmr.msra.gmra.mrb[56].mxu0 %v3445_v60  ;;  %v3447_v16 = vmul.f32 %v7843_v17, %v7843_v17  ;;  %3722 = vmatpush1.bf16.msra.mxu1 %v5370_v62 }
 0x4e1   :  { %v3446_v59 = vmul.f32 %v7845_v36, %v7845_v36  ;;  %3723 = vmatprep.subr.bf16.mxu1 %v5375_v6  ;;  %4658 = vmatpush3.bf16.msra.mxu0 %v5383_v63 }
 0x4e2   :  { %4659 = vmatprep.subr.bf16.mxu0 %v5384_v48 }
 0x4e3   :  { %5064 = vmatprep.mubr.f32.mxu0 %v3446_v59 }
 0x4e4   :  { %5065 = vmatmul.mubr.f32.gmra.mrb[58].mxu0 %v3447_v16  ;;  %3724 = vmatpush1.bf16.msra.mxu1 %v5373_v61 }
 0x4e5   :  { %3725 = vmatprep.subr.bf16.mxu1 %v5378_v41  ;;  %4660 = vmatpush3.bf16.msra.mxu0 %v5385_v5 }
 0x4e6   :  { %4661 = vmatprep.subr.bf16.mxu0 %v5386_v22 }
 0x4e8   :  { %3726 = vmatpush1.bf16.msra.mxu1 %v5376_v26 }
 0x4e9   :  { %3727 = vmatprep.subr.bf16.mxu1 %v5381_v29  ;;  %4662 = vmatpush3.bf16.msra.mxu0 %v5387_v2 }
 0x4ea   :  { %4663 = vmatprep.subr.bf16.mxu0 %v5388_v53 }
 0x4ec   :  { %3728 = vmatpush1.bf16.msra.mxu1 %v5379_v3 }
 0x4ed   :  { %5226 = vmatprep.subr.bf16.mxu1 %v7691_v42  ;;  %4664 = vmatpush3.bf16.msra.mxu0 %v5389_v54  ;;  %v5395_v54 = vld [vmem:[%s8147_s9 + $0x30] sm:$0xff]  }
 0x533   :  { %v5025_v40 = vpop.f32.mrb[44].mxu1 }
 0x534   :  { %v7851_v10 = vsub.f32 %v3326_v43, %v5025_v40  ;;  %v3417_v51 = vpop.f32.mrb[45].mxu1 }
 0x535   :  { %v7853_v28 = vsub.f32 %v3325_v45, %v3417_v51 }
 0x536   :  { %v3449_v15 = vmul.f32 %v7851_v10, %v7851_v10 }
 0x537   :  { %v3448_v57 = vmul.f32 %v7853_v28, %v7853_v28  ;;  %v5028_v56 = vpop.f32.mrb[46].mxu1 }
 0x538   :  { %v7859_v24 = vsub.f32 %v3328_v21, %v5028_v56  ;;  %v3427_v13 = vpop.f32.mrb[47].mxu1 }
 0x539   :  { %v7861_v1 = vsub.f32 %v3327_v14, %v3427_v13  ;;  %5067 = vmatprep.mubr.f32.mxu0 %v3448_v57  ;;  %v5390_v14 = vld [vmem:[%s8147_s9 + $0x60] sm:$0xff]  }
 0x53a   :  { %5068 = vmatmul.mubr.f32.gmra.mrb[60].mxu0 %v3449_v15  ;;  %v3451_v39 = vmul.f32 %v7859_v24, %v7859_v24  ;;  %4665 = vmatprep.subr.bf16.mxu0 %v5390_v14  ;;  %v5397_v14 = vld [vmem:[%s8147_s9 + $0x38] sm:$0xff]  }
 0x53b   :  { %v3450_v34 = vmul.f32 %v7861_v1, %v7861_v1  ;;  %4666 = vmatpush3.bf16.msra.mxu0 %v5391_v52 }
 0x53c   :  { %4667 = vmatprep.subr.bf16.mxu0 %v5392_v4 }
 0x53d   :  { %5070 = vmatprep.mubr.f32.mxu0 %v3450_v34 }
 0x53e   :  { %5071 = vmatmul.mubr.f32.gmra.mrb[62].mxu0 %v3451_v39 }
 0x5b3   :  { %v5063_v7 = vpop.f32.mrb[56].mxu0 }
 0x5b4   :  { %v3524_v45 = vadd.f32 1e-05, %v5063_v7  ;;  %v3518_v47 = vpop.f32.mrb[57].mxu0 }
 0x5b5   :  { %v3519_v8 = vadd.f32 1e-05, %v3518_v47  ;;  %v5393_v47 = vld [vmem:[%s8147_s9 + $0x28] sm:$0xff]  }
 0x5b6   :  { %5658 = vrsqrt.f32 %v3524_v45  ;;  %4668 = vmatpush3.bf16.msra.mxu0 %v5393_v47 }
 0x5b7   :  { %5660 = vrsqrt.f32 %v3519_v8  ;;  %v5066_v43 = vpop.f32.mrb[58].mxu0  ;;  %v5394_v8 = vld [vmem:[%s8147_s9 + $0x70] sm:$0xff]  }
 0x5b8   :  { %v3534_v21 = vadd.f32 1e-05, %v5066_v43  ;;  %v3528_v27 = vpop.f32.mrb[59].mxu0  ;;  %v5396_v43 = vld [vmem:[%s8147_s9 + $0x78] sm:$0xff]   ;;  %4669 = vmatprep.subr.bf16.mxu0 %v5394_v8 }
 0x5b9   :  { %v3529_v38 = vadd.f32 1e-05, %v3528_v27  ;;  %v8439_v27 = vld [vmem:[#allocation6_spill] sm:$0xff] }
 0x5ba   :  { %5662 = vrsqrt.f32 %v3534_v21  ;;  %4670 = vmatpush3.bf16.msra.mxu0 %v5395_v54  ;;  %v3621_v21 = vld [vmem:[%s8150_s8] sm:$0x3] }
 0x5bb   :  { %5664 = vrsqrt.f32 %v3529_v38  ;;  %4671 = vmatprep.subr.bf16.mxu0 %v5396_v43  ;;  %v8028_v52 = vrot.slane %v3621_v21, %v8439_v27  ;;  %v8440_v38 = vld [vmem:[#allocation7_spill] sm:$0xff] }
 0x5bc   :  { %v8031_v4 = vrot.slane %v3621_v21, %v8440_v38 }
 0x5be   :  { %4672 = vmatpush3.bf16.msra.mxu0 %v5397_v14 }
 0x5bf   :  { %5258 = vmatprep.subr.bf16.mxu0 %v7691_v42 }
 0x5c0   :  { %v5659_v12 = vpop.eup %5658 }
 0x5c1   :  { %v5661_v19 = vpop.eup %5660  ;;  %v3566_v49 = vmul.f32 %v5659_v12, %v7835_v9 }
 0x5c2   :  { %v3565_v32 = vmul.f32 %v5661_v19, %v7837_v23 }
 0x5c3   :  { %v3580_v60 = vmul.f32 %v7934_v31, %v3566_v49 }
 0x5c4   :  { %v5663_v44 = vpop.eup %5662  ;;  %v3579_v59 = vmul.f32 %v7934_v31, %v3565_v32 }
 0x5c5   :  { %v5665_v16 = vpop.eup %5664  ;;  %v7946_v40 = vadd.f32 %v7941_v46, %v3580_v60  ;;  %v3568_v51 = vmul.f32 %v5663_v44, %v7843_v17 }
 0x5c6   :  { %v7950_v9 = vadd.f32 %v7941_v46, %v3579_v59  ;;  %v3567_v23 = vmul.f32 %v5665_v16, %v7845_v36 }
 0x5c7   :  { %v3582_v15 = vmul.f32 %v7934_v31, %v3568_v51 }
 0x5c8   :  { %v3601_v57 = vpack.c.bf16 %v7946_v40, %v7950_v9  ;;  %v3581_v56 = vmul.f32 %v7934_v31, %v3567_v23 }
 0x5c9   :  { %v7963_v17 = vadd.f32 %v7941_v46, %v3582_v15 }
 0x5ca   :  { %3746 = vmatmul.mubr.bf16.vlgmr.msra.gmra.mrb[48].mxu1 %v3601_v57  ;;  %v7960_v13 = vadd.f32 %v7941_v46, %v3581_v56 }
 0x5cb   :  { %3755 = vmatprep.mubr.bf16.mxu1 %v8438_v18  ;;  %5228 = vmatpush3.bf16.msra.mxu1 %v7691_v42 }
 0x5cc   :  { %5230 = vmatprep.subr.bf16.mxu1 %v7693_v58  ;;  %v3602_v36 = vpack.c.bf16 %v7963_v17, %v7960_v13 }
 0x5cf   :  { %5232 = vmatpush3.bf16.msra.mxu1 %v7693_v58 }
 0x5d0   :  { %5234 = vmatprep.subr.bf16.mxu1 %v7715_v25 }
 0x5d2   :  { %3756 = vmatmul.mubr.bf16.gmra.mrb[52].mxu1 %v3602_v36 }
 0x5d3   :  { %3765 = vmatprep.mubr.bf16.mxu1 %v8438_v18  ;;  %5236 = vmatpush3.bf16.msra.mxu1 %v7715_v25 }
 0x5d4   :  { %5238 = vmatprep.subr.bf16.mxu1 %v7729_v30 }
 0x5d7   :  { %5240 = vmatpush3.bf16.msra.mxu1 %v7729_v30 }
 0x5d8   :  { %5242 = vmatprep.subr.bf16.mxu1 %v7746_v11 }
 0x5db   :  { %5244 = vmatpush3.bf16.msra.mxu1 %v7746_v11 }
 0x5dc   :  { %5246 = vmatprep.subr.bf16.mxu1 %v7759_v33 }
 0x5df   :  { %5248 = vmatpush3.bf16.msra.mxu1 %v7759_v33 }
 0x5e0   :  { %5250 = vmatprep.subr.bf16.mxu1 %v7783_v35 }
 0x5e3   :  { %5252 = vmatpush3.bf16.msra.mxu1 %v7783_v35 }
 0x5e4   :  { %5254 = vmatprep.subr.bf16.mxu1 %v7794_v55 }
 0x5e7   :  { %5256 = vmatpush3.bf16.msra.mxu1 %v7794_v55 }
 0x5e8   :  { %5289 = vmatprep.subr.bf16.mxu1 %v7691_v42 }
 0x60d   :  { %v5069_v34 = vpop.f32.mrb[60].mxu0 }
 0x60e   :  { %v3544_v39 = vadd.f32 1e-05, %v5069_v34  ;;  %v3538_v50 = vpop.f32.mrb[61].mxu0 }
 0x60f   :  { %v3539_v37 = vadd.f32 1e-05, %v3538_v50 }
 0x610   :  { %5666 = vrsqrt.f32 %v3544_v39 }
 0x611   :  { %5668 = vrsqrt.f32 %v3539_v37  ;;  %v5072_v0 = vpop.f32.mrb[62].mxu0 }
 0x612   :  { %v3554_v62 = vadd.f32 1e-05, %v5072_v0  ;;  %v3548_v61 = vpop.f32.mrb[63].mxu0 }
 0x613   :  { %v3549_v6 = vadd.f32 1e-05, %v3548_v61 }
 0x614   :  { %5670 = vrsqrt.f32 %v3554_v62 }
 0x615   :  { %5672 = vrsqrt.f32 %v3549_v6 }
 0x61a   :  { %v5667_v26 = vpop.eup %5666 }
 0x61b   :  { %v5669_v41 = vpop.eup %5668  ;;  %v3570_v29 = vmul.f32 %v5667_v26, %v7851_v10 }
 0x61c   :  { %v3569_v3 = vmul.f32 %v5669_v41, %v7853_v28 }
 0x61d   :  { %v3584_v20 = vmul.f32 %v7934_v31, %v3570_v29 }
 0x61e   :  { %v5671_v63 = vpop.eup %5670  ;;  %v3583_v48 = vmul.f32 %v7934_v31, %v3569_v3 }
 0x61f   :  { %v5673_v5 = vpop.eup %5672  ;;  %v7988_v22 = vadd.f32 %v7941_v46, %v3584_v20  ;;  %v3572_v2 = vmul.f32 %v5671_v63, %v7859_v24 }
 0x620   :  { %v7992_v7 = vadd.f32 %v7941_v46, %v3583_v48  ;;  %v3571_v53 = vmul.f32 %v5673_v5, %v7861_v1 }
 0x621   :  { %v3586_v45 = vmul.f32 %v7934_v31, %v3572_v2 }
 0x622   :  { %v3603_v10 = vpack.c.bf16 %v7988_v22, %v7992_v7  ;;  %v3585_v28 = vmul.f32 %v7934_v31, %v3571_v53 }
 0x623   :  { %v8007_v1 = vadd.f32 %v7941_v46, %v3586_v45 }
 0x624   :  { %3766 = vmatmul.mubr.bf16.gmra.mrb[56].mxu1 %v3603_v10  ;;  %v8004_v24 = vadd.f32 %v7941_v46, %v3585_v28 }
 0x625   :  { %3775 = vmatprep.mubr.bf16.mxu1 %v8438_v18 }
 0x626   :  { %v3604_v18 = vpack.c.bf16 %v8007_v1, %v8004_v24 }
 0x62c   :  { %3776 = vmatmul.mubr.bf16.gmra.mrb[60].mxu1 %v3604_v18 }
 0x69d   :  { %v3747_v12 = vpop.f32.mrb[48].mxu1 }
 0x69e   :  { %v3748_v31 = vadd.f32 %v3747_v12, %v8028_v52  ;;  %v3749_v19 = vpop.f32.mrb[49].mxu1 }
 0x69f   :  { %v3750_v49 = vadd.f32 %v3749_v19, %v8031_v4  ;;  %v3751_v32 = vpop.f32.mrb[50].mxu1 }
 0x6a0   :  { %v3752_v46 = vadd.f32 %v3751_v32, %v8028_v52  ;;  %v3753_v60 = vpop.f32.mrb[51].mxu1  ;;  %v3786_v59 = vmax.f32 %v3748_v31, 0.0 }
 0x6a1   :  { %v3754_v44 = vadd.f32 %v3753_v60, %v8031_v4  ;;  %v3787_v51 = vmax.f32 %v3750_v49, 0.0 }
 0x6a2   :  { %v3788_v16 = vmax.f32 %v3752_v46, 0.0 }
 0x6a3   :  { %v3789_v23 = vmax.f32 %v3754_v44, 0.0 }
 0x6a4   :  { %v3802_v57 = vpack.c.bf16 %v3788_v16, %v3786_v59 }
 0x6a5   :  { %v3803_v56 = vpack.c.bf16 %v3789_v23, %v3787_v51  ;;  %v3757_v15 = vpop.f32.mrb[52].mxu1  ;;  %v4470_v23 = vld [vmem:[%s8151_s10] ss:$0 sm:$0xff] }
 0x6a6   :  { %v3758_v36 = vadd.f32 %v3757_v15, %v8028_v52  ;;  %v3759_v34 = vpop.f32.mrb[53].mxu1 }
 0x6a7   :  { %v3760_v39 = vadd.f32 %v3759_v34, %v8031_v4  ;;  %v3761_v50 = vpop.f32.mrb[54].mxu1  ;;  %3977 = vmatprep.mubr.bf16.mxu0 %v3803_v56 }
 0x6a8   :  { %v3762_v37 = vadd.f32 %v3761_v50, %v8028_v52  ;;  %v3763_v0 = vpop.f32.mrb[55].mxu1  ;;  %3978 = vmatmul.mubr.bf16.vlgmr.msra.gmra.mrb[64].mxu0 %v3802_v57  ;;  %v3790_v61 = vmax.f32 %v3758_v36, 0.0 }
 0x6a9   :  { %v3764_v62 = vadd.f32 %v3763_v0, %v8031_v4  ;;  %5260 = vmatpush3.bf16.msra.mxu0 %v7691_v42  ;;  %v3791_v26 = vmax.f32 %v3760_v39, 0.0 }
 0x6aa   :  { %v3792_v6 = vmax.f32 %v3762_v37, 0.0  ;;  %5262 = vmatprep.subr.bf16.mxu0 %v7693_v58 }
 0x6ab   :  { %v3793_v41 = vmax.f32 %v3764_v62, 0.0 }
 0x6ac   :  { %v3804_v29 = vpack.c.bf16 %v3792_v6, %v3790_v61 }
 0x6ad   :  { %v3805_v3 = vpack.c.bf16 %v3793_v41, %v3791_v26  ;;  %5264 = vmatpush3.bf16.msra.mxu0 %v7693_v58 }
 0x6ae   :  { %5266 = vmatprep.subr.bf16.mxu0 %v7715_v25 }
 0x6af   :  { %3985 = vmatprep.mubr.bf16.mxu0 %v3805_v3 }
 0x6b0   :  { %3986 = vmatmul.mubr.bf16.gmra.mrb[68].mxu0 %v3804_v29 }
 0x6b1   :  { %5268 = vmatpush3.bf16.msra.mxu0 %v7715_v25 }
 0x6b2   :  { %5270 = vmatprep.subr.bf16.mxu0 %v7729_v30 }
 0x6b5   :  { %5272 = vmatpush3.bf16.msra.mxu0 %v7729_v30 }
 0x6b6   :  { %5274 = vmatprep.subr.bf16.mxu0 %v7746_v11 }
 0x6b9   :  { %5276 = vmatpush3.bf16.msra.mxu0 %v7746_v11 }
 0x6ba   :  { %5278 = vmatprep.subr.bf16.mxu0 %v7759_v33 }
 0x6bd   :  { %5280 = vmatpush3.bf16.msra.mxu0 %v7759_v33 }
 0x6be   :  { %5282 = vmatprep.subr.bf16.mxu0 %v7783_v35 }
 0x6c1   :  { %5284 = vmatpush3.bf16.msra.mxu0 %v7783_v35 }
 0x6c2   :  { %5286 = vmatprep.subr.bf16.mxu0 %v7794_v55 }
 0x6c5   :  { %5288 = vmatpush3.bf16.msra.mxu0 %v7794_v55 }
 0x6f7   :  { %v3767_v20 = vpop.f32.mrb[56].mxu1 }
 0x6f8   :  { %v3768_v63 = vadd.f32 %v3767_v20, %v8028_v52  ;;  %v3769_v48 = vpop.f32.mrb[57].mxu1 }
 0x6f9   :  { %v3770_v5 = vadd.f32 %v3769_v48, %v8031_v4  ;;  %v3771_v2 = vpop.f32.mrb[58].mxu1 }
 0x6fa   :  { %v3772_v53 = vadd.f32 %v3771_v2, %v8028_v52  ;;  %v3773_v10 = vpop.f32.mrb[59].mxu1  ;;  %v3794_v45 = vmax.f32 %v3768_v63, 0.0 }
 0x6fb   :  { %v3774_v28 = vadd.f32 %v3773_v10, %v8031_v4  ;;  %v3795_v8 = vmax.f32 %v3770_v5, 0.0 }
 0x6fc   :  { %v3796_v47 = vmax.f32 %v3772_v53, 0.0 }
 0x6fd   :  { %v3797_v54 = vmax.f32 %v3774_v28, 0.0 }
 0x6fe   :  { %v3806_v43 = vpack.c.bf16 %v3796_v47, %v3794_v45 }
 0x6ff   :  { %v3807_v18 = vpack.c.bf16 %v3797_v54, %v3795_v8  ;;  %v3777_v14 = vpop.f32.mrb[60].mxu1 }
 0x700   :  { %v3778_v21 = vadd.f32 %v3777_v14, %v8028_v52  ;;  %v3779_v27 = vpop.f32.mrb[61].mxu1 }
 0x701   :  { %v3780_v38 = vadd.f32 %v3779_v27, %v8031_v4  ;;  %v3781_v12 = vpop.f32.mrb[62].mxu1  ;;  %3993 = vmatprep.mubr.bf16.mxu0 %v3807_v18 }
 0x702   :  { %v3782_v31 = vadd.f32 %v3781_v12, %v8028_v52  ;;  %v3783_v19 = vpop.f32.mrb[63].mxu1  ;;  %3994 = vmatmul.mubr.bf16.gmra.mrb[72].mxu0 %v3806_v43  ;;  %v3798_v32 = vmax.f32 %v3778_v21, 0.0 }
 0x703   :  { %v3784_v49 = vadd.f32 %v3783_v19, %v8031_v4  ;;  %v3799_v60 = vmax.f32 %v3780_v38, 0.0 }
 0x704   :  { %v3800_v46 = vmax.f32 %v3782_v31, 0.0 }
 0x705   :  { %v3801_v44 = vmax.f32 %v3784_v49, 0.0 }
 0x706   :  { %v3808_v59 = vpack.c.bf16 %v3800_v46, %v3798_v32 }
 0x707   :  { %v3809_v16 = vpack.c.bf16 %v3801_v44, %v3799_v60 }
 0x709   :  { %4001 = vmatprep.mubr.bf16.mxu0 %v3809_v16 }
 0x70a   :  { %4002 = vmatmul.mubr.bf16.gmra.mrb[76].mxu0 %v3808_v59 }
 0x77b   :  { %v4673_v51 = vpop.f32.mrb[64].mxu0 }
 0x77c   :  { %v4674_v57 = vpop.f32.mrb[65].mxu0 }
 0x77d   :  { %v4675_v56 = vadd.f32 %v4674_v57, %v4673_v51  ;;  %v4676_v52 = vpop.f32.mrb[66].mxu0 }
 0x77e   :  { %v4677_v15 = vpop.f32.mrb[67].mxu0 }
 0x77f   :  { %v3980_v36 = vadd.f32 %v4675_v56, %v4470_v23  ;;  %v4678_v34 = vadd.f32 %v4677_v15, %v4676_v52 }
 0x781   :  { %v3983_v4 = vadd.f32 %v4678_v34, %v4470_v23  ;;  %v4010_v39 = vadd.f32 %v3980_v36, %v7950_v9 }
 0x783   :  { %v4011_v50 = vadd.f32 %v3983_v4, %v7946_v40  ;;  %v4679_v37 = vpop.f32.mrb[68].mxu0  ;;  %5105 = vmatprep.mubr.f32.mxu1 %v4010_v39 }
 0x784   :  { %v4680_v0 = vpop.f32.mrb[69].mxu0 }
 0x785   :  { %v4681_v62 = vadd.f32 %v4680_v0, %v4679_v37  ;;  %v4682_v61 = vpop.f32.mrb[70].mxu0  ;;  %5106 = vmatmul.mubr.f32.vlgmr.msra.gmra.mrb[64].mxu1 %v4011_v50 }
 0x786   :  { %v4683_v6 = vpop.f32.mrb[71].mxu0  ;;  %5297 = vmatpush3.bf16.msra.mxu1 %v7691_v42 }
 0x787   :  { %v3988_v26 = vadd.f32 %v4681_v62, %v4470_v23  ;;  %v4684_v41 = vadd.f32 %v4683_v6, %v4682_v61  ;;  %5290 = vmatprep.subr.bf16.mxu1 %v7693_v58  ;;  %v8114_v62 = vld [vmem:[%s8153_s12] ss:$0 sm:$0xff] }
 0x789   :  { %v3991_v29 = vadd.f32 %v4684_v41, %v4470_v23  ;;  %v4012_v3 = vadd.f32 %v3988_v26, %v7960_v13 }
 0x78a   :  { %5298 = vmatpush3.bf16.msra.mxu1 %v7693_v58 }
 0x78b   :  { %5108 = vmatprep.mubr.f32.mxu1 %v4012_v3  ;;  %v4013_v40 = vadd.f32 %v3991_v29, %v7963_v17  ;;  %5291 = vmatprep.subr.bf16.mxu1 %v7715_v25 }
 0x78d   :  { %5109 = vmatmul.mubr.f32.gmra.mrb[66].mxu1 %v4013_v40 }
 0x78e   :  { %5299 = vmatpush3.bf16.msra.mxu1 %v7715_v25 }
 0x78f   :  { %5292 = vmatprep.subr.bf16.mxu1 %v7729_v30 }
 0x792   :  { %5300 = vmatpush3.bf16.msra.mxu1 %v7729_v30 }
 0x793   :  { %5293 = vmatprep.subr.bf16.mxu1 %v7746_v11 }
 0x796   :  { %5301 = vmatpush3.bf16.msra.mxu1 %v7746_v11 }
 0x797   :  { %5294 = vmatprep.subr.bf16.mxu1 %v7759_v33 }
 0x79a   :  { %5302 = vmatpush3.bf16.msra.mxu1 %v7759_v33 }
 0x79b   :  { %5295 = vmatprep.subr.bf16.mxu1 %v7783_v35 }
 0x79e   :  { %5303 = vmatpush3.bf16.msra.mxu1 %v7783_v35 }
 0x79f   :  { %5296 = vmatprep.subr.bf16.mxu1 %v7794_v55 }
 0x7a2   :  { %5304 = vmatpush3.bf16.msra.mxu1 %v7794_v55 }
 0x7d5   :  { %v4685_v42 = vpop.f32.mrb[72].mxu0 }
 0x7d6   :  { %v4686_v58 = vpop.f32.mrb[73].mxu0 }
 0x7d7   :  { %v4687_v25 = vadd.f32 %v4686_v58, %v4685_v42  ;;  %v4688_v30 = vpop.f32.mrb[74].mxu0 }
 0x7d8   :  { %v4689_v9 = vpop.f32.mrb[75].mxu0 }
 0x7d9   :  { %v3996_v13 = vadd.f32 %v4687_v25, %v4470_v23  ;;  %v4690_v17 = vadd.f32 %v4689_v9, %v4688_v30 }
 0x7db   :  { %v3999_v11 = vadd.f32 %v4690_v17, %v4470_v23  ;;  %v4014_v20 = vadd.f32 %v3996_v13, %v7992_v7 }
 0x7dd   :  { %v4691_v63 = vpop.f32.mrb[76].mxu0  ;;  %5111 = vmatprep.mubr.f32.mxu1 %v4014_v20  ;;  %v4015_v33 = vadd.f32 %v3999_v11, %v7988_v22 }
 0x7de   :  { %v4692_v48 = vpop.f32.mrb[77].mxu0 }
 0x7df   :  { %v4693_v35 = vadd.f32 %v4692_v48, %v4691_v63  ;;  %v4694_v5 = vpop.f32.mrb[78].mxu0  ;;  %5112 = vmatmul.mubr.f32.gmra.mrb[68].mxu1 %v4015_v33 }
 0x7e0   :  { %v4695_v2 = vpop.f32.mrb[79].mxu0 }
 0x7e1   :  { %v4004_v55 = vadd.f32 %v4693_v35, %v4470_v23  ;;  %v4696_v53 = vadd.f32 %v4695_v2, %v4694_v5 }
 0x7e3   :  { %v4007_v10 = vadd.f32 %v4696_v53, %v4470_v23  ;;  %v4016_v28 = vadd.f32 %v4004_v55, %v8004_v24 }
 0x7e5   :  { %5114 = vmatprep.mubr.f32.mxu1 %v4016_v28  ;;  %v4017_v45 = vadd.f32 %v4007_v10, %v8007_v1 }
 0x7e7   :  { %5115 = vmatmul.mubr.f32.gmra.mrb[70].mxu1 %v4017_v45 }
 0x858   :  { %v5107_v47 = vpop.f32.mrb[64].mxu1 }
 0x859   :  { %v4126_v7 = vsub.f32 %v4011_v50, %v5107_v47  ;;  %v4086_v8 = vpop.f32.mrb[65].mxu1  ;;  %v8109_v50 = vld [vmem:[%s8152_s11] ss:$0 sm:$0xff] }
 0x85a   :  { %v4125_v54 = vsub.f32 %v4010_v39, %v4086_v8 }
 0x85b   :  { %v4134_v22 = vmul.f32 %v4126_v7, %v4126_v7 }
 0x85c   :  { %v4133_v43 = vmul.f32 %v4125_v54, %v4125_v54 }
 0x85e   :  { %5149 = vmatprep.mubr.f32.mxu0 %v4133_v43 }
 0x85f   :  { %5150 = vmatmul.mubr.f32.vlgmr.msra.gmra.mrb[80].mxu0 %v4134_v22 }
 0x860   :  { %v5110_v18 = vpop.f32.mrb[66].mxu1 }
 0x861   :  { %v4128_v14 = vsub.f32 %v4013_v40, %v5110_v18  ;;  %v4096_v21 = vpop.f32.mrb[67].mxu1 }
 0x862   :  { %v4127_v27 = vsub.f32 %v4012_v3, %v4096_v21 }
 0x863   :  { %v4136_v12 = vmul.f32 %v4128_v14, %v4128_v14 }
 0x864   :  { %v4135_v38 = vmul.f32 %v4127_v27, %v4127_v27 }
 0x866   :  { %5152 = vmatprep.mubr.f32.mxu0 %v4135_v38 }
 0x867   :  { %5153 = vmatmul.mubr.f32.gmra.mrb[82].mxu0 %v4136_v12 }
 0x8b2   :  { %v5113_v24 = vpop.f32.mrb[68].mxu1 }
 0x8b3   :  { %v8090_v31 = vsub.f32 %v4015_v33, %v5113_v24  ;;  %v4106_v1 = vpop.f32.mrb[69].mxu1 }
 0x8b4   :  { %v8092_v19 = vsub.f32 %v4014_v20, %v4106_v1 }
 0x8b5   :  { %v4138_v32 = vmul.f32 %v8090_v31, %v8090_v31 }
 0x8b6   :  { %v4137_v49 = vmul.f32 %v8092_v19, %v8092_v19 }
 0x8b8   :  { %5155 = vmatprep.mubr.f32.mxu1 %v4137_v49 }
 0x8b9   :  { %5156 = vmatmul.mubr.f32.vlgmr.msra.gmra.mrb[72].mxu1 %v4138_v32 }
 0x8ba   :  { %v5116_v46 = vpop.f32.mrb[70].mxu1 }
 0x8bb   :  { %v8098_v60 = vsub.f32 %v4017_v45, %v5116_v46  ;;  %v4116_v44 = vpop.f32.mrb[71].mxu1 }
 0x8bc   :  { %v8100_v59 = vsub.f32 %v4016_v28, %v4116_v44 }
 0x8bd   :  { %v4140_v51 = vmul.f32 %v8098_v60, %v8098_v60 }
 0x8be   :  { %v4139_v16 = vmul.f32 %v8100_v59, %v8100_v59 }
 0x8c0   :  { %5158 = vmatprep.mubr.f32.mxu1 %v4139_v16 }
 0x8c1   :  { %5159 = vmatmul.mubr.f32.gmra.mrb[74].mxu1 %v4140_v51 }
 0x932   :  { %v5151_v23 = vpop.f32.mrb[80].mxu0 }
 0x933   :  { %v4213_v57 = vadd.f32 1e-05, %v5151_v23  ;;  %v4207_v56 = vpop.f32.mrb[81].mxu0 }
 0x934   :  { %v4208_v52 = vadd.f32 1e-05, %v4207_v56 }
 0x935   :  { %5674 = vrsqrt.f32 %v4213_v57 }
 0x936   :  { %5676 = vrsqrt.f32 %v4208_v52 }
 0x93a   :  { %v5154_v15 = vpop.f32.mrb[82].mxu0 }
 0x93b   :  { %v4223_v36 = vadd.f32 1e-05, %v5154_v15  ;;  %v4217_v34 = vpop.f32.mrb[83].mxu0 }
 0x93c   :  { %v4218_v4 = vadd.f32 1e-05, %v4217_v34 }
 0x93d   :  { %5678 = vrsqrt.f32 %v4223_v36 }
 0x93e   :  { %5680 = vrsqrt.f32 %v4218_v4 }
 0x93f   :  { %v5675_v39 = vpop.eup %5674 }
 0x940   :  { %v5677_v37 = vpop.eup %5676  ;;  %v4255_v0 = vmul.f32 %v5675_v39, %v4126_v7 }
 0x941   :  { %v4254_v61 = vmul.f32 %v5677_v37, %v4125_v54 }
 0x942   :  { %v4269_v6 = vmul.f32 %v8109_v50, %v4255_v0 }
 0x943   :  { %v4268_v26 = vmul.f32 %v8109_v50, %v4254_v61 }
 0x944   :  { %v4283_v41 = vadd.f32 %v8114_v62, %v4269_v6 }
 0x945   :  { %v4282_v29 = vadd.f32 %v8114_v62, %v4268_v26 }
 0x946   :  { %v4296_v3 = vrot.slane %v4283_v41, 4 }
 0x947   :  { %v5679_v40 = vpop.eup %5678  ;;  %v4290_v42 = vrot.slane %v4282_v29, 4 }
 0x948   :  { %v5681_v58 = vpop.eup %5680  ;;  %v4297_v25 = vadd.f32 %v4296_v3, %v4283_v41  ;;  %v4257_v30 = vmul.f32 %v5679_v40, %v4128_v14 }
 0x949   :  { %v4291_v9 = vadd.f32 %v4290_v42, %v4282_v29  ;;  %v4256_v13 = vmul.f32 %v5681_v58, %v4127_v27 }
 0x94a   :  { %v4298_v17 = vrot.slane %v4297_v25, 2  ;;  %v4271_v11 = vmul.f32 %v8109_v50, %v4257_v30 }
 0x94b   :  { %v4292_v20 = vrot.slane %v4291_v9, 2  ;;  %v4270_v63 = vmul.f32 %v8109_v50, %v4256_v13 }
 0x94c   :  { %v4299_v33 = vadd.f32 %v4298_v17, %v4297_v25  ;;  %v4285_v48 = vadd.f32 %v8114_v62, %v4271_v11 }
 0x94d   :  { %v4293_v35 = vadd.f32 %v4292_v20, %v4291_v9  ;;  %v4284_v5 = vadd.f32 %v8114_v62, %v4270_v63 }
 0x94e   :  { %v4300_v2 = vrot.slane %v4299_v33, 1  ;;  %v4308_v55 = vrot.slane %v4285_v48, 4 }
 0x94f   :  { %v4294_v53 = vrot.slane %v4293_v35, 1  ;;  %v4302_v10 = vrot.slane %v4284_v5, 4 }
 0x950   :  { %v4301_v28 = vadd.f32 %v4300_v2, %v4299_v33  ;;  %v4309_v45 = vadd.f32 %v4308_v55, %v4285_v48 }
 0x951   :  { %v4295_v47 = vadd.f32 %v4294_v53, %v4293_v35  ;;  %v4303_v7 = vadd.f32 %v4302_v10, %v4284_v5 }
 0x952   :  { %v4340_v8 = vmul.f32 0.125, %v4301_v28  ;;  %v4310_v54 = vrot.slane %v4309_v45, 2 }
 0x953   :  { %v4339_v43 = vmul.f32 0.125, %v4295_v47  ;;  %v4304_v22 = vrot.slane %v4303_v7, 2 }
 0x954   :  { %v4311_v18 = vadd.f32 %v4310_v54, %v4309_v45 }
 0x955   :  { %v4356_v14 = vsel %vm4355_vm7, %v4340_v8, %v4339_v43  ;;  %v4305_v21 = vadd.f32 %v4304_v22, %v4303_v7 }
 0x956   :  { %v4312_v27 = vrot.slane %v4311_v18, 1 }
 0x957   :  { %v4306_v38 = vrot.slane %v4305_v21, 1 }
 0x958   :  { %v4313_v12 = vadd.f32 %v4312_v27, %v4311_v18 }
 0x959   :  { %v4307_v24 = vadd.f32 %v4306_v38, %v4305_v21 }
 0x95a   :  { %v4342_v49 = vmul.f32 0.125, %v4313_v12 }
 0x95b   :  { %v4341_v1 = vmul.f32 0.125, %v4307_v24 }
 0x95d   :  { %v4358_v32 = vsel %vm4357_vm8, %v4341_v1, %v4356_v14 }
 0x95e   :  { %v4360_v46 = vsel %vm4359_vm9, %v4342_v49, %v4358_v32 }
 0x98c   :  { %v5157_v44 = vpop.f32.mrb[72].mxu1 }
 0x98d   :  { %v4233_v16 = vadd.f32 1e-05, %v5157_v44  ;;  %v4227_v51 = vpop.f32.mrb[73].mxu1 }
 0x98e   :  { %v4228_v23 = vadd.f32 1e-05, %v4227_v51 }
 0x98f   :  { %5682 = vrsqrt.f32 %v4233_v16 }
 0x990   :  { %5684 = vrsqrt.f32 %v4228_v23 }
 0x994   :  { %v5160_v57 = vpop.f32.mrb[74].mxu1 }
 0x995   :  { %v4243_v56 = vadd.f32 1e-05, %v5160_v57  ;;  %v4237_v52 = vpop.f32.mrb[75].mxu1 }
 0x996   :  { %v4238_v15 = vadd.f32 1e-05, %v4237_v52 }
 0x997   :  { %5686 = vrsqrt.f32 %v4243_v56 }
 0x998   :  { %5688 = vrsqrt.f32 %v4238_v15 }
 0x999   :  { %v5683_v36 = vpop.eup %5682 }
 0x99a   :  { %v5685_v34 = vpop.eup %5684  ;;  %v4259_v4 = vmul.f32 %v5683_v36, %v8090_v31 }
 0x99b   :  { %v4258_v39 = vmul.f32 %v5685_v34, %v8092_v19 }
 0x99c   :  { %v4273_v37 = vmul.f32 %v8109_v50, %v4259_v4 }
 0x99d   :  { %v4272_v0 = vmul.f32 %v8109_v50, %v4258_v39 }
 0x99e   :  { %v4287_v61 = vadd.f32 %v8114_v62, %v4273_v37 }
 0x99f   :  { %v4286_v6 = vadd.f32 %v8114_v62, %v4272_v0 }
 0x9a0   :  { %v4320_v26 = vrot.slane %v4287_v61, 4 }
 0x9a1   :  { %v5687_v41 = vpop.eup %5686  ;;  %v4314_v29 = vrot.slane %v4286_v6, 4 }
 0x9a2   :  { %v5689_v3 = vpop.eup %5688  ;;  %v4321_v40 = vadd.f32 %v4320_v26, %v4287_v61  ;;  %v4261_v42 = vmul.f32 %v5687_v41, %v8098_v60 }
 0x9a3   :  { %v4315_v58 = vadd.f32 %v4314_v29, %v4286_v6  ;;  %v4260_v31 = vmul.f32 %v5689_v3, %v8100_v59 }
 0x9a4   :  { %v4322_v25 = vrot.slane %v4321_v40, 2  ;;  %v4275_v19 = vmul.f32 %v8109_v50, %v4261_v42 }
 0x9a5   :  { %v4316_v30 = vrot.slane %v4315_v58, 2  ;;  %v4274_v9 = vmul.f32 %v8109_v50, %v4260_v31 }
 0x9a6   :  { %v4323_v13 = vadd.f32 %v4322_v25, %v4321_v40  ;;  %v4289_v17 = vadd.f32 %v8114_v62, %v4275_v19 }
 0x9a7   :  { %v4317_v11 = vadd.f32 %v4316_v30, %v4315_v58  ;;  %v4288_v20 = vadd.f32 %v8114_v62, %v4274_v9 }
 0x9a8   :  { %v4324_v63 = vrot.slane %v4323_v13, 1  ;;  %v4332_v33 = vrot.slane %v4289_v17, 4 }
 0x9a9   :  { %v4318_v48 = vrot.slane %v4317_v11, 1  ;;  %v4326_v35 = vrot.slane %v4288_v20, 4 }
 0x9aa   :  { %v4325_v60 = vadd.f32 %v4324_v63, %v4323_v13  ;;  %v4333_v5 = vadd.f32 %v4332_v33, %v4289_v17 }
 0x9ab   :  { %v4319_v2 = vadd.f32 %v4318_v48, %v4317_v11  ;;  %v4327_v59 = vadd.f32 %v4326_v35, %v4288_v20 }
 0x9ac   :  { %v4334_v55 = vrot.slane %v4333_v5, 2  ;;  %v4344_v50 = vmul.f32 0.125, %v4325_v60 }
 0x9ad   :  { %v4343_v53 = vmul.f32 0.125, %v4319_v2  ;;  %v4328_v10 = vrot.slane %v4327_v59, 2 }
 0x9ae   :  { %v4335_v28 = vadd.f32 %v4334_v55, %v4333_v5 }
 0x9af   :  { %v4362_v45 = vsel %vm4361_vm10, %v4343_v53, %v4360_v46  ;;  %v4329_v47 = vadd.f32 %v4328_v10, %v4327_v59 }
 0x9b0   :  { %v4336_v7 = vrot.slane %v4335_v28, 1  ;;  %v4364_v8 = vsel %vm4363_vm11, %v4344_v50, %v4362_v45 }
 0x9b1   :  { %v4330_v62 = vrot.slane %v4329_v47, 1 }
 0x9b2   :  { %v4337_v54 = vadd.f32 %v4336_v7, %v4335_v28 }
 0x9b3   :  { %v4331_v43 = vadd.f32 %v4330_v62, %v4329_v47 }
 0x9b4   :  { %v4346_v18 = vmul.f32 0.125, %v4337_v54 }
 0x9b5   :  { %v4345_v22 = vmul.f32 0.125, %v4331_v43 }
 0x9b7   :  { %v4366_v14 = vsel %vm4365_vm12, %v4345_v22, %v4364_v8 }
 0x9b8   :  { %v4368_v21 = vsel %vm4367_vm13, %v4346_v18, %v4366_v14 }
 0x9b9   :  { %4370 = vst [vmem:[%s8154_s15] sm:$0xff] %v4368_v21 }

</bundles_post_ra>
